<compile_context>
chip_gen: v7x
topology: tpu7x:2x2x1
jax: 0.10.0
libtpu: 0.0.40
codegen_flags: <defaults>
</compile_context>

<pallas_src>
import math

import jax
import jax.numpy as jnp
from jax.experimental import pallas as pl
from jax.experimental.pallas import tpu as pltpu


def _make_kernel(seg):
    def kernel(x_ref, w_ref, b_ref, wout_ref, bnb_ref, gamma_ref, o_ref):
        x = x_ref[...]                                   # (bt, C, HW) f32
        xb = x.astype(jnp.bfloat16)

        # Fused projection (single MXU matmul):
        #   rows [0:P]        -> query / sqrt(P)
        #   row  [P]          -> constant 1 (carries the key mask into q@k^T)
        #   rows [seg:seg+P]  -> key
        #   row  [seg+P]      -> key_mask
        #   rows [2seg:2seg+P]-> value
        # (zero rows pad each segment to a sublane-aligned size `seg`)
        proj = jnp.einsum("oc,bcs->bos", w_ref[...], xb,
                          preferred_element_type=jnp.float32)
        proj = proj + b_ref[...][None, :, :]             # (bt, 3*seg, HW) f32

        qe = proj[:, 0:seg, :].astype(jnp.bfloat16)
        ke = proj[:, seg:2 * seg, :].astype(jnp.bfloat16)
        v = proj[:, 2 * seg:3 * seg, :].astype(jnp.bfloat16)

        # sim = q @ k^T / sqrt(P) + key_mask  -- scale and mask already folded in.
        sim = jnp.einsum("bpi,bpj->bij", qe, ke,
                         preferred_element_type=jnp.float32)   # (bt, HW, HW)

        # softmax over the key dim (f32 math; reciprocal on the EUP slot)
        m = jnp.max(sim, axis=-1, keepdims=True)
        e = jnp.exp(sim - m)
        s = jnp.sum(e, axis=-1, keepdims=True)
        probs = (e * pl.reciprocal(s, approx=True)).astype(jnp.bfloat16)

        # attention output (channel-first): out[b, p, i] = sum_j v[b, p, j] * probs[b, i, j]
        out_pc = jnp.einsum("bpj,bij->bpi", v, probs,
                            preferred_element_type=jnp.float32).astype(jnp.bfloat16)

        # conv_out with eval-mode BN scale folded into its columns
        outc = jnp.einsum("cp,bpi->bci", wout_ref[...], out_pc,
                          preferred_element_type=jnp.float32)  # (bt, C, HW)

        g = gamma_ref[0]                                  # SMEM scalar
        o_ref[...] = g * (outc + bnb_ref[...][None, :, :]) + x

    return kernel


def mask_nonlocal2d_pallas(x_nchw, fused, *, block_b=None):
    """x_nchw: (B, C, H, W) float32. Returns (B, C, H, W) float32."""
    B, C, H, W = x_nchw.shape
    HW = H * W
    seg = fused["seg"]
    O = 3 * seg

    # free reshape only -- no NCHW<->NHWC transpose passes through HBM
    x_cf = x_nchw.reshape(B, C, HW)

    if block_b is None:
        # largest divisor of B whose f32 (bt, HW, HW) sim block stays under ~8 MiB
        cap = max(1, (8 << 20) // (HW * HW * 4))
        block_b = max(d for d in range(1, B + 1) if B % d == 0 and d <= cap)
    bt = block_b
    assert B % bt == 0

    const2 = lambda shape: pl.BlockSpec(shape, lambda b: (0, 0))

    out_cf = pl.pallas_call(
        _make_kernel(seg),
        out_shape=jax.ShapeDtypeStruct((B, C, HW), jnp.float32),
        grid_spec=pltpu.PrefetchScalarGridSpec(
            num_scalar_prefetch=0,
            grid=(B // bt,),
            in_specs=[
                pl.BlockSpec((bt, C, HW), lambda b: (b, 0, 0)),      # x (channel-first)
                const2((O, C)),                                      # fused qkv+mask weights (bf16)
                const2((O, 1)),                                      # fused biases (f32)
                const2((C, seg)),                                    # conv_out * bn_scale (bf16)
                const2((C, 1)),                                      # bn bias
                pl.BlockSpec(memory_space=pltpu.MemorySpace.SMEM),   # gamma scalar
            ],
            out_specs=pl.BlockSpec((bt, C, HW), lambda b: (b, 0, 0)),
        ),
        compiler_params=pltpu.CompilerParams(
            dimension_semantics=("parallel",)),   # independent batch blocks (2 TCs on v7x)
    )(x_cf, fused["w_fused"], fused["b_fused"], fused["wout_cf"],
      fused["bn_bias"], fused["gamma"])

    return out_cf.reshape(B, C, H, W)


def mask_nonlocal2d_ref(x_nchw, p):
    """Pure-JAX f32 reference of the same forward pass, for verification."""
    B, C, H, W = x_nchw.shape
    HW = H * W
    P = p["wq"].shape[1]
    scale = math.sqrt(P)
    xf = jnp.transpose(x_nchw, (0, 2, 3, 1)).reshape(B, HW, C)

    q = xf @ p["wq"] + p["bq"]
    k = xf @ p["wk"] + p["bk"]
    v = xf @ p["wv"] + p["bv"]
    km = (xf @ p["wkm"] + p["bkm"])[..., 0]                # (B, HW)

    sim = jnp.einsum("bqp,bkp->bqk", q, k) / scale
    sim = sim + km[:, None, :]
    sim = jax.nn.softmax(sim, axis=-1)
    out = jnp.einsum("bqk,bkp->bqp", sim, v)
    out = out @ p["wout"]
    out = out * p["bn_scale"] + p["bn_bias"]
    out = p["gamma"][0] * out + xf
    return jnp.transpose(out.reshape(B, H, W, C), (0, 3, 1, 2))


def init_params(key, inplanes, planes):
    """Raw PyTorch-style parameters (conv weights ~N(0, 0.01), biases 0)."""
    ks = jax.random.split(key, 5)
    std = 0.01
    # weights stored as (C_in, C_out) so x @ W matches PyTorch's 1x1 conv
    wq = std * jax.random.normal(ks[0], (inplanes, planes), jnp.float32)
    wk = std * jax.random.normal(ks[1], (inplanes, planes), jnp.float32)
    wv = std * jax.random.normal(ks[2], (inplanes, planes), jnp.float32)
    wkm = std * jax.random.normal(ks[3], (inplanes, 1), jnp.float32)
    wout = std * jax.random.normal(ks[4], (planes, inplanes), jnp.float32)  # no bias

    bq = jnp.zeros((planes,), jnp.float32)
    bk = jnp.zeros((planes,), jnp.float32)
    bv = jnp.zeros((planes,), jnp.float32)
    bkm = jnp.zeros((1,), jnp.float32)

    # BatchNorm2d(inplanes) eval-mode fold: weight=1, bias=0, mean=0, var=1, eps=1e-5
    eps = 1e-5
    bn_w = jnp.ones((inplanes,), jnp.float32)
    bn_b = jnp.zeros((inplanes,), jnp.float32)
    bn_mean = jnp.zeros((inplanes,), jnp.float32)
    bn_var = jnp.ones((inplanes,), jnp.float32)
    bn_scale = bn_w / jnp.sqrt(bn_var + eps)
    bn_bias = bn_b - bn_mean * bn_scale

    gamma = jnp.full((1,), 0.5, jnp.float32)  # PyTorch init is 0.0 (identity output)

    return dict(wq=wq, bq=bq, wk=wk, bk=bk, wv=wv, bv=bv, wkm=wkm, bkm=bkm,
                wout=wout, bn_scale=bn_scale, bn_bias=bn_bias, gamma=gamma)


def fuse_params(p, inplanes, planes):
    """One-time wrapper-side constant folding into kernel-friendly fused tensors."""
    C, P = inplanes, planes
    scale = math.sqrt(P)
    seg = max(8, ((P + 1 + 7) // 8) * 8)   # sublane-aligned segment size
    O = 3 * seg

    W = jnp.zeros((O, C), jnp.float32)
    b = jnp.zeros((O,), jnp.float32)
    # query segment (scale folded in) + "ones" row that carries the key mask
    W = W.at[0:P].set(p["wq"].T / scale)
    b = b.at[0:P].set(p["bq"] / scale)
    b = b.at[P].set(1.0)
    # key segment + key-mask row
    W = W.at[seg:seg + P].set(p["wk"].T)
    b = b.at[seg:seg + P].set(p["bk"])
    W = W.at[seg + P].set(p["wkm"][:, 0])
    b = b.at[seg + P].set(p["bkm"][0])
    # value segment
    W = W.at[2 * seg:2 * seg + P].set(p["wv"].T)
    b = b.at[2 * seg:2 * seg + P].set(p["bv"])

    # conv_out with BN scale folded in, channel-first, zero-padded to seg columns
    wout_cf = jnp.zeros((C, seg), jnp.float32)
    wout_cf = wout_cf.at[:, 0:P].set((p["wout"] * p["bn_scale"][None, :]).T)

    return dict(
        w_fused=W.astype(jnp.bfloat16),
        b_fused=b.reshape(O, 1),
        wout_cf=wout_cf.astype(jnp.bfloat16),
        bn_bias=p["bn_bias"].reshape(C, 1),
        gamma=p["gamma"].reshape(1,),
        seg=seg,
    )


if __name__ == "__main__":
    key = jax.random.PRNGKey(0)
    kx, kp = jax.random.split(key)

    B, C, H, W = 2, 8, 16, 16      # inplanes=8, spatial 16x16 -> HW=256 (lane-dense)
    planes = 4

    x = jax.random.normal(kx, (B, C, H, W), jnp.float32)
    params = init_params(kp, C, planes)
    fused = fuse_params(params, C, planes)

    out = mask_nonlocal2d_pallas(x, fused)
    out = jax.block_until_ready(out)

    ref = mask_nonlocal2d_ref(x, params)
    assert out.shape == (B, C, H, W)
    # bf16 MXU operands + approx reciprocal -> loosened tolerance vs f32 reference
    assert jnp.allclose(out, ref, atol=5e-3, rtol=5e-3), "mismatch vs pure-JAX reference"

    print("KERNEL_OK")
</pallas_src>

<mosaic_0001>
module attributes {stable_mosaic.version = 11 : i64} {
  func.func @kernel(%arg0: i32, %arg1: memref<2x8x256xf32, #tpu.memory_space<vmem>>, %arg2: memref<24x8xbf16, #tpu.memory_space<vmem>>, %arg3: memref<24x1xf32, #tpu.memory_space<vmem>>, %arg4: memref<8x8xbf16, #tpu.memory_space<vmem>>, %arg5: memref<8x1xf32, #tpu.memory_space<vmem>>, %arg6: memref<1xf32, #tpu.memory_space<smem>>, %arg7: memref<2x8x256xf32, #tpu.memory_space<vmem>>) attributes {dimension_semantics = [#tpu.dimension_semantics<parallel>], iteration_bounds = array<i64: 1>, scalar_prefetch = 0 : i64, scratch_operands = 0 : i64, tpu.core_type = #tpu.core_type<tc>, window_params = [{transform_indices = @transform_0, window_bounds = array<i64: 2, 8, 256>}, {pipeline_mode = #tpu.pipeline_mode<synchronous>, transform_indices = @transform_1, window_bounds = array<i64: 24, 8>}, {pipeline_mode = #tpu.pipeline_mode<synchronous>, transform_indices = @transform_2, window_bounds = array<i64: 24, 1>}, {pipeline_mode = #tpu.pipeline_mode<synchronous>, transform_indices = @transform_3, window_bounds = array<i64: 8, 8>}, {pipeline_mode = #tpu.pipeline_mode<synchronous>, transform_indices = @transform_4, window_bounds = array<i64: 8, 1>}, {transform_indices = @transform_5, window_bounds = array<i64: 1>}, {transform_indices = @transform_6, window_bounds = array<i64: 2, 8, 256>}]} {
    %c0 = arith.constant 0 : index
    %c0_0 = arith.constant 0 : index
    %c0_1 = arith.constant 0 : index
    %0 = vector.load %arg1[%c0, %c0_0, %c0_1] : memref<2x8x256xf32, #tpu.memory_space<vmem>>, vector<2x8x256xf32>
    %1 = arith.truncf %0 : vector<2x8x256xf32> to vector<2x8x256xbf16>
    %c0_2 = arith.constant 0 : index
    %c0_3 = arith.constant 0 : index
    %2 = vector.load %arg2[%c0_2, %c0_3] : memref<24x8xbf16, #tpu.memory_space<vmem>>, vector<24x8xbf16>
    "tpu.trace_start"() <{level = 10 : i32, message = "oc,bcs->bos"}> : () -> ()
    %cst = arith.constant dense<0.000000e+00> : vector<2x256x24xf32>
    %3 = tpu.matmul %1, %2, %cst {dimension_numbers = #tpu.dot_dimension_numbers<[1], [1], [0, 2], [0], [0, 0, 0, 2, 1, 0], [], []>} : vector<2x8x256xbf16>, vector<24x8xbf16>, vector<2x256x24xf32> -> vector<2x256x24xf32>
    %4 = tpu.transpose %3, [0, 2, 1] : vector<2x256x24xf32> -> vector<2x24x256xf32>
    "tpu.trace_stop"() : () -> ()
    %c0_4 = arith.constant 0 : index
    %c0_5 = arith.constant 0 : index
    %5 = vector.load %arg3[%c0_4, %c0_5] : memref<24x1xf32, #tpu.memory_space<vmem>>, vector<24x1xf32>
    %6 = vector.shape_cast %5 : vector<24x1xf32> to vector<1x24x1xf32>
    %7 = vector.broadcast %6 : vector<1x24x1xf32> to vector<2x24x256xf32>
    %8 = arith.addf %4, %7 : vector<2x24x256xf32>
    %9 = vector.extract_strided_slice %8 {offsets = [0, 0, 0], sizes = [2, 8, 256], strides = [1, 1, 1]} : vector<2x24x256xf32> to vector<2x8x256xf32>
    %10 = arith.truncf %9 : vector<2x8x256xf32> to vector<2x8x256xbf16>
    %11 = vector.extract_strided_slice %8 {offsets = [0, 8, 0], sizes = [2, 8, 256], strides = [1, 1, 1]} : vector<2x24x256xf32> to vector<2x8x256xf32>
    %12 = arith.truncf %11 : vector<2x8x256xf32> to vector<2x8x256xbf16>
    %13 = vector.extract_strided_slice %8 {offsets = [0, 16, 0], sizes = [2, 8, 256], strides = [1, 1, 1]} : vector<2x24x256xf32> to vector<2x8x256xf32>
    %14 = arith.truncf %13 : vector<2x8x256xf32> to vector<2x8x256xbf16>
    "tpu.trace_start"() <{level = 10 : i32, message = "bpi,bpj->bij"}> : () -> ()
    %cst_6 = arith.constant dense<0.000000e+00> : vector<2x256x256xf32>
    %15 = tpu.matmul %10, %12, %cst_6 {dimension_numbers = #tpu.dot_dimension_numbers<[1], [1], [2], [2], [0, 0, 0, 2, 1, 2], [0], [0]>} : vector<2x8x256xbf16>, vector<2x8x256xbf16>, vector<2x256x256xf32> -> vector<2x256x256xf32>
    "tpu.trace_stop"() : () -> ()
    %cst_7 = arith.constant dense<0xFF800000> : vector<2x256xf32>
    %16 = vector.multi_reduction <maximumf>, %15, %cst_7 [2] : vector<2x256x256xf32> to vector<2x256xf32>
    %17 = vector.shape_cast %16 : vector<2x256xf32> to vector<2x256x1xf32>
    %18 = vector.broadcast %17 : vector<2x256x1xf32> to vector<2x256x256xf32>
    %19 = arith.subf %15, %18 : vector<2x256x256xf32>
    %20 = math.exp %19 : vector<2x256x256xf32>
    %cst_8 = arith.constant dense<0.000000e+00> : vector<2x256xf32>
    %21 = vector.multi_reduction <add>, %20, %cst_8 [2] : vector<2x256x256xf32> to vector<2x256xf32>
    %22 = vector.shape_cast %21 : vector<2x256xf32> to vector<2x256x1xf32>
    %23 = tpu.reciprocal %22 {approx = true} : vector<2x256x1xf32> -> vector<2x256x1xf32>
    %24 = vector.broadcast %23 : vector<2x256x1xf32> to vector<2x256x256xf32>
    %25 = arith.mulf %20, %24 : vector<2x256x256xf32>
    %26 = arith.truncf %25 : vector<2x256x256xf32> to vector<2x256x256xbf16>
    "tpu.trace_start"() <{level = 10 : i32, message = "bpj,bij->bpi"}> : () -> ()
    %cst_9 = arith.constant dense<0.000000e+00> : vector<2x8x256xf32>
    %27 = tpu.matmul %14, %26, %cst_9 {dimension_numbers = #tpu.dot_dimension_numbers<[2], [2], [1], [1], [0, 0, 0, 1, 1, 1], [0], [0]>} : vector<2x8x256xbf16>, vector<2x256x256xbf16>, vector<2x8x256xf32> -> vector<2x8x256xf32>
    "tpu.trace_stop"() : () -> ()
    %28 = arith.truncf %27 : vector<2x8x256xf32> to vector<2x8x256xbf16>
    %c0_10 = arith.constant 0 : index
    %c0_11 = arith.constant 0 : index
    %29 = vector.load %arg4[%c0_10, %c0_11] : memref<8x8xbf16, #tpu.memory_space<vmem>>, vector<8x8xbf16>
    "tpu.trace_start"() <{level = 10 : i32, message = "cp,bpi->bci"}> : () -> ()
    %cst_12 = arith.constant dense<0.000000e+00> : vector<2x256x8xf32>
    %30 = tpu.matmul %28, %29, %cst_12 {dimension_numbers = #tpu.dot_dimension_numbers<[1], [1], [0, 2], [0], [0, 0, 0, 2, 1, 0], [], []>} : vector<2x8x256xbf16>, vector<8x8xbf16>, vector<2x256x8xf32> -> vector<2x256x8xf32>
    %31 = tpu.transpose %30, [0, 2, 1] : vector<2x256x8xf32> -> vector<2x8x256xf32>
    "tpu.trace_stop"() : () -> ()
    %c0_13 = arith.constant 0 : index
    %32 = memref.load %arg6[%c0_13] : memref<1xf32, #tpu.memory_space<smem>>
    %c0_14 = arith.constant 0 : index
    %c0_15 = arith.constant 0 : index
    %33 = vector.load %arg5[%c0_14, %c0_15] : memref<8x1xf32, #tpu.memory_space<vmem>>, vector<8x1xf32>
    %34 = vector.shape_cast %33 : vector<8x1xf32> to vector<1x8x1xf32>
    %35 = vector.broadcast %34 : vector<1x8x1xf32> to vector<2x8x256xf32>
    %36 = arith.addf %31, %35 : vector<2x8x256xf32>
    %37 = vector.broadcast %32 : f32 to vector<2x8x256xf32>
    %38 = arith.mulf %37, %36 : vector<2x8x256xf32>
    %39 = arith.addf %38, %0 : vector<2x8x256xf32>
    %c0_16 = arith.constant 0 : index
    %c0_17 = arith.constant 0 : index
    %c0_18 = arith.constant 0 : index
    %40 = vector.load %arg7[%c0_16, %c0_17, %c0_18] : memref<2x8x256xf32, #tpu.memory_space<vmem>>, vector<2x8x256xf32>
    tpu.vector_store %arg7[%c0_16, %c0_17, %c0_18], %39 {strides = array<i32>} : memref<2x8x256xf32, #tpu.memory_space<vmem>>, vector<2x8x256xf32>,
    return
  }
  func.func @transform_0(%arg0: i32) -> (i32, i32, i32) {
    %c0_i32 = arith.constant 0 : i32
    %c0_i32_0 = arith.constant 0 : i32
    %c0_i32_1 = arith.constant 0 : i32
    return %arg0, %c0_i32, %c0_i32_0 : i32, i32, i32
  }
  func.func @transform_1(%arg0: i32) -> (i32, i32) {
    %c0_i32 = arith.constant 0 : i32
    %c0_i32_0 = arith.constant 0 : i32
    %c0_i32_1 = arith.constant 0 : i32
    return %c0_i32, %c0_i32_0 : i32, i32
  }
  func.func @transform_2(%arg0: i32) -> (i32, i32) {
    %c0_i32 = arith.constant 0 : i32
    %c0_i32_0 = arith.constant 0 : i32
    %c0_i32_1 = arith.constant 0 : i32
    return %c0_i32, %c0_i32_0 : i32, i32
  }
  func.func @transform_3(%arg0: i32) -> (i32, i32) {
    %c0_i32 = arith.constant 0 : i32
    %c0_i32_0 = arith.constant 0 : i32
    %c0_i32_1 = arith.constant 0 : i32
    return %c0_i32, %c0_i32_0 : i32, i32
  }
  func.func @transform_4(%arg0: i32) -> (i32, i32) {
    %c0_i32 = arith.constant 0 : i32
    %c0_i32_0 = arith.constant 0 : i32
    %c0_i32_1 = arith.constant 0 : i32
    return %c0_i32, %c0_i32_0 : i32, i32
  }
  func.func @transform_5(%arg0: i32) -> i32 {
    %c0_i32 = arith.constant 0 : i32
    %c0_i32_0 = arith.constant 0 : i32
    return %c0_i32 : i32
  }
  func.func @transform_6(%arg0: i32) -> (i32, i32, i32) {
    %c0_i32 = arith.constant 0 : i32
    %c0_i32_0 = arith.constant 0 : i32
    %c0_i32_1 = arith.constant 0 : i32
    return %arg0, %c0_i32, %c0_i32_0 : i32, i32, i32
  }
}

</mosaic_0001>

<bundles_post_ra>
// kernel: tpu_custom_call.1
= control target key start
LH: loop header
LB: loop body
LE: loop exit
PB: predicated region body
PF: predicated region fallthrough
CT: control target
= control target key end

     0   :  { %vm109_vm0 = vcmask 64512   ;;  %s5025_s0 = inlined_call_operand.vmem [shape: f32[2,8,256], index: 0, kind: input, shape index: {}]   ;;  %s5026_s1 = inlined_call_operand.vmem [shape: bf16[24,8], index: 1, kind: input, shape index: {}]   ;;  %s5027_s2 = inlined_call_operand.vmem [shape: f32[24,1], index: 2, kind: input, shape index: {}]   ;;  %s5028_s3 = inlined_call_operand.vmem [shape: bf16[8,8], index: 3, kind: input, shape index: {}]   ;;  %s5029_s4 = inlined_call_operand.vmem [shape: f32[8,1], index: 4, kind: input, shape index: {}]   ;;  %s5030_s5 = inlined_call_operand.<no memory space> [shape: f32[1], index: 5, kind: input, shape index: {}]   ;;  %s5031_s6 = inlined_call_operand.hbm [shape: f32[2,8,256], index: 6, kind: output, shape index: {}]  }
   0x1   :  { %v26_v0 = vld [vmem:[%s5025_s0] sm:$0xff]  ;;  %v28_v3 = vld [vmem:[%s5025_s0 + $0x10] sm:$0xff]  ;;  %v3271_v5 = vld [vmem:[%s5026_s1 + $0x8] ss:$0 sps:$4 sm:$0xff]  }
   0x2   :  { %v30_v1 = vpack.c.bf16 %v26_v0, %v26_v0  ;;  %v3270_v2 = vld [vmem:[%s5026_s1] sm:$0xff]   ;;  %v32_v4 = vpack.c.bf16 %v28_v3, %v28_v3 }
   0x3   :  { %12 = vsyncpa [#allocation4], 0  ;;  %3262 = vmatprep.subr.msk.bf16.mxu0 %vm109_vm0, %v3270_v2  ;;  %v207_v6 = vsel %vm109_vm0, %v3270_v2, 0  ;;  %v210_v7 = vsel %vm109_vm0, %v3271_v5, 0  ;;  %v27_v8 = vld [vmem:[%s5025_s0 + $0x8] sm:$0xff]  ;;  %v29_v10 = vld [vmem:[%s5025_s0 + $0x18] sm:$0xff] }
   0x4   :  { %37 = vxpose.xlu0.c.b16.start.end [1/1] (short) %v30_v1, 128  ;;  %3129 = vmatpush3.bf16.xpose.msra.mxu0 %v207_v6  ;;  %v31_v9 = vpack.c.bf16 %v27_v8, %v27_v8  ;;  %v33_v11 = vpack.c.bf16 %v29_v10, %v29_v10  ;;  %v629_v12 = vld [vmem:[%s5027_s2] sm:$0xff]  ;;  %v3684_v13 = vmov 0   ;;  %v630_v14 = vld [vmem:[%s5027_s2 + $0x8] sm:$0xff]  ;;  %vm751_vm1 = vcmask 1043456   ;;  %s3685_s22 = smov [#allocation3]  }
   0x5   :  { %69 = vxpose.xlu1.c.b16.start.end [1/1] (short) %v32_v4, 128  ;;  %3263 = vmatprep.subr.msk.bf16.mxu0 %vm109_vm0, %v3271_v5  ;;  %s2950_s23 = sshll.u32 %s3685_s22, 4  ;;  %s2951_s23 = int_to_ptr.vmem [resolvable:$true] %s2950_s23 }
   0x6   :  { %790 = vmatprep.mubr.bf16.mxu1 %v3684_v13  ;;  %s3660_s26 = scalar_lea.vmem %s2951_s23, 512  ;;  %p3665_p1 = scmp.lt.s32.totalorder %s2951_s23, %s2951_s23 }
   0x7   :  { %p3661_p0 = scmp.ne.s32.totalorder %s2951_s23, %s3660_s26  ;;  %p3666_p2 = scmp.lt.s32.totalorder %s3660_s26, %s3660_s26 }
   0x9   :  { %p3667_p3 = por %p3666_p2, %p3665_p1 }
   0xb   :  { %p3668_p4 = pnand %p3667_p3, %p3661_p0 }
   0xc   :  { %3131 = vmatpush3.bf16.xpose.msra.mxu0 %v210_v7 }
  0x21   :  { %53 = vxpose.xlu0.c.b16.start.end [1/1] (short) %v31_v9, 128 }
  0x22   :  { %85 = vxpose.xlu1.c.b16.start.end [1/1] (short) %v33_v11, 128 }
  0x2a   :  { %3269 = vset.pattern.permute.xlu0 %v3684_v13 }
  0x46   :  { %634 = vperm.xlu0 %3269, %v629_v12  }
  0x4a   :  { %639 = vperm.xlu0 %3269, %v630_v14  }
  0x6a   :  { %v45_v15 = vpop.trf.xlu0 }
  0x6b   :  { %3132 = vmatprep.mubr.msk.bf16.mxu0 %vm109_vm0, %v45_v15  ;;  %v77_v28 = vpop.trf.xlu1 }
  0x6e   :  { %v46_v16 = vpop.trf.xlu0 }
  0x6f   :  { %3133 = vmatmul.mubr.msk.bf16.vlgmr.msra.gmra.mrb[0].mxu0 %vm109_vm0, %v46_v16  ;;  %v78_v30 = vpop.trf.xlu1 }
  0x72   :  { %v47_v17 = vpop.trf.xlu0 }
  0x73   :  { %3136 = vmatprep.mubr.msk.bf16.mxu0 %vm109_vm0, %v47_v17  ;;  %v79_v32 = vpop.trf.xlu1 }
  0x76   :  { %v48_v18 = vpop.trf.xlu0 }
  0x77   :  { %3137 = vmatmul.mubr.msk.bf16.gmra.mrb[4].mxu0 %vm109_vm0, %v48_v18  ;;  %v80_v34 = vpop.trf.xlu1 }
  0x7a   :  { %v49_v19 = vpop.trf.xlu0 }
  0x7b   :  { %3140 = vmatprep.mubr.msk.bf16.mxu0 %vm109_vm0, %v49_v19  ;;  %v81_v35 = vpop.trf.xlu1 }
  0x7e   :  { %v50_v20 = vpop.trf.xlu0 }
  0x7f   :  { %3141 = vmatmul.mubr.msk.bf16.gmra.mrb[8].mxu0 %vm109_vm0, %v50_v20  ;;  %v82_v36 = vpop.trf.xlu1 }
  0x82   :  { %v51_v21 = vpop.trf.xlu0 }
  0x83   :  { %3144 = vmatprep.mubr.msk.bf16.mxu0 %vm109_vm0, %v51_v21  ;;  %v83_v37 = vpop.trf.xlu1 }
  0x86   :  { %v52_v22 = vpop.trf.xlu0 }
  0x87   :  { %3145 = vmatmul.mubr.msk.bf16.gmra.mrb[12].mxu0 %vm109_vm0, %v52_v22  ;;  %v84_v38 = vpop.trf.xlu1 }
  0x8a   :  { %v61_v23 = vpop.trf.xlu0 }
  0x8b   :  { %3148 = vmatprep.mubr.msk.bf16.mxu0 %vm109_vm0, %v61_v23  ;;  %v93_v39 = vpop.trf.xlu1 }
  0x8e   :  { %v62_v24 = vpop.trf.xlu0 }
  0x8f   :  { %3149 = vmatmul.mubr.msk.bf16.gmra.mrb[16].mxu0 %vm109_vm0, %v62_v24  ;;  %v94_v40 = vpop.trf.xlu1 }
  0x92   :  { %v63_v25 = vpop.trf.xlu0 }
  0x93   :  { %3152 = vmatprep.mubr.msk.bf16.mxu0 %vm109_vm0, %v63_v25  ;;  %v95_v41 = vpop.trf.xlu1 }
  0x96   :  { %v64_v26 = vpop.trf.xlu0 }
  0x97   :  { %3153 = vmatmul.mubr.msk.bf16.gmra.mrb[20].mxu0 %vm109_vm0, %v64_v26  ;;  %v96_v42 = vpop.trf.xlu1 }
  0x9a   :  { %v65_v27 = vpop.trf.xlu0 }
  0x9b   :  { %3156 = vmatprep.mubr.msk.bf16.mxu0 %vm109_vm0, %v65_v27  ;;  %v97_v43 = vpop.trf.xlu1 }
  0x9e   :  { %v66_v29 = vpop.trf.xlu0 }
  0x9f   :  { %3157 = vmatmul.mubr.msk.bf16.gmra.mrb[24].mxu0 %vm109_vm0, %v66_v29  ;;  %v98_v44 = vpop.trf.xlu1 }
  0xa2   :  { %v67_v31 = vpop.trf.xlu0 }
  0xa3   :  { %3160 = vmatprep.mubr.msk.bf16.mxu0 %vm109_vm0, %v67_v31  ;;  %v99_v45 = vpop.trf.xlu1 }
  0xa6   :  { %v68_v33 = vpop.trf.xlu0 }
  0xa7   :  { %3161 = vmatmul.mubr.msk.bf16.gmra.mrb[28].mxu0 %vm109_vm0, %v68_v33  ;;  %v100_v46 = vpop.trf.xlu1 }
  0xa8   :  { %3164 = vmatprep.mubr.msk.bf16.mxu0 %vm109_vm0, %v77_v28 }
  0xaf   :  { %3165 = vmatmul.mubr.msk.bf16.gmra.mrb[32].mxu0 %vm109_vm0, %v78_v30 }
  0xb0   :  { %3168 = vmatprep.mubr.msk.bf16.mxu0 %vm109_vm0, %v79_v32 }
  0xb7   :  { %3169 = vmatmul.mubr.msk.bf16.gmra.mrb[36].mxu0 %vm109_vm0, %v80_v34 }
  0xb8   :  { %3172 = vmatprep.mubr.msk.bf16.mxu0 %vm109_vm0, %v81_v35 }
  0xbf   :  { %3173 = vmatmul.mubr.msk.bf16.gmra.mrb[40].mxu0 %vm109_vm0, %v82_v36 }
  0xc0   :  { %3176 = vmatprep.mubr.msk.bf16.mxu0 %vm109_vm0, %v83_v37 }
  0xc7   :  { %3177 = vmatmul.mubr.msk.bf16.gmra.mrb[44].mxu0 %vm109_vm0, %v84_v38 }
  0xc8   :  { %3180 = vmatprep.mubr.msk.bf16.mxu0 %vm109_vm0, %v93_v39 }
  0xcf   :  { %3181 = vmatmul.mubr.msk.bf16.gmra.mrb[48].mxu0 %vm109_vm0, %v94_v40 }
  0xd0   :  { %3184 = vmatprep.mubr.msk.bf16.mxu0 %vm109_vm0, %v95_v41 }
  0xd7   :  { %3185 = vmatmul.mubr.msk.bf16.gmra.mrb[52].mxu0 %vm109_vm0, %v96_v42 }
  0xd8   :  { %3188 = vmatprep.mubr.msk.bf16.mxu0 %vm109_vm0, %v97_v43 }
  0xdf   :  { %3189 = vmatmul.mubr.msk.bf16.gmra.mrb[56].mxu0 %vm109_vm0, %v98_v44 }
  0xe0   :  { %3192 = vmatprep.mubr.msk.bf16.mxu0 %vm109_vm0, %v99_v45 }
  0xe7   :  { %3193 = vmatmul.mubr.msk.bf16.gmra.mrb[60].mxu0 %vm109_vm0, %v100_v46 }
 0x142   :  { %v3134_v47 = vpop.f32.mrb[0].mxu0 }
 0x143   :  { %v246_v48 = vpop.f32.mrb[1].mxu0 }
 0x144   :  { %501 = vxpose.xlu1.b32.start [1/16] (narrow) %v246_v48, 24  ;;  %v3135_v49 = vpop.f32.mrb[2].mxu0  ;;  %v3789_v48 = vpop.permute.xlu0 %634 }
 0x145   :  { %v249_v50 = vpop.f32.mrb[3].mxu0 }
 0x148   :  { %502 = vxpose.xlu1.b32.cont [2/16] (narrow) %v249_v50, 24 }
 0x14a   :  { %v3138_v51 = vpop.f32.mrb[4].mxu0 }
 0x14b   :  { %v262_v52 = vpop.f32.mrb[5].mxu0 }
 0x14c   :  { %503 = vxpose.xlu1.b32.cont [3/16] (narrow) %v3134_v47, 24  ;;  %v3139_v53 = vpop.f32.mrb[6].mxu0 }
 0x14d   :  { %v265_v54 = vpop.f32.mrb[7].mxu0 }
 0x150   :  { %504 = vxpose.xlu1.b32.cont [4/16] (narrow) %v3135_v49, 24 }
 0x152   :  { %v3142_v55 = vpop.f32.mrb[8].mxu0 }
 0x153   :  { %v278_v56 = vpop.f32.mrb[9].mxu0 }
 0x154   :  { %505 = vxpose.xlu1.b32.cont [5/16] (narrow) %v262_v52, 24  ;;  %v3143_v57 = vpop.f32.mrb[10].mxu0  ;;  %v3792_v52 = vpop.permute.xlu0 %639 }
 0x155   :  { %v281_v58 = vpop.f32.mrb[11].mxu0 }
 0x158   :  { %506 = vxpose.xlu1.b32.cont [6/16] (narrow) %v265_v54, 24 }
 0x15a   :  { %v3146_v59 = vpop.f32.mrb[12].mxu0 }
 0x15b   :  { %v294_v60 = vpop.f32.mrb[13].mxu0 }
 0x15c   :  { %507 = vxpose.xlu1.b32.cont [7/16] (narrow) %v3138_v51, 24  ;;  %v3147_v61 = vpop.f32.mrb[14].mxu0 }
 0x15d   :  { %v297_v62 = vpop.f32.mrb[15].mxu0 }
 0x160   :  { %508 = vxpose.xlu1.b32.cont [8/16] (narrow) %v3139_v53, 24 }
 0x162   :  { %v3150_v63 = vpop.f32.mrb[16].mxu0 }
 0x163   :  { %v310_v0 = vpop.f32.mrb[17].mxu0 }
 0x164   :  { %509 = vxpose.xlu1.b32.cont [9/16] (narrow) %v278_v56, 24  ;;  %533 = vxpose.xlu0.b32.start [1/16] (narrow) %v310_v0, 24  ;;  %v3151_v1 = vpop.f32.mrb[18].mxu0 }
 0x165   :  { %v313_v2 = vpop.f32.mrb[19].mxu0 }
 0x168   :  { %510 = vxpose.xlu1.b32.cont [10/16] (narrow) %v281_v58, 24  ;;  %534 = vxpose.xlu0.b32.cont [2/16] (narrow) %v313_v2, 24 }
 0x16a   :  { %v3154_v3 = vpop.f32.mrb[20].mxu0 }
 0x16b   :  { %v326_v4 = vpop.f32.mrb[21].mxu0 }
 0x16c   :  { %511 = vxpose.xlu1.b32.cont [11/16] (narrow) %v3142_v55, 24  ;;  %535 = vxpose.xlu0.b32.cont [3/16] (narrow) %v3150_v63, 24  ;;  %v3155_v5 = vpop.f32.mrb[22].mxu0 }
 0x16d   :  { %v329_v6 = vpop.f32.mrb[23].mxu0 }
 0x170   :  { %512 = vxpose.xlu1.b32.cont [12/16] (narrow) %v3143_v57, 24  ;;  %536 = vxpose.xlu0.b32.cont [4/16] (narrow) %v3151_v1, 24 }
 0x172   :  { %v3158_v7 = vpop.f32.mrb[24].mxu0 }
 0x173   :  { %v342_v8 = vpop.f32.mrb[25].mxu0 }
 0x174   :  { %513 = vxpose.xlu1.b32.cont [13/16] (narrow) %v294_v60, 24  ;;  %537 = vxpose.xlu0.b32.cont [5/16] (narrow) %v326_v4, 24  ;;  %v3159_v9 = vpop.f32.mrb[26].mxu0 }
 0x175   :  { %v345_v10 = vpop.f32.mrb[27].mxu0 }
 0x178   :  { %514 = vxpose.xlu1.b32.cont [14/16] (narrow) %v297_v62, 24  ;;  %538 = vxpose.xlu0.b32.cont [6/16] (narrow) %v329_v6, 24 }
 0x17a   :  { %v3162_v11 = vpop.f32.mrb[28].mxu0 }
 0x17b   :  { %v358_v12 = vpop.f32.mrb[29].mxu0 }
 0x17c   :  { %515 = vxpose.xlu1.b32.cont [15/16] (narrow) %v3146_v59, 24  ;;  %539 = vxpose.xlu0.b32.cont [7/16] (narrow) %v3154_v3, 24  ;;  %v3163_v14 = vpop.f32.mrb[30].mxu0 }
 0x17d   :  { %v361_v15 = vpop.f32.mrb[31].mxu0 }
 0x180   :  { %516 = vxpose.xlu1.b32.end [16/16] (narrow) %v3147_v61, 24  ;;  %540 = vxpose.xlu0.b32.cont [8/16] (narrow) %v3155_v5, 24 }
 0x182   :  { %v3166_v16 = vpop.f32.mrb[32].mxu0 }
 0x183   :  { %v374_v17 = vpop.f32.mrb[33].mxu0 }
 0x184   :  { %541 = vxpose.xlu0.b32.cont [9/16] (narrow) %v342_v8, 24  ;;  %v3167_v18 = vpop.f32.mrb[34].mxu0 }
 0x185   :  { %v377_v19 = vpop.f32.mrb[35].mxu0 }
 0x188   :  { %542 = vxpose.xlu0.b32.cont [10/16] (narrow) %v345_v10, 24 }
 0x18a   :  { %v3170_v20 = vpop.f32.mrb[36].mxu0 }
 0x18b   :  { %v390_v21 = vpop.f32.mrb[37].mxu0 }
 0x18c   :  { %543 = vxpose.xlu0.b32.cont [11/16] (narrow) %v3158_v7, 24  ;;  %v3171_v22 = vpop.f32.mrb[38].mxu0 }
 0x18d   :  { %v393_v23 = vpop.f32.mrb[39].mxu0 }
 0x190   :  { %544 = vxpose.xlu0.b32.cont [12/16] (narrow) %v3159_v9, 24 }
 0x192   :  { %v3174_v24 = vpop.f32.mrb[40].mxu0 }
 0x193   :  { %v406_v25 = vpop.f32.mrb[41].mxu0 }
 0x194   :  { %545 = vxpose.xlu0.b32.cont [13/16] (narrow) %v358_v12, 24  ;;  %v3175_v26 = vpop.f32.mrb[42].mxu0 }
 0x195   :  { %v409_v27 = vpop.f32.mrb[43].mxu0 }
 0x198   :  { %546 = vxpose.xlu0.b32.cont [14/16] (narrow) %v361_v15, 24 }
 0x19a   :  { %v3178_v28 = vpop.f32.mrb[44].mxu0 }
 0x19b   :  { %v422_v29 = vpop.f32.mrb[45].mxu0 }
 0x19c   :  { %547 = vxpose.xlu0.b32.cont [15/16] (narrow) %v3162_v11, 24  ;;  %v3179_v30 = vpop.f32.mrb[46].mxu0 }
 0x19d   :  { %v425_v31 = vpop.f32.mrb[47].mxu0 }
 0x1a0   :  { %548 = vxpose.xlu0.b32.end [16/16] (narrow) %v3163_v14, 24 }
 0x1a2   :  { %v3182_v32 = vpop.f32.mrb[48].mxu0 }
 0x1a3   :  { %v438_v33 = vpop.f32.mrb[49].mxu0 }
 0x1a4   :  { %565 = vxpose.xlu0.b32.start [1/16] (narrow) %v374_v17, 24  ;;  %v3183_v34 = vpop.f32.mrb[50].mxu0 }
 0x1a5   :  { %v441_v35 = vpop.f32.mrb[51].mxu0 }
 0x1a8   :  { %566 = vxpose.xlu0.b32.cont [2/16] (narrow) %v377_v19, 24 }
 0x1aa   :  { %v3186_v36 = vpop.f32.mrb[52].mxu0 }
 0x1ab   :  { %v454_v37 = vpop.f32.mrb[53].mxu0 }
 0x1ac   :  { %567 = vxpose.xlu0.b32.cont [3/16] (narrow) %v3166_v16, 24  ;;  %v3187_v38 = vpop.f32.mrb[54].mxu0 }
 0x1ad   :  { %v457_v39 = vpop.f32.mrb[55].mxu0 }
 0x1b0   :  { %568 = vxpose.xlu0.b32.cont [4/16] (narrow) %v3167_v18, 24 }
 0x1b2   :  { %v3190_v40 = vpop.f32.mrb[56].mxu0 }
 0x1b3   :  { %v470_v41 = vpop.f32.mrb[57].mxu0 }
 0x1b4   :  { %569 = vxpose.xlu0.b32.cont [5/16] (narrow) %v390_v21, 24  ;;  %v3191_v42 = vpop.f32.mrb[58].mxu0 }
 0x1b5   :  { %v473_v43 = vpop.f32.mrb[59].mxu0 }
 0x1b8   :  { %570 = vxpose.xlu0.b32.cont [6/16] (narrow) %v393_v23, 24 }
 0x1ba   :  { %v3785_v44 = vpop.f32.mrb[60].mxu0 }
 0x1bb   :  { %v486_v45 = vpop.f32.mrb[61].mxu0 }
 0x1bc   :  { %571 = vxpose.xlu0.b32.cont [7/16] (narrow) %v3170_v20, 24  ;;  %v3787_v46 = vpop.f32.mrb[62].mxu0 }
 0x1bd   :  { %v489_v47 = vpop.f32.mrb[63].mxu0 }
 0x1c0   :  { %572 = vxpose.xlu0.b32.cont [8/16] (narrow) %v3171_v22, 24 }
 0x1c4   :  { %v517_v49 = vpop.trf.xlu1  ;;  %573 = vxpose.xlu0.b32.cont [9/16] (narrow) %v406_v25, 24 }
 0x1c5   :  { %v647_v50 = vadd.f32 %v3789_v48, %v517_v49 }
 0x1c7   :  { %v659_v51 = vpack.c.bf16 %v647_v50, %v647_v50 }
 0x1c8   :  { %574 = vxpose.xlu0.b32.cont [10/16] (narrow) %v409_v27, 24  ;;  %v518_v53 = vpop.trf.xlu1 }
 0x1c9   :  { %671 = vxpose.xlu1.c.b16.start.end [1/1] (short) %v659_v51, 128  ;;  %v649_v55 = vadd.f32 %v3792_v52, %v518_v53 }
 0x1cb   :  { %v663_v59 = vpack.c.bf16 %v649_v55, %v649_v55 }
 0x1cc   :  { %575 = vxpose.xlu0.b32.cont [11/16] (narrow) %v3174_v24, 24  ;;  %v3802_v3 = vpop.trf.xlu1 }
 0x1cd   :  { %v753_v62 = vsel %vm751_vm1, %v663_v59, 0  ;;  %5158 = vst [vmem:[#allocation7_spill] sm:$0xff] %v3802_v3 }
 0x1d0   :  { %576 = vxpose.xlu0.b32.cont [12/16] (narrow) %v3175_v26, 24 }
 0x1d4   :  { %577 = vxpose.xlu0.b32.cont [13/16] (narrow) %v422_v29, 24 }
 0x1d8   :  { %578 = vxpose.xlu0.b32.cont [14/16] (narrow) %v425_v31, 24 }
 0x1dc   :  { %579 = vxpose.xlu0.b32.cont [15/16] (narrow) %v3178_v28, 24 }
 0x1e0   :  { %580 = vxpose.xlu0.b32.end [16/16] (narrow) %v3179_v30, 24 }
 0x1e4   :  { %v549_v54 = vpop.trf.xlu0 }
 0x1e5   :  { %v648_v56 = vadd.f32 %v3789_v48, %v549_v54 }
 0x1e7   :  { %v660_v57 = vpack.c.bf16 %v648_v56, %v648_v56 }
 0x1e8   :  { %v550_v58 = vpop.trf.xlu0 }
 0x1e9   :  { %v650_v60 = vadd.f32 %v3792_v52, %v550_v58  ;;  %687 = vxpose.xlu1.c.b16.start.end [1/1] (short) %v660_v57, 128 }
 0x1eb   :  { %v664_v61 = vpack.c.bf16 %v650_v60, %v650_v60 }
 0x1ec   :  { %v3799_v63 = vpop.trf.xlu0 }
 0x1ed   :  { %2995 = vmatprep.subr.msk.bf16.mxu1 %vm751_vm1, %v664_v61  ;;  %5157 = vst [vmem:[#allocation6_spill] sm:$0xff] %v3799_v63 }
 0x1ee   :  { %759 = vmatpush1.bf16.msra.mxu1 %v753_v62 }
 0x20f   :  { %597 = vxpose.xlu1.b32.start [1/16] (narrow) %v438_v33, 24 }
 0x213   :  { %598 = vxpose.xlu1.b32.cont [2/16] (narrow) %v441_v35, 24 }
 0x217   :  { %599 = vxpose.xlu1.b32.cont [3/16] (narrow) %v3182_v32, 24 }
 0x21b   :  { %600 = vxpose.xlu1.b32.cont [4/16] (narrow) %v3183_v34, 24 }
 0x21f   :  { %601 = vxpose.xlu1.b32.cont [5/16] (narrow) %v454_v37, 24 }
 0x223   :  { %602 = vxpose.xlu1.b32.cont [6/16] (narrow) %v457_v39, 24 }
 0x224   :  { %v581_v0 = vpop.trf.xlu0 }
 0x225   :  { %v653_v1 = vadd.f32 %v3789_v48, %v581_v0 }
 0x227   :  { %v661_v2 = vpack.c.bf16 %v653_v1, %v653_v1  ;;  %603 = vxpose.xlu1.b32.cont [7/16] (narrow) %v3186_v36, 24 }
 0x228   :  { %v582_v21 = vpop.trf.xlu0 }
 0x229   :  { %951 = vxpose.xlu0.c.b16.start.end [1/1] (short) %v661_v2, 128  ;;  %v655_v23 = vadd.f32 %v3792_v52, %v582_v21 }
 0x22b   :  { %604 = vxpose.xlu1.b32.cont [8/16] (narrow) %v3187_v38, 24  ;;  %v665_v27 = vpack.c.bf16 %v655_v23, %v655_v23 }
 0x22c   :  { %v3841_v31 = vpop.trf.xlu0 }
 0x22d   :  { %v1032_v30 = vsel %vm751_vm1, %v665_v27, 0  ;;  %5159 = vst [vmem:[#allocation8_spill] sm:$0xff] %v3841_v31 }
 0x22f   :  { %v679_v4 = vpop.trf.xlu1  ;;  %605 = vxpose.xlu1.b32.cont [9/16] (narrow) %v470_v41, 24 }
 0x230   :  { %2996 = vmatmul.mubr.msk.bf16.vlgmr.msra.gmra.mrb[0].mxu1 %vm109_vm0, %v679_v4 }
 0x231   :  { %800 = vmatprep.mubr.bf16.mxu1 %v3684_v13 }
 0x233   :  { %606 = vxpose.xlu1.b32.cont [10/16] (narrow) %v473_v43, 24  ;;  %v680_v5 = vpop.trf.xlu1 }
 0x237   :  { %607 = vxpose.xlu1.b32.cont [11/16] (narrow) %v3190_v40, 24  ;;  %v681_v6 = vpop.trf.xlu1 }
 0x238   :  { %2997 = vmatmul.mubr.msk.bf16.gmra.mrb[4].mxu1 %vm109_vm0, %v680_v5 }
 0x239   :  { %810 = vmatprep.mubr.bf16.mxu1 %v3684_v13 }
 0x23b   :  { %608 = vxpose.xlu1.b32.cont [12/16] (narrow) %v3191_v42, 24  ;;  %v682_v7 = vpop.trf.xlu1 }
 0x23f   :  { %609 = vxpose.xlu1.b32.cont [13/16] (narrow) %v486_v45, 24  ;;  %v683_v8 = vpop.trf.xlu1 }
 0x240   :  { %2998 = vmatmul.mubr.msk.bf16.gmra.mrb[8].mxu1 %vm109_vm0, %v681_v6 }
 0x241   :  { %820 = vmatprep.mubr.bf16.mxu1 %v3684_v13 }
 0x243   :  { %610 = vxpose.xlu1.b32.cont [14/16] (narrow) %v489_v47, 24  ;;  %v684_v9 = vpop.trf.xlu1 }
 0x247   :  { %611 = vxpose.xlu1.b32.cont [15/16] (narrow) %v3785_v44, 24  ;;  %v685_v10 = vpop.trf.xlu1 }
 0x248   :  { %2999 = vmatmul.mubr.msk.bf16.gmra.mrb[12].mxu1 %vm109_vm0, %v682_v7 }
 0x249   :  { %830 = vmatprep.mubr.bf16.mxu1 %v3684_v13 }
 0x24b   :  { %612 = vxpose.xlu1.b32.end [16/16] (narrow) %v3787_v46, 24  ;;  %v686_v11 = vpop.trf.xlu1 }
 0x24f   :  { %v695_v12 = vpop.trf.xlu1 }
 0x250   :  { %3000 = vmatmul.mubr.msk.bf16.gmra.mrb[16].mxu1 %vm109_vm0, %v683_v8 }
 0x251   :  { %840 = vmatprep.mubr.bf16.mxu1 %v3684_v13 }
 0x253   :  { %v696_v14 = vpop.trf.xlu1 }
 0x257   :  { %v697_v15 = vpop.trf.xlu1 }
 0x258   :  { %3001 = vmatmul.mubr.msk.bf16.gmra.mrb[20].mxu1 %vm109_vm0, %v684_v9 }
 0x259   :  { %850 = vmatprep.mubr.bf16.mxu1 %v3684_v13 }
 0x25b   :  { %v698_v16 = vpop.trf.xlu1 }
 0x25f   :  { %v699_v17 = vpop.trf.xlu1 }
 0x260   :  { %3002 = vmatmul.mubr.msk.bf16.gmra.mrb[24].mxu1 %vm109_vm0, %v685_v10 }
 0x261   :  { %860 = vmatprep.mubr.bf16.mxu1 %v3684_v13 }
 0x263   :  { %v700_v18 = vpop.trf.xlu1 }
 0x267   :  { %v701_v19 = vpop.trf.xlu1 }
 0x268   :  { %3003 = vmatmul.mubr.msk.bf16.gmra.mrb[28].mxu1 %vm109_vm0, %v686_v11 }
 0x269   :  { %870 = vmatprep.mubr.bf16.mxu1 %v3684_v13 }
 0x26b   :  { %v702_v20 = vpop.trf.xlu1 }
 0x270   :  { %3004 = vmatmul.mubr.msk.bf16.gmra.mrb[32].mxu1 %vm109_vm0, %v695_v12 }
 0x271   :  { %880 = vmatprep.mubr.bf16.mxu1 %v3684_v13 }
 0x278   :  { %3005 = vmatmul.mubr.msk.bf16.gmra.mrb[36].mxu1 %vm109_vm0, %v696_v14 }
 0x279   :  { %890 = vmatprep.mubr.bf16.mxu1 %v3684_v13 }
 0x280   :  { %3006 = vmatmul.mubr.msk.bf16.gmra.mrb[40].mxu1 %vm109_vm0, %v697_v15 }
 0x281   :  { %900 = vmatprep.mubr.bf16.mxu1 %v3684_v13 }
 0x288   :  { %3007 = vmatmul.mubr.msk.bf16.gmra.mrb[44].mxu1 %vm109_vm0, %v698_v16 }
 0x289   :  { %910 = vmatprep.mubr.bf16.mxu1 %v3684_v13 }
 0x28f   :  { %v613_v22 = vpop.trf.xlu1  ;;  %v959_v32 = vpop.trf.xlu0 }
 0x290   :  { %v654_v24 = vadd.f32 %v3789_v48, %v613_v22  ;;  %3008 = vmatmul.mubr.msk.bf16.gmra.mrb[48].mxu1 %vm109_vm0, %v699_v17 }
 0x291   :  { %920 = vmatprep.mubr.bf16.mxu1 %v3684_v13 }
 0x292   :  { %v662_v25 = vpack.c.bf16 %v654_v24, %v654_v24 }
 0x293   :  { %v614_v26 = vpop.trf.xlu1  ;;  %v960_v33 = vpop.trf.xlu0 }
 0x294   :  { %v656_v28 = vadd.f32 %v3792_v52, %v614_v26  ;;  %967 = vxpose.xlu0.c.b16.start.end [1/1] (short) %v662_v25, 128 }
 0x296   :  { %v666_v29 = vpack.c.bf16 %v656_v28, %v656_v28 }
 0x297   :  { %v961_v34 = vpop.trf.xlu0 }
 0x298   :  { %3009 = vmatmul.mubr.msk.bf16.gmra.mrb[52].mxu1 %vm109_vm0, %v700_v18  ;;  %3012 = vmatprep.subr.msk.bf16.mxu1 %vm751_vm1, %v666_v29 }
 0x299   :  { %1038 = vmatpush1.bf16.msra.mxu1 %v1032_v30  ;;  %930 = vmatprep.mubr.bf16.mxu1 %v3684_v13 }
 0x29b   :  { %v962_v35 = vpop.trf.xlu0 }
 0x29f   :  { %v963_v36 = vpop.trf.xlu0 }
 0x2a0   :  { %3010 = vmatmul.mubr.msk.bf16.gmra.mrb[56].mxu1 %vm109_vm0, %v701_v19 }
 0x2a1   :  { %940 = vmatprep.mubr.bf16.mxu1 %v3684_v13 }
 0x2a3   :  { %v964_v37 = vpop.trf.xlu0 }
 0x2a7   :  { %v965_v38 = vpop.trf.xlu0 }
 0x2a8   :  { %3011 = vmatmul.mubr.msk.bf16.gmra.mrb[60].mxu1 %vm109_vm0, %v702_v20 }
 0x2a9   :  { %1069 = vmatprep.mubr.bf16.mxu1 %v3684_v13 }
 0x2ab   :  { %v966_v39 = vpop.trf.xlu0 }
 0x2b0   :  { %3013 = vmatmul.mubr.msk.bf16.vlgmr.msra.gmra.mrb[64].mxu1 %vm109_vm0, %v959_v32 }
 0x2b1   :  { %1079 = vmatprep.mubr.bf16.mxu1 %v3684_v13 }
 0x2b8   :  { %3014 = vmatmul.mubr.msk.bf16.gmra.mrb[68].mxu1 %vm109_vm0, %v960_v33 }
 0x2b9   :  { %1089 = vmatprep.mubr.bf16.mxu1 %v3684_v13 }
 0x2c0   :  { %3015 = vmatmul.mubr.msk.bf16.gmra.mrb[72].mxu1 %vm109_vm0, %v961_v34 }
 0x2c1   :  { %1099 = vmatprep.mubr.bf16.mxu1 %v3684_v13 }
 0x2c8   :  { %3016 = vmatmul.mubr.msk.bf16.gmra.mrb[76].mxu1 %vm109_vm0, %v962_v35 }
 0x2c9   :  { %1109 = vmatprep.mubr.bf16.mxu1 %v3684_v13 }
 0x2d0   :  { %3017 = vmatmul.mubr.msk.bf16.gmra.mrb[80].mxu1 %vm109_vm0, %v963_v36 }
 0x2d1   :  { %1119 = vmatprep.mubr.bf16.mxu1 %v3684_v13 }
 0x2d8   :  { %3018 = vmatmul.mubr.msk.bf16.gmra.mrb[84].mxu1 %vm109_vm0, %v964_v37 }
 0x2d9   :  { %1129 = vmatprep.mubr.bf16.mxu1 %v3684_v13 }
 0x2e0   :  { %3019 = vmatmul.mubr.msk.bf16.gmra.mrb[88].mxu1 %vm109_vm0, %v965_v38 }
 0x2e1   :  { %1139 = vmatprep.mubr.bf16.mxu1 %v3684_v13 }
 0x2e8   :  { %3020 = vmatmul.mubr.msk.bf16.gmra.mrb[92].mxu1 %vm109_vm0, %v966_v39 }
 0x2e9   :  { %1149 = vmatprep.mubr.bf16.mxu1 %v3684_v13 }
 0x2fa   :  { %v975_v40 = vpop.trf.xlu0 }
 0x2fb   :  { %3021 = vmatmul.mubr.msk.bf16.gmra.mrb[96].mxu1 %vm109_vm0, %v975_v40 }
 0x2fc   :  { %1159 = vmatprep.mubr.bf16.mxu1 %v3684_v13 }
 0x2fe   :  { %v976_v41 = vpop.trf.xlu0 }
 0x302   :  { %v977_v48 = vpop.trf.xlu0 }
 0x303   :  { %v3863_v42 = vpop.f32.mrb[0].mxu1  ;;  %3022 = vmatmul.mubr.msk.bf16.gmra.mrb[100].mxu1 %vm109_vm0, %v976_v41 }
 0x304   :  { %v3866_v43 = vpop.f32.mrb[1].mxu1  ;;  %1169 = vmatprep.mubr.bf16.mxu1 %v3684_v13 }
 0x305   :  { %v3869_v44 = vpop.f32.mrb[2].mxu1  ;;  %v1230_v45 = vmax.f32 %v3863_v42, %v3866_v43 }
 0x306   :  { %v3873_v46 = vpop.f32.mrb[3].mxu1  ;;  %v978_v55 = vpop.trf.xlu0 }
 0x307   :  { %1231 = vmax.xlane.f32.xlu1 %v1230_v45  ;;  %v1233_v47 = vmax.f32 %v3869_v44, %v3873_v46 }
 0x309   :  { %1234 = vmax.xlane.f32.xlu0 %v1233_v47 }
 0x30a   :  { %v979_v62 = vpop.trf.xlu0 }
 0x30b   :  { %v3877_v49 = vpop.f32.mrb[4].mxu1  ;;  %3023 = vmatmul.mubr.msk.bf16.gmra.mrb[104].mxu1 %vm109_vm0, %v977_v48 }
 0x30c   :  { %v3880_v50 = vpop.f32.mrb[5].mxu1  ;;  %1179 = vmatprep.mubr.bf16.mxu1 %v3684_v13 }
 0x30d   :  { %v1236_v51 = vmax.f32 %v3877_v49, %v3880_v50  ;;  %v3885_v52 = vpop.f32.mrb[6].mxu1 }
 0x30e   :  { %v3887_v53 = vpop.f32.mrb[7].mxu1  ;;  %v980_v7 = vpop.trf.xlu0 }
 0x30f   :  { %1237 = vmax.xlane.f32.xlu1 %v1236_v51  ;;  %v1239_v54 = vmax.f32 %v3885_v52, %v3887_v53 }
 0x312   :  { %v981_v15 = vpop.trf.xlu0 }
 0x313   :  { %1240 = vmax.xlane.f32.xlu1 %v1239_v54  ;;  %v3891_v56 = vpop.f32.mrb[8].mxu1  ;;  %3024 = vmatmul.mubr.msk.bf16.gmra.mrb[108].mxu1 %vm109_vm0, %v978_v55 }
 0x314   :  { %v3894_v57 = vpop.f32.mrb[9].mxu1  ;;  %1189 = vmatprep.mubr.bf16.mxu1 %v3684_v13 }
 0x315   :  { %v3897_v58 = vpop.f32.mrb[10].mxu1  ;;  %v1242_v59 = vmax.f32 %v3891_v56, %v3894_v57 }
 0x316   :  { %v3901_v60 = vpop.f32.mrb[11].mxu1  ;;  %v982_v22 = vpop.trf.xlu0 }
 0x317   :  { %1243 = vmax.xlane.f32.xlu0 %v1242_v59  ;;  %v1245_v61 = vmax.f32 %v3897_v58, %v3901_v60 }
 0x319   :  { %1246 = vmax.xlane.f32.xlu1 %v1245_v61 }
 0x31b   :  { %v3905_v0 = vpop.f32.mrb[12].mxu1  ;;  %3025 = vmatmul.mubr.msk.bf16.gmra.mrb[112].mxu1 %vm109_vm0, %v979_v62 }
 0x31c   :  { %v3908_v1 = vpop.f32.mrb[13].mxu1  ;;  %1199 = vmatprep.mubr.bf16.mxu1 %v3684_v13 }
 0x31d   :  { %v3911_v2 = vpop.f32.mrb[14].mxu1  ;;  %v1248_v4 = vmax.f32 %v3905_v0, %v3908_v1 }
 0x31e   :  { %v3915_v5 = vpop.f32.mrb[15].mxu1 }
 0x31f   :  { %1249 = vmax.xlane.f32.xlu0 %v1248_v4  ;;  %v1251_v6 = vmax.f32 %v3911_v2, %v3915_v5 }
 0x321   :  { %1252 = vmax.xlane.f32.xlu1 %v1251_v6 }
 0x323   :  { %v3919_v8 = vpop.f32.mrb[16].mxu1  ;;  %3026 = vmatmul.mubr.msk.bf16.gmra.mrb[116].mxu1 %vm109_vm0, %v980_v7 }
 0x324   :  { %v3922_v9 = vpop.f32.mrb[17].mxu1  ;;  %1209 = vmatprep.mubr.bf16.mxu1 %v3684_v13 }
 0x325   :  { %v3925_v10 = vpop.f32.mrb[18].mxu1  ;;  %v1254_v11 = vmax.f32 %v3919_v8, %v3922_v9 }
 0x326   :  { %v3929_v12 = vpop.f32.mrb[19].mxu1 }
 0x327   :  { %1255 = vmax.xlane.f32.xlu0 %v1254_v11  ;;  %v1257_v14 = vmax.f32 %v3925_v10, %v3929_v12 }
 0x329   :  { %1258 = vmax.xlane.f32.xlu1 %v1257_v14 }
 0x32b   :  { %v3933_v16 = vpop.f32.mrb[20].mxu1  ;;  %3027 = vmatmul.mubr.msk.bf16.gmra.mrb[120].mxu1 %vm109_vm0, %v981_v15 }
 0x32c   :  { %v3936_v17 = vpop.f32.mrb[21].mxu1  ;;  %1219 = vmatprep.mubr.bf16.mxu1 %v3684_v13 }
 0x32d   :  { %v3939_v18 = vpop.f32.mrb[22].mxu1  ;;  %v1260_v19 = vmax.f32 %v3933_v16, %v3936_v17 }
 0x32e   :  { %v3943_v20 = vpop.f32.mrb[23].mxu1 }
 0x32f   :  { %1261 = vmax.xlane.f32.xlu0 %v1260_v19  ;;  %v1263_v21 = vmax.f32 %v3939_v18, %v3943_v20 }
 0x331   :  { %1264 = vmax.xlane.f32.xlu1 %v1263_v21 }
 0x333   :  { %v3947_v23 = vpop.f32.mrb[24].mxu1  ;;  %3028 = vmatmul.mubr.msk.bf16.gmra.mrb[124].mxu1 %vm109_vm0, %v982_v22 }
 0x334   :  { %v3950_v24 = vpop.f32.mrb[25].mxu1 }
 0x335   :  { %v3952_v13 = vpop.f32.mrb[26].mxu1  ;;  %v1266_v25 = vmax.f32 %v3947_v23, %v3950_v24 }
 0x336   :  { %v3956_v26 = vpop.f32.mrb[27].mxu1 }
 0x337   :  { %1267 = vmax.xlane.f32.xlu0 %v1266_v25  ;;  %v1269_v27 = vmax.f32 %v3952_v13, %v3956_v26 }
 0x339   :  { %1270 = vmax.xlane.f32.xlu1 %v1269_v27 }
 0x33b   :  { %v3960_v28 = vpop.f32.mrb[28].mxu1 }
 0x33c   :  { %v3962_v29 = vpop.f32.mrb[29].mxu1 }
 0x33d   :  { %v3964_v30 = vpop.f32.mrb[30].mxu1  ;;  %v1272_v32 = vmax.f32 %v3960_v28, %v3962_v29 }
 0x33e   :  { %v3968_v33 = vpop.f32.mrb[31].mxu1 }
 0x33f   :  { %1273 = vmax.xlane.f32.xlu0 %v1272_v32  ;;  %v1275_v34 = vmax.f32 %v3964_v30, %v3968_v33 }
 0x341   :  { %1276 = vmax.xlane.f32.xlu1 %v1275_v34 }
 0x343   :  { %v3972_v35 = vpop.f32.mrb[32].mxu1 }
 0x344   :  { %v3974_v36 = vpop.f32.mrb[33].mxu1 }
 0x345   :  { %v3976_v37 = vpop.f32.mrb[34].mxu1  ;;  %v1278_v38 = vmax.f32 %v3972_v35, %v3974_v36 }
 0x346   :  { %v3980_v39 = vpop.f32.mrb[35].mxu1 }
 0x347   :  { %1279 = vmax.xlane.f32.xlu0 %v1278_v38  ;;  %v1281_v40 = vmax.f32 %v3976_v37, %v3980_v39 }
 0x349   :  { %1282 = vmax.xlane.f32.xlu1 %v1281_v40 }
 0x34b   :  { %v3984_v41 = vpop.f32.mrb[36].mxu1 }
 0x34c   :  { %v3986_v45 = vpop.f32.mrb[37].mxu1 }
 0x34d   :  { %v3988_v47 = vpop.f32.mrb[38].mxu1  ;;  %v1284_v48 = vmax.f32 %v3984_v41, %v3986_v45 }
 0x34e   :  { %v3992_v51 = vpop.f32.mrb[39].mxu1 }
 0x34f   :  { %1285 = vmax.xlane.f32.xlu0 %v1284_v48  ;;  %v1287_v54 = vmax.f32 %v3988_v47, %v3992_v51 }
 0x351   :  { %1288 = vmax.xlane.f32.xlu1 %v1287_v54 }
 0x353   :  { %v3996_v55 = vpop.f32.mrb[40].mxu1 }
 0x354   :  { %v3998_v59 = vpop.f32.mrb[41].mxu1 }
 0x355   :  { %v1290_v61 = vmax.f32 %v3996_v55, %v3998_v59  ;;  %v4002_v62 = vpop.f32.mrb[42].mxu1 }
 0x356   :  { %v4004_v4 = vpop.f32.mrb[43].mxu1 }
 0x357   :  { %v1293_v6 = vmax.f32 %v4002_v62, %v4004_v4  ;;  %1291 = vmax.xlane.f32.xlu0 %v1290_v61 }
 0x359   :  { %1294 = vmax.xlane.f32.xlu1 %v1293_v6 }
 0x35b   :  { %v4008_v7 = vpop.f32.mrb[44].mxu1 }
 0x35c   :  { %v4010_v11 = vpop.f32.mrb[45].mxu1 }
 0x35d   :  { %v1296_v14 = vmax.f32 %v4008_v7, %v4010_v11  ;;  %v4014_v15 = vpop.f32.mrb[46].mxu1 }
 0x35e   :  { %v4016_v19 = vpop.f32.mrb[47].mxu1 }
 0x35f   :  { %5160 = vst [vmem:[#allocation9_spill] sm:$0xff] %v4016_v19  ;;  %v1299_v21 = vmax.f32 %v4014_v15, %v4016_v19  ;;  %1297 = vmax.xlane.f32.xlu0 %v1296_v14 }
 0x361   :  { %1300 = vmax.xlane.f32.xlu1 %v1299_v21 }
 0x363   :  { %v4020_v22 = vpop.f32.mrb[48].mxu1 }
 0x364   :  { %5161 = vst [vmem:[#allocation10_spill] sm:$0xff] %v4020_v22  ;;  %v4022_v25 = vpop.f32.mrb[49].mxu1 }
 0x365   :  { %5162 = vst [vmem:[#allocation11_spill] sm:$0xff] %v4022_v25  ;;  %v1302_v27 = vmax.f32 %v4020_v22, %v4022_v25  ;;  %v4026_v32 = vpop.f32.mrb[50].mxu1 }
 0x366   :  { %5163 = vst [vmem:[#allocation12_spill] sm:$0xff] %v4026_v32  ;;  %v4028_v34 = vpop.f32.mrb[51].mxu1 }
 0x367   :  { %5164 = vst [vmem:[#allocation13_spill] sm:$0xff] %v4028_v34  ;;  %v1305_v38 = vmax.f32 %v4026_v32, %v4028_v34  ;;  %1303 = vmax.xlane.f32.xlu0 %v1302_v27 }
 0x369   :  { %1306 = vmax.xlane.f32.xlu1 %v1305_v38 }
 0x36b   :  { %v4032_v40 = vpop.f32.mrb[52].mxu1 }
 0x36c   :  { %5165 = vst [vmem:[#allocation14_spill] sm:$0xff] %v4032_v40  ;;  %v4034_v48 = vpop.f32.mrb[53].mxu1 }
 0x36d   :  { %5166 = vst [vmem:[#allocation15_spill] sm:$0xff] %v4034_v48  ;;  %v1308_v54 = vmax.f32 %v4032_v40, %v4034_v48  ;;  %v4038_v61 = vpop.f32.mrb[54].mxu1  ;;  %v4090_v40 = vpop.trf.xlu1 }
 0x36e   :  { %5167 = vst [vmem:[#allocation16_spill] sm:$0xff] %v4038_v61  ;;  %v4040_v6 = vpop.f32.mrb[55].mxu1  ;;  %5181 = vst [vmem:[#allocation30_spill] sm:$0xff] %v4090_v40 }
 0x36f   :  { %5168 = vst [vmem:[#allocation17_spill] sm:$0xff] %v4040_v6  ;;  %v1311_v14 = vmax.f32 %v4038_v61, %v4040_v6  ;;  %1309 = vmax.xlane.f32.xlu0 %v1308_v54 }
 0x371   :  { %1312 = vmax.xlane.f32.xlu1 %v1311_v14 }
 0x373   :  { %v4044_v21 = vpop.f32.mrb[56].mxu1 }
 0x374   :  { %5169 = vst [vmem:[#allocation18_spill] sm:$0xff] %v4044_v21  ;;  %v4046_v27 = vpop.f32.mrb[57].mxu1 }
 0x375   :  { %5170 = vst [vmem:[#allocation19_spill] sm:$0xff] %v4046_v27  ;;  %v1314_v38 = vmax.f32 %v4044_v21, %v4046_v27  ;;  %v4050_v31 = vpop.f32.mrb[58].mxu1 }
 0x376   :  { %5171 = vst [vmem:[#allocation20_spill] sm:$0xff] %v4050_v31  ;;  %v4052_v63 = vpop.f32.mrb[59].mxu1 }
 0x377   :  { %5172 = vst [vmem:[#allocation21_spill] sm:$0xff] %v4052_v63  ;;  %v1317_v3 = vmax.f32 %v4050_v31, %v4052_v63  ;;  %1315 = vmax.xlane.f32.xlu0 %v1314_v38 }
 0x379   :  { %1318 = vmax.xlane.f32.xlu1 %v1317_v3 }
 0x37b   :  { %v4056_v48 = vpop.f32.mrb[60].mxu1 }
 0x37c   :  { %5173 = vst [vmem:[#allocation22_spill] sm:$0xff] %v4056_v48  ;;  %v4058_v54 = vpop.f32.mrb[61].mxu1 }
 0x37d   :  { %5174 = vst [vmem:[#allocation23_spill] sm:$0xff] %v4058_v54  ;;  %v1320_v14 = vmax.f32 %v4056_v48, %v4058_v54  ;;  %v4062_v6 = vpop.f32.mrb[62].mxu1 }
 0x37e   :  { %5175 = vst [vmem:[#allocation24_spill] sm:$0xff] %v4062_v6  ;;  %v4064_v61 = vpop.f32.mrb[63].mxu1 }
 0x37f   :  { %5176 = vst [vmem:[#allocation25_spill] sm:$0xff] %v4064_v61  ;;  %v1323_v27 = vmax.f32 %v4062_v6, %v4064_v61  ;;  %1321 = vmax.xlane.f32.xlu0 %v1320_v14 }
 0x381   :  { %1324 = vmax.xlane.f32.xlu1 %v1323_v27 }
 0x383   :  { %v4068_v21 = vpop.f32.mrb[64].mxu1 }
 0x384   :  { %v4070_v38 = vpop.f32.mrb[65].mxu1 }
 0x385   :  { %v1326_v3 = vmax.f32 %v4068_v21, %v4070_v38  ;;  %v4074_v63 = vpop.f32.mrb[66].mxu1 }
 0x386   :  { %v4076_v31 = vpop.f32.mrb[67].mxu1 }
 0x387   :  { %v1329_v54 = vmax.f32 %v4074_v63, %v4076_v31  ;;  %1327 = vmax.xlane.f32.xlu0 %v1326_v3 }
 0x389   :  { %1330 = vmax.xlane.f32.xlu1 %v1329_v54 }
 0x38b   :  { %v4080_v48 = vpop.f32.mrb[68].mxu1 }
 0x38c   :  { %5177 = vst [vmem:[#allocation26_spill] sm:$0xff] %v4080_v48  ;;  %v4082_v14 = vpop.f32.mrb[69].mxu1 }
 0x38d   :  { %5178 = vst [vmem:[#allocation27_spill] sm:$0xff] %v4082_v14  ;;  %v1332_v27 = vmax.f32 %v4080_v48, %v4082_v14  ;;  %v4086_v61 = vpop.f32.mrb[70].mxu1 }
 0x38e   :  { %5179 = vst [vmem:[#allocation28_spill] sm:$0xff] %v4086_v61  ;;  %v4088_v6 = vpop.f32.mrb[71].mxu1 }
 0x38f   :  { %5180 = vst [vmem:[#allocation29_spill] sm:$0xff] %v4088_v6  ;;  %v1335_v34 = vmax.f32 %v4086_v61, %v4088_v6  ;;  %1333 = vmax.xlane.f32.xlu0 %v1332_v27 }
 0x391   :  { %1336 = vmax.xlane.f32.xlu1 %v1335_v34 }
 0x393   :  { %v4094_v3 = vpop.f32.mrb[72].mxu1 }
 0x394   :  { %5182 = vst [vmem:[#allocation31_spill] sm:$0xff] %v4094_v3  ;;  %v1232_v54 = vpop.xlane.xlu1 %1231  ;;  %v4096_v32 = vpop.f32.mrb[73].mxu1 }
 0x395   :  { %5183 = vst [vmem:[#allocation32_spill] sm:$0xff] %v4096_v32  ;;  %v1422_v25 = vsub.f32 %v3863_v42, %v1232_v54  ;;  %v1423_v14 = vsub.f32 %v3866_v43, %v1232_v54  ;;  %v1338_v48 = vmax.f32 %v4094_v3, %v4096_v32  ;;  %v4102_v22 = vpop.f32.mrb[74].mxu1 }
 0x396   :  { %v4104_v40 = vpop.f32.mrb[75].mxu1  ;;  %v1235_v19 = vpop.xlane.xlu0 %1234 }
 0x397   :  { %5184 = vst [vmem:[#allocation33_spill] sm:$0xff] %v4104_v40  ;;  %v1550_v6 = vmul.f32 1.442695, %v1422_v25  ;;  %v1552_v27 = vmul.f32 1.442695, %v1423_v14  ;;  %v1341_v34 = vmax.f32 %v4102_v22, %v4104_v40  ;;  %v1424_v61 = vsub.f32 %v3869_v44, %v1235_v19  ;;  %1339 = vmax.xlane.f32.xlu0 %v1338_v48 }
 0x398   :  { %v1425_v42 = vsub.f32 %v3873_v46, %v1235_v19 }
 0x399   :  { %3272 = vpow2.f32 %v1550_v6  ;;  %v1554_v43 = vmul.f32 1.442695, %v1424_v61  ;;  %1342 = vmax.xlane.f32.xlu1 %v1341_v34 }
 0x39a   :  { %3274 = vpow2.f32 %v1552_v27  ;;  %v1556_v54 = vmul.f32 1.442695, %v1425_v42 }
 0x39b   :  { %3276 = vpow2.f32 %v1554_v43  ;;  %v4110_v32 = vpop.f32.mrb[76].mxu1 }
 0x39c   :  { %3278 = vpow2.f32 %v1556_v54  ;;  %v1238_v3 = vpop.xlane.xlu1 %1237  ;;  %v4112_v25 = vpop.f32.mrb[77].mxu1 }
 0x39d   :  { %v1426_v14 = vsub.f32 %v3877_v49, %v1238_v3  ;;  %v1427_v40 = vsub.f32 %v3880_v50, %v1238_v3  ;;  %v1344_v44 = vmax.f32 %v4110_v32, %v4112_v25  ;;  %v4118_v46 = vpop.f32.mrb[78].mxu1 }
 0x39e   :  { %v4120_v19 = vpop.f32.mrb[79].mxu1 }
 0x39f   :  { %5185 = vst [vmem:[#allocation34_spill] sm:$0xff] %v4120_v19  ;;  %v1558_v48 = vmul.f32 1.442695, %v1426_v14  ;;  %v1560_v61 = vmul.f32 1.442695, %v1427_v40  ;;  %v1347_v6 = vmax.f32 %v4118_v46, %v4120_v19  ;;  %1345 = vmax.xlane.f32.xlu0 %v1344_v44 }
 0x3a0   :  { %v1241_v27 = vpop.xlane.xlu1 %1240 }
 0x3a1   :  { %3280 = vpow2.f32 %v1558_v48  ;;  %v1428_v34 = vsub.f32 %v3885_v52, %v1241_v27  ;;  %v1429_v49 = vsub.f32 %v3887_v53, %v1241_v27  ;;  %1348 = vmax.xlane.f32.xlu1 %v1347_v6 }
 0x3a2   :  { %3282 = vpow2.f32 %v1560_v61 }
 0x3a3   :  { %v4126_v50 = vpop.eup %3272  ;;  %v1562_v3 = vmul.f32 1.442695, %v1428_v34  ;;  %v1564_v42 = vmul.f32 1.442695, %v1429_v49  ;;  %v4128_v43 = vpop.f32.mrb[80].mxu1 }
 0x3a4   :  { %5186 = vst [vmem:[#allocation35_spill] sm:$0xff] %v4126_v50  ;;  %v4130_v54 = vpop.eup %3274  ;;  %v1244_v40 = vpop.xlane.xlu0 %1243 }
 0x3a5   :  { %5187 = vst [vmem:[#allocation36_spill] sm:$0xff] %v4130_v54  ;;  %v4132_v14 = vpop.f32.mrb[81].mxu1  ;;  %v4134_v44 = vpop.eup %3276  ;;  %3284 = vpow2.f32 %v1562_v3  ;;  %v1430_v52 = vsub.f32 %v3891_v56, %v1244_v40  ;;  %v1431_v53 = vsub.f32 %v3894_v57, %v1244_v40  ;;  %v1806_v48 = vadd.f32 %v4130_v54, %v4126_v50 }
 0x3a6   :  { %5188 = vst [vmem:[#allocation37_spill] sm:$0xff] %v4132_v14  ;;  %5189 = vst [vmem:[#allocation38_spill] sm:$0xff] %v4134_v44  ;;  %v4140_v61 = vpop.f32.mrb[82].mxu1  ;;  %v4142_v6 = vpop.eup %3278  ;;  %3286 = vpow2.f32 %v1564_v42  ;;  %v1350_v34 = vmax.f32 %v4128_v43, %v4132_v14 }
 0x3a7   :  { %5190 = vst [vmem:[#allocation39_spill] sm:$0xff] %v4142_v6  ;;  %v1247_v27 = vpop.xlane.xlu1 %1246  ;;  %v4146_v49 = vpop.f32.mrb[83].mxu1  ;;  %v1566_v19 = vmul.f32 1.442695, %v1430_v52  ;;  %v1568_v3 = vmul.f32 1.442695, %v1431_v53  ;;  %1807 = vadd.xlane.f32.xlu0 %v1806_v48  ;;  %v1809_v40 = vadd.f32 %v4142_v6, %v4134_v44 }
 0x3a8   :  { %v1432_v56 = vsub.f32 %v3897_v58, %v1247_v27  ;;  %v1433_v57 = vsub.f32 %v3901_v60, %v1247_v27  ;;  %v1353_v50 = vmax.f32 %v4140_v61, %v4146_v49 }
 0x3a9   :  { %3288 = vpow2.f32 %v1566_v19  ;;  %1810 = vadd.xlane.f32.xlu1 %v1809_v40 }
 0x3aa   :  { %v1570_v42 = vmul.f32 1.442695, %v1432_v56  ;;  %v1572_v54 = vmul.f32 1.442695, %v1433_v57  ;;  %3290 = vpow2.f32 %v1568_v3 }
 0x3ab   :  { %v4154_v14 = vpop.eup %3280  ;;  %1351 = vmax.xlane.f32.xlu0 %v1350_v34  ;;  %v4156_v52 = vpop.f32.mrb[84].mxu1 }
 0x3ac   :  { %5191 = vst [vmem:[#allocation40_spill] sm:$0xff] %v4154_v14  ;;  %3292 = vpow2.f32 %v1570_v42  ;;  %v4158_v58 = vpop.eup %3282  ;;  %v1250_v60 = vpop.xlane.xlu0 %1249 }
 0x3ad   :  { %5192 = vst [vmem:[#allocation41_spill] sm:$0xff] %v4158_v58  ;;  %3294 = vpow2.f32 %v1572_v54  ;;  %v4160_v53 = vpop.f32.mrb[85].mxu1  ;;  %v1434_v48 = vsub.f32 %v3905_v0, %v1250_v60  ;;  %v1435_v19 = vsub.f32 %v3908_v1, %v1250_v60  ;;  %v1812_v27 = vadd.f32 %v4158_v58, %v4154_v14  ;;  %1354 = vmax.xlane.f32.xlu1 %v1353_v50 }
 0x3ae   :  { %v1356_v3 = vmax.f32 %v4156_v52, %v4160_v53  ;;  %v4168_v56 = vpop.f32.mrb[86].mxu1  ;;  %v1253_v34 = vpop.xlane.xlu1 %1252 }
 0x3af   :  { %v4170_v57 = vpop.f32.mrb[87].mxu1  ;;  %v4172_v54 = vpop.eup %3284  ;;  %v1574_v40 = vmul.f32 1.442695, %v1434_v48  ;;  %v1576_v42 = vmul.f32 1.442695, %v1435_v19  ;;  %v1436_v0 = vsub.f32 %v3911_v2, %v1253_v34  ;;  %v1437_v1 = vsub.f32 %v3915_v5, %v1253_v34  ;;  %1813 = vadd.xlane.f32.xlu0 %v1812_v27 }
 0x3b0   :  { %5193 = vst [vmem:[#allocation42_spill] sm:$0xff] %v4172_v54  ;;  %v4176_v60 = vpop.eup %3286  ;;  %v1359_v14 = vmax.f32 %v4168_v56, %v4170_v57 }
 0x3b1   :  { %5194 = vst [vmem:[#allocation43_spill] sm:$0xff] %v4176_v60  ;;  %3296 = vpow2.f32 %v1574_v40  ;;  %v1578_v58 = vmul.f32 1.442695, %v1436_v0  ;;  %v1580_v50 = vmul.f32 1.442695, %v1437_v1  ;;  %v1815_v44 = vadd.f32 %v4176_v60, %v4172_v54 }
 0x3b2   :  { %3298 = vpow2.f32 %v1576_v42 }
 0x3b3   :  { %v4182_v6 = vpop.eup %3288  ;;  %3300 = vpow2.f32 %v1578_v58  ;;  %1357 = vmax.xlane.f32.xlu0 %v1356_v3  ;;  %1816 = vadd.xlane.f32.xlu1 %v1815_v44  ;;  %v4184_v2 = vpop.f32.mrb[88].mxu1 }
 0x3b4   :  { %5195 = vst [vmem:[#allocation44_spill] sm:$0xff] %v4182_v6  ;;  %v4186_v5 = vpop.eup %3290  ;;  %3302 = vpow2.f32 %v1580_v50  ;;  %v1256_v48 = vpop.xlane.xlu0 %1255 }
 0x3b5   :  { %5196 = vst [vmem:[#allocation45_spill] sm:$0xff] %v4186_v5  ;;  %v4188_v19 = vpop.f32.mrb[89].mxu1  ;;  %v1438_v34 = vsub.f32 %v3919_v8, %v1256_v48  ;;  %v1439_v40 = vsub.f32 %v3922_v9, %v1256_v48  ;;  %v1818_v42 = vadd.f32 %v4186_v5, %v4182_v6 }
 0x3b6   :  { %5197 = vst [vmem:[#allocation46_spill] sm:$0xff] %v4188_v19  ;;  %v4190_v27 = vpop.eup %3292  ;;  %v1362_v44 = vmax.f32 %v4184_v2, %v4188_v19  ;;  %v4198_v58 = vpop.f32.mrb[90].mxu1 }
 0x3b7   :  { %5198 = vst [vmem:[#allocation47_spill] sm:$0xff] %v4190_v27  ;;  %v4200_v3 = vpop.eup %3294  ;;  %v1259_v0 = vpop.xlane.xlu1 %1258  ;;  %v1582_v50 = vmul.f32 1.442695, %v1438_v34  ;;  %v1584_v54 = vmul.f32 1.442695, %v1439_v40  ;;  %1360 = vmax.xlane.f32.xlu1 %v1359_v14  ;;  %1819 = vadd.xlane.f32.xlu0 %v1818_v42 }
 0x3b8   :  { %5199 = vst [vmem:[#allocation48_spill] sm:$0xff] %v4200_v3  ;;  %v4202_v1 = vpop.f32.mrb[91].mxu1  ;;  %v1440_v60 = vsub.f32 %v3925_v10, %v1259_v0  ;;  %v1441_v8 = vsub.f32 %v3929_v12, %v1259_v0  ;;  %v1821_v5 = vadd.f32 %v4200_v3, %v4190_v27 }
 0x3b9   :  { %v1365_v9 = vmax.f32 %v4198_v58, %v4202_v1  ;;  %3304 = vpow2.f32 %v1582_v50 }
 0x3ba   :  { %v1586_v48 = vmul.f32 1.442695, %v1440_v60  ;;  %v1588_v6 = vmul.f32 1.442695, %v1441_v8  ;;  %3306 = vpow2.f32 %v1584_v54 }
 0x3bb   :  { %v4210_v19 = vpop.eup %3296  ;;  %1822 = vadd.xlane.f32.xlu1 %v1821_v5  ;;  %1363 = vmax.xlane.f32.xlu0 %v1362_v44  ;;  %v4212_v10 = vpop.f32.mrb[92].mxu1 }
 0x3bc   :  { %5200 = vst [vmem:[#allocation49_spill] sm:$0xff] %v4210_v19  ;;  %3308 = vpow2.f32 %v1586_v48  ;;  %v4214_v12 = vpop.eup %3298  ;;  %v1262_v14 = vpop.xlane.xlu0 %1261 }
 0x3bd   :  { %5201 = vst [vmem:[#allocation50_spill] sm:$0xff] %v4214_v12  ;;  %3310 = vpow2.f32 %v1588_v6  ;;  %v4216_v34 = vpop.f32.mrb[93].mxu1  ;;  %v4218_v40 = vpop.eup %3300  ;;  %v1824_v60 = vadd.f32 %v4214_v12, %v4210_v19  ;;  %v1442_v44 = vsub.f32 %v3933_v16, %v1262_v14  ;;  %v1443_v6 = vsub.f32 %v3936_v17, %v1262_v14 }
 0x3be   :  { %5202 = vst [vmem:[#allocation51_spill] sm:$0xff] %v4216_v34  ;;  %v1368_v54 = vmax.f32 %v4212_v10, %v4216_v34  ;;  %v4224_v42 = vpop.f32.mrb[94].mxu1  ;;  %v4226_v5 = vpop.eup %3302 }
 0x3bf   :  { %v1265_v0 = vpop.xlane.xlu1 %1264  ;;  %v4229_v50 = vpop.f32.mrb[95].mxu1  ;;  %1366 = vmax.xlane.f32.xlu1 %v1365_v9  ;;  %1825 = vadd.xlane.f32.xlu0 %v1824_v60  ;;  %v1827_v12 = vadd.f32 %v4226_v5, %v4218_v40  ;;  %v1590_v27 = vmul.f32 1.442695, %v1442_v44  ;;  %v1592_v16 = vmul.f32 1.442695, %v1443_v6 }
 0x3c0   :  { %v1444_v8 = vsub.f32 %v3939_v18, %v1265_v0  ;;  %v1371_v48 = vmax.f32 %v4224_v42, %v4229_v50  ;;  %v1445_v19 = vsub.f32 %v3943_v20, %v1265_v0 }
 0x3c1   :  { %3312 = vpow2.f32 %v1590_v27 }
 0x3c2   :  { %v1594_v17 = vmul.f32 1.442695, %v1444_v8  ;;  %v1596_v18 = vmul.f32 1.442695, %v1445_v19  ;;  %3314 = vpow2.f32 %v1592_v16 }
 0x3c3   :  { %v4238_v3 = vpop.eup %3304  ;;  %1828 = vadd.xlane.f32.xlu1 %v1827_v12  ;;  %1369 = vmax.xlane.f32.xlu0 %v1368_v54 }
 0x3c4   :  { %5203 = vst [vmem:[#allocation52_spill] sm:$0xff] %v4238_v3  ;;  %v4240_v34 = vpop.eup %3306  ;;  %v1268_v9 = vpop.xlane.xlu0 %1267  ;;  %3316 = vpow2.f32 %v1594_v17 }
 0x3c5   :  { %5204 = vst [vmem:[#allocation53_spill] sm:$0xff] %v4240_v34  ;;  %v1830_v60 = vadd.f32 %v4240_v34, %v4238_v3  ;;  %v1446_v44 = vsub.f32 %v3947_v23, %v1268_v9  ;;  %v1447_v12 = vsub.f32 %v3950_v24, %v1268_v9  ;;  %3318 = vpow2.f32 %v1596_v18 }
 0x3c6   :  { %v4242_v14 = vpop.eup %3308  ;;  %v1271_v0 = vpop.xlane.xlu1 %1270 }
 0x3c7   :  { %v4246_v20 = vpop.eup %3310  ;;  %1372 = vmax.xlane.f32.xlu1 %v1371_v48  ;;  %1831 = vadd.xlane.f32.xlu0 %v1830_v60  ;;  %v1448_v54 = vsub.f32 %v3952_v13, %v1271_v0  ;;  %v1449_v19 = vsub.f32 %v3956_v26, %v1271_v0  ;;  %v1598_v8 = vmul.f32 1.442695, %v1446_v44  ;;  %v1600_v3 = vmul.f32 1.442695, %v1447_v12 }
 0x3c8   :  { %v1833_v6 = vadd.f32 %v4246_v20, %v4242_v14 }
 0x3c9   :  { %v1602_v27 = vmul.f32 1.442695, %v1448_v54  ;;  %v1604_v34 = vmul.f32 1.442695, %v1449_v19  ;;  %3320 = vpow2.f32 %v1598_v8 }
 0x3ca   :  { %3322 = vpow2.f32 %v1600_v3 }
 0x3cb   :  { %1834 = vadd.xlane.f32.xlu1 %v1833_v6  ;;  %v4260_v26 = vpop.eup %3312  ;;  %3324 = vpow2.f32 %v1602_v27 }
 0x3cc   :  { %v1274_v23 = vpop.xlane.xlu0 %1273  ;;  %5205 = vst [vmem:[#allocation54_spill] sm:$0xff] %v4260_v26  ;;  %v4267_v44 = vpop.eup %3314  ;;  %3326 = vpow2.f32 %v1604_v34 }
 0x3cd   :  { %v1450_v24 = vsub.f32 %v3960_v28, %v1274_v23  ;;  %v1451_v13 = vsub.f32 %v3962_v29, %v1274_v23  ;;  %5206 = vst [vmem:[#allocation55_spill] sm:$0xff] %v4267_v44  ;;  %v1836_v34 = vadd.f32 %v4267_v44, %v4260_v26 }
 0x3ce   :  { %v1277_v48 = vpop.xlane.xlu1 %1276  ;;  %v4255_v16 = vpop.f32.mrb[96].mxu1 }
 0x3cf   :  { %v4258_v17 = vpop.f32.mrb[97].mxu1  ;;  %v1452_v9 = vsub.f32 %v3964_v30, %v1277_v48  ;;  %v1453_v28 = vsub.f32 %v3968_v33, %v1277_v48  ;;  %v4272_v29 = vpop.eup %3316  ;;  %v1606_v0 = vmul.f32 1.442695, %v1450_v24  ;;  %v1608_v54 = vmul.f32 1.442695, %v1451_v13 }
 0x3d0   :  { %v1374_v18 = vmax.f32 %v4255_v16, %v4258_v17  ;;  %v4265_v60 = vpop.f32.mrb[98].mxu1  ;;  %5207 = vst [vmem:[#allocation56_spill] sm:$0xff] %v4272_v29  ;;  %v4276_v30 = vpop.eup %3318 }
 0x3d1   :  { %v4270_v3 = vpop.f32.mrb[99].mxu1  ;;  %5208 = vst [vmem:[#allocation57_spill] sm:$0xff] %v4276_v30  ;;  %v1610_v19 = vmul.f32 1.442695, %v1452_v9  ;;  %v1612_v8 = vmul.f32 1.442695, %v1453_v28  ;;  %3328 = vpow2.f32 %v1606_v0  ;;  %v1839_v24 = vadd.f32 %v4276_v30, %v4272_v29 }
 0x3d2   :  { %v1377_v12 = vmax.f32 %v4265_v60, %v4270_v3  ;;  %1375 = vmax.xlane.f32.xlu0 %v1374_v18  ;;  %3330 = vpow2.f32 %v1608_v54 }
 0x3d3   :  { %v4288_v9 = vpop.eup %3320  ;;  %3332 = vpow2.f32 %v1610_v19 }
 0x3d4   :  { %1378 = vmax.xlane.f32.xlu1 %v1377_v12  ;;  %v1280_v6 = vpop.xlane.xlu0 %1279  ;;  %5209 = vst [vmem:[#allocation58_spill] sm:$0xff] %v4288_v9  ;;  %v4295_v0 = vpop.eup %3322  ;;  %3334 = vpow2.f32 %v1612_v8 }
 0x3d5   :  { %v1454_v33 = vsub.f32 %v3972_v35, %v1280_v6  ;;  %v1455_v48 = vsub.f32 %v3974_v36, %v1280_v6  ;;  %5210 = vst [vmem:[#allocation59_spill] sm:$0xff] %v4295_v0  ;;  %v4300_v36 = vpop.eup %3324  ;;  %v1842_v8 = vadd.f32 %v4295_v0, %v4288_v9 }
 0x3d6   :  { %v1283_v27 = vpop.xlane.xlu1 %1282  ;;  %v4281_v23 = vpop.f32.mrb[100].mxu1  ;;  %1837 = vadd.xlane.f32.xlu0 %v1836_v34  ;;  %5212 = vst [vmem:[#allocation61_spill] sm:$0xff] %v4300_v36 }
 0x3d7   :  { %v4286_v13 = vpop.f32.mrb[101].mxu1  ;;  %v1456_v18 = vsub.f32 %v3976_v37, %v1283_v27  ;;  %v1457_v12 = vsub.f32 %v3980_v39, %v1283_v27  ;;  %v1614_v6 = vmul.f32 1.442695, %v1454_v33  ;;  %v4304_v37 = vpop.eup %3326  ;;  %v1616_v34 = vmul.f32 1.442695, %v1455_v48 }
 0x3d8   :  { %v1380_v35 = vmax.f32 %v4281_v23, %v4286_v13  ;;  %v4293_v28 = vpop.f32.mrb[102].mxu1  ;;  %1840 = vadd.xlane.f32.xlu1 %v1839_v24  ;;  %5213 = vst [vmem:[#allocation62_spill] sm:$0xff] %v4304_v37  ;;  %v1845_v33 = vadd.f32 %v4304_v37, %v4300_v36 }
 0x3d9   :  { %v4298_v54 = vpop.f32.mrb[103].mxu1  ;;  %v1618_v29 = vmul.f32 1.442695, %v1456_v18  ;;  %v1620_v26 = vmul.f32 1.442695, %v1457_v12  ;;  %3336 = vpow2.f32 %v1614_v6 }
 0x3da   :  { %5211 = vst [vmem:[#allocation60_spill] sm:$0xff] %v4298_v54  ;;  %v1383_v19 = vmax.f32 %v4293_v28, %v4298_v54  ;;  %1381 = vmax.xlane.f32.xlu0 %v1380_v35  ;;  %3338 = vpow2.f32 %v1616_v34 }
 0x3db   :  { %v4316_v35 = vpop.eup %3328  ;;  %3340 = vpow2.f32 %v1618_v29 }
 0x3dc   :  { %1384 = vmax.xlane.f32.xlu1 %v1383_v19  ;;  %v1286_v24 = vpop.xlane.xlu0 %1285  ;;  %5216 = vst [vmem:[#allocation65_spill] sm:$0xff] %v4316_v35  ;;  %v4323_v19 = vpop.eup %3330  ;;  %3342 = vpow2.f32 %v1620_v26 }
 0x3dd   :  { %v1458_v39 = vsub.f32 %v3984_v41, %v1286_v24  ;;  %v1459_v48 = vsub.f32 %v3986_v45, %v1286_v24  ;;  %5218 = vst [vmem:[#allocation67_spill] sm:$0xff] %v4323_v19  ;;  %v4328_v45 = vpop.eup %3332  ;;  %v1848_v26 = vadd.f32 %v4323_v19, %v4316_v35 }
 0x3de   :  { %v1289_v27 = vpop.xlane.xlu1 %1288  ;;  %v4309_v30 = vpop.f32.mrb[104].mxu1  ;;  %1843 = vadd.xlane.f32.xlu0 %v1842_v8  ;;  %5220 = vst [vmem:[#allocation69_spill] sm:$0xff] %v4328_v45 }
 0x3df   :  { %5214 = vst [vmem:[#allocation63_spill] sm:$0xff] %v4309_v30  ;;  %v4314_v18 = vpop.f32.mrb[105].mxu1  ;;  %v1460_v12 = vsub.f32 %v3988_v47, %v1289_v27  ;;  %v1461_v34 = vsub.f32 %v3992_v51, %v1289_v27  ;;  %v1622_v24 = vmul.f32 1.442695, %v1458_v39  ;;  %v4332_v47 = vpop.eup %3334  ;;  %v1624_v36 = vmul.f32 1.442695, %v1459_v48 }
 0x3e0   :  { %5215 = vst [vmem:[#allocation64_spill] sm:$0xff] %v4314_v18  ;;  %v1386_v41 = vmax.f32 %v4309_v30, %v4314_v18  ;;  %v4321_v6 = vpop.f32.mrb[106].mxu1  ;;  %1846 = vadd.xlane.f32.xlu1 %v1845_v33  ;;  %5221 = vst [vmem:[#allocation70_spill] sm:$0xff] %v4332_v47  ;;  %v1851_v39 = vadd.f32 %v4332_v47, %v4328_v45 }
 0x3e1   :  { %5217 = vst [vmem:[#allocation66_spill] sm:$0xff] %v4321_v6  ;;  %v4326_v8 = vpop.f32.mrb[107].mxu1  ;;  %v1626_v9 = vmul.f32 1.442695, %v1460_v12  ;;  %v1628_v37 = vmul.f32 1.442695, %v1461_v34  ;;  %3344 = vpow2.f32 %v1622_v24 }
 0x3e2   :  { %5219 = vst [vmem:[#allocation68_spill] sm:$0xff] %v4326_v8  ;;  %v1389_v29 = vmax.f32 %v4321_v6, %v4326_v8  ;;  %1387 = vmax.xlane.f32.xlu0 %v1386_v41  ;;  %3346 = vpow2.f32 %v1624_v36 }
 0x3e3   :  { %v4344_v41 = vpop.eup %3336  ;;  %3348 = vpow2.f32 %v1626_v9 }
 0x3e4   :  { %1390 = vmax.xlane.f32.xlu1 %v1389_v29  ;;  %v1292_v33 = vpop.xlane.xlu0 %1291  ;;  %5224 = vst [vmem:[#allocation73_spill] sm:$0xff] %v4344_v41  ;;  %v4351_v29 = vpop.eup %3338  ;;  %3350 = vpow2.f32 %v1628_v37 }
 0x3e5   :  { %v1462_v51 = vsub.f32 %v3996_v55, %v1292_v33  ;;  %v1463_v48 = vsub.f32 %v3998_v59, %v1292_v33  ;;  %5226 = vst [vmem:[#allocation75_spill] sm:$0xff] %v4351_v29  ;;  %v4356_v59 = vpop.eup %3340 }
 0x3e6   :  { %v1295_v27 = vpop.xlane.xlu1 %1294  ;;  %v4337_v0 = vpop.f32.mrb[108].mxu1  ;;  %1849 = vadd.xlane.f32.xlu0 %v1848_v26  ;;  %5228 = vst [vmem:[#allocation77_spill] sm:$0xff] %v4356_v59 }
 0x3e7   :  { %5222 = vst [vmem:[#allocation71_spill] sm:$0xff] %v4337_v0  ;;  %v4342_v12 = vpop.f32.mrb[109].mxu1  ;;  %v1464_v34 = vsub.f32 %v4002_v62, %v1295_v27  ;;  %v1465_v36 = vsub.f32 %v4004_v4, %v1295_v27  ;;  %v1630_v33 = vmul.f32 1.442695, %v1462_v51  ;;  %v4360_v62 = vpop.eup %3342  ;;  %v1632_v45 = vmul.f32 1.442695, %v1463_v48 }
 0x3e8   :  { %5223 = vst [vmem:[#allocation72_spill] sm:$0xff] %v4342_v12  ;;  %v1392_v55 = vmax.f32 %v4337_v0, %v4342_v12  ;;  %v4349_v24 = vpop.f32.mrb[110].mxu1  ;;  %1852 = vadd.xlane.f32.xlu1 %v1851_v39  ;;  %5229 = vst [vmem:[#allocation78_spill] sm:$0xff] %v4360_v62  ;;  %v1854_v39 = vadd.f32 %v4351_v29, %v4344_v41  ;;  %v1857_v51 = vadd.f32 %v4360_v62, %v4356_v59 }
 0x3e9   :  { %5225 = vst [vmem:[#allocation74_spill] sm:$0xff] %v4349_v24  ;;  %v4354_v26 = vpop.f32.mrb[111].mxu1  ;;  %v1634_v35 = vmul.f32 1.442695, %v1464_v34  ;;  %v1636_v37 = vmul.f32 1.442695, %v1465_v36  ;;  %3352 = vpow2.f32 %v1630_v33 }
 0x3ea   :  { %5227 = vst [vmem:[#allocation76_spill] sm:$0xff] %v4354_v26  ;;  %v1395_v9 = vmax.f32 %v4349_v24, %v4354_v26  ;;  %1393 = vmax.xlane.f32.xlu0 %v1392_v55  ;;  %3354 = vpow2.f32 %v1632_v45 }
 0x3eb   :  { %v4370_v55 = vpop.eup %3344  ;;  %3356 = vpow2.f32 %v1634_v35 }
 0x3ec   :  { %1396 = vmax.xlane.f32.xlu1 %v1395_v9  ;;  %5232 = vst [vmem:[#allocation81_spill] sm:$0xff] %v4370_v55  ;;  %v4376_v36 = vpop.eup %3346  ;;  %3358 = vpow2.f32 %v1636_v37 }
 0x3ed   :  { %5234 = vst [vmem:[#allocation83_spill] sm:$0xff] %v4376_v36  ;;  %v4380_v9 = vpop.eup %3348  ;;  %v1860_v35 = vadd.f32 %v4376_v36, %v4370_v55 }
 0x3ee   :  { %v4364_v4 = vpop.f32.mrb[112].mxu1  ;;  %1855 = vadd.xlane.f32.xlu0 %v1854_v39  ;;  %5236 = vst [vmem:[#allocation85_spill] sm:$0xff] %v4380_v9  ;;  %v4384_v39 = vpop.eup %3350 }
 0x3ef   :  { %5230 = vst [vmem:[#allocation79_spill] sm:$0xff] %v4364_v4  ;;  %v4368_v27 = vpop.f32.mrb[113].mxu1  ;;  %5237 = vst [vmem:[#allocation86_spill] sm:$0xff] %v4384_v39  ;;  %v1863_v37 = vadd.f32 %v4384_v39, %v4380_v9 }
 0x3f0   :  { %5231 = vst [vmem:[#allocation80_spill] sm:$0xff] %v4368_v27  ;;  %v1398_v48 = vmax.f32 %v4364_v4, %v4368_v27  ;;  %v4374_v34 = vpop.f32.mrb[114].mxu1  ;;  %1858 = vadd.xlane.f32.xlu1 %v1857_v51 }
 0x3f1   :  { %5233 = vst [vmem:[#allocation82_spill] sm:$0xff] %v4374_v34  ;;  %v4378_v33 = vpop.f32.mrb[115].mxu1 }
 0x3f2   :  { %5235 = vst [vmem:[#allocation84_spill] sm:$0xff] %v4378_v33  ;;  %v1401_v45 = vmax.f32 %v4374_v34, %v4378_v33  ;;  %1399 = vmax.xlane.f32.xlu0 %v1398_v48 }
 0x3f3   :  { %v4394_v41 = vpop.eup %3352 }
 0x3f4   :  { %1402 = vmax.xlane.f32.xlu1 %v1401_v45  ;;  %5240 = vst [vmem:[#allocation89_spill] sm:$0xff] %v4394_v41  ;;  %v4400_v45 = vpop.eup %3354 }
 0x3f5   :  { %5242 = vst [vmem:[#allocation91_spill] sm:$0xff] %v4400_v45  ;;  %v4404_v55 = vpop.eup %3356  ;;  %v1866_v39 = vadd.f32 %v4400_v45, %v4394_v41 }
 0x3f6   :  { %v4388_v59 = vpop.f32.mrb[116].mxu1  ;;  %1861 = vadd.xlane.f32.xlu0 %v1860_v35  ;;  %5244 = vst [vmem:[#allocation93_spill] sm:$0xff] %v4404_v55  ;;  %v4408_v9 = vpop.eup %3358 }
 0x3f7   :  { %5238 = vst [vmem:[#allocation87_spill] sm:$0xff] %v4388_v59  ;;  %v4392_v51 = vpop.f32.mrb[117].mxu1  ;;  %5245 = vst [vmem:[#allocation94_spill] sm:$0xff] %v4408_v9 }
 0x3f8   :  { %5239 = vst [vmem:[#allocation88_spill] sm:$0xff] %v4392_v51  ;;  %v1404_v62 = vmax.f32 %v4388_v59, %v4392_v51  ;;  %v4398_v48 = vpop.f32.mrb[118].mxu1  ;;  %1864 = vadd.xlane.f32.xlu1 %v1863_v37  ;;  %v1869_v37 = vadd.f32 %v4408_v9, %v4404_v55  ;;  %v1298_v59 = vpop.xlane.xlu0 %1297 }
 0x3f9   :  { %5241 = vst [vmem:[#allocation90_spill] sm:$0xff] %v4398_v48  ;;  %v4402_v29 = vpop.f32.mrb[119].mxu1  ;;  %v1466_v33 = vsub.f32 %v4008_v7, %v1298_v59  ;;  %v1467_v27 = vsub.f32 %v4010_v11, %v1298_v59  ;;  %v5248_v59 = vld [vmem:[#allocation9_spill] sm:$0xff] }
 0x3fa   :  { %5243 = vst [vmem:[#allocation92_spill] sm:$0xff] %v4402_v29  ;;  %v1407_v35 = vmax.f32 %v4398_v48, %v4402_v29  ;;  %1405 = vmax.xlane.f32.xlu0 %v1404_v62 }
 0x3fb   :  { %v1640_v24 = vmul.f32 1.442695, %v1467_v27 }
 0x3fc   :  { %1408 = vmax.xlane.f32.xlu1 %v1407_v35  ;;  %v1301_v35 = vpop.xlane.xlu1 %1300 }
 0x3fd   :  { %v1468_v41 = vsub.f32 %v4014_v15, %v1301_v35  ;;  %v5249_v15 = vld [vmem:[#allocation10_spill] sm:$0xff] }
 0x3fe   :  { %v4412_v36 = vpop.f32.mrb[120].mxu1  ;;  %1867 = vadd.xlane.f32.xlu0 %v1866_v39  ;;  %v1304_v39 = vpop.xlane.xlu0 %1303 }
 0x3ff   :  { %5246 = vst [vmem:[#allocation95_spill] sm:$0xff] %v4412_v36  ;;  %v4416_v51 = vpop.f32.mrb[121].mxu1  ;;  %v1642_v54 = vmul.f32 1.442695, %v1468_v41  ;;  %v5254_v41 = vld [vmem:[#allocation29_spill] sm:$0xff] }
 0x400   :  { %5247 = vst [vmem:[#allocation96_spill] sm:$0xff] %v4416_v51  ;;  %v1410_v47 = vmax.f32 %v4412_v36, %v4416_v51  ;;  %1870 = vadd.xlane.f32.xlu1 %v1869_v37  ;;  %v4420_v62 = vpop.f32.mrb[122].mxu1  ;;  %v4426_v45 = vpop.xlane.xlu1 %1306  ;;  %v1638_v37 = vmul.f32 1.442695, %v1466_v33  ;;  %v1469_v33 = vsub.f32 %v5248_v59, %v1301_v35 }
 0x401   :  { %v4422_v29 = vpop.f32.mrb[123].mxu1 }
 0x402   :  { %1411 = vmax.xlane.f32.xlu0 %v1410_v47  ;;  %v4432_v48 = vpop.xlane.xlu0 %1309  ;;  %3360 = vpow2.f32 %v1638_v37  ;;  %v5251_v37 = vld [vmem:[#allocation27_spill] sm:$0xff] }
 0x403   :  { %3362 = vpow2.f32 %v1640_v24 }
 0x404   :  { %v4440_v47 = vpop.xlane.xlu1 %1312 }
 0x406   :  { %v4428_v55 = vpop.f32.mrb[124].mxu1  ;;  %v4444_v19 = vpop.xlane.xlu0 %1315 }
 0x407   :  { %v4430_v9 = vpop.f32.mrb[125].mxu1 }
 0x408   :  { %v4436_v51 = vpop.f32.mrb[126].mxu1  ;;  %v4447_v34 = vpop.xlane.xlu1 %1318 }
 0x409   :  { %v4438_v36 = vpop.f32.mrb[127].mxu1 }
 0x40c   :  { %v4450_v4 = vpop.xlane.xlu0 %1321  ;;  %v4466_v59 = vpop.eup %3360 }
 0x40d   :  { %5255 = vst [vmem:[#allocation9_spill] sm:$0xff] %v4466_v59 }
 0x40e   :  { %v4452_v26 = vpop.xlane.xlu1 %1324 }
 0x414   :  { %v1328_v12 = vpop.xlane.xlu0 %1327 }
 0x415   :  { %v1486_v0 = vsub.f32 %v4068_v21, %v1328_v12  ;;  %v1487_v44 = vsub.f32 %v4070_v38, %v1328_v12  ;;  %v1644_v21 = vmul.f32 1.442695, %v1469_v33  ;;  %v1470_v12 = vsub.f32 %v5249_v15, %v1304_v39 }
 0x416   :  { %v1331_v8 = vpop.xlane.xlu1 %1330 }
 0x417   :  { %v1678_v7 = vmul.f32 1.442695, %v1486_v0  ;;  %v1680_v6 = vmul.f32 1.442695, %v1487_v44  ;;  %v1488_v18 = vsub.f32 %v4074_v63, %v1331_v8  ;;  %v1489_v11 = vsub.f32 %v4076_v31, %v1331_v8  ;;  %v5250_v0 = vld [vmem:[#allocation26_spill] sm:$0xff]  ;;  %v5252_v31 = vld [vmem:[#allocation11_spill] sm:$0xff] }
 0x418   :  { %v1471_v8 = vsub.f32 %v5252_v31, %v1304_v39 }
 0x419   :  { %3364 = vpow2.f32 %v1678_v7  ;;  %v1682_v27 = vmul.f32 1.442695, %v1488_v18  ;;  %v1684_v30 = vmul.f32 1.442695, %v1489_v11  ;;  %v5253_v18 = vld [vmem:[#allocation28_spill] sm:$0xff] }
 0x41a   :  { %3366 = vpow2.f32 %v1680_v6  ;;  %v1648_v39 = vmul.f32 1.442695, %v1471_v8 }
 0x41b   :  { %3368 = vpow2.f32 %v1682_v27  ;;  %v1646_v27 = vmul.f32 1.442695, %v1470_v12  ;;  %v5259_v12 = vld [vmem:[#allocation31_spill] sm:$0xff] }
 0x41c   :  { %3370 = vpow2.f32 %v1684_v30  ;;  %v1334_v38 = vpop.xlane.xlu0 %1333  ;;  %v5256_v30 = vld [vmem:[#allocation12_spill] sm:$0xff] }
 0x41d   :  { %v1490_v44 = vsub.f32 %v5250_v0, %v1334_v38  ;;  %v1491_v63 = vsub.f32 %v5251_v37, %v1334_v38  ;;  %3372 = vpow2.f32 %v1642_v54  ;;  %v1472_v33 = vsub.f32 %v5256_v30, %v4426_v45  ;;  %v4470_v54 = vpop.eup %3362  ;;  %v5258_v37 = vld [vmem:[#allocation13_spill] sm:$0xff] }
 0x41e   :  { %v1337_v24 = vpop.xlane.xlu1 %1336  ;;  %3374 = vpow2.f32 %v1644_v21 }
 0x41f   :  { %v1686_v35 = vmul.f32 1.442695, %v1490_v44  ;;  %v1688_v7 = vmul.f32 1.442695, %v1491_v63  ;;  %v1492_v11 = vsub.f32 %v5253_v18, %v1337_v24  ;;  %v1493_v6 = vsub.f32 %v5254_v41, %v1337_v24  ;;  %v5260_v18 = vld [vmem:[#allocation32_spill] sm:$0xff]  ;;  %v5261_v41 = vld [vmem:[#allocation14_spill] sm:$0xff] }
 0x420   :  { %v1473_v63 = vsub.f32 %v5258_v37, %v4426_v45  ;;  %v1650_v21 = vmul.f32 1.442695, %v1472_v33 }
 0x421   :  { %3376 = vpow2.f32 %v1686_v35  ;;  %v1690_v15 = vmul.f32 1.442695, %v1492_v11  ;;  %v1692_v38 = vmul.f32 1.442695, %v1493_v6  ;;  %v1474_v6 = vsub.f32 %v5261_v41, %v4432_v48 }
 0x422   :  { %3378 = vpow2.f32 %v1688_v7 }
 0x423   :  { %v4472_v0 = vpop.eup %3364  ;;  %3380 = vpow2.f32 %v1690_v15 }
 0x424   :  { %5257 = vst [vmem:[#allocation10_spill] sm:$0xff] %v4472_v0  ;;  %v4474_v44 = vpop.eup %3366  ;;  %3382 = vpow2.f32 %v1692_v38  ;;  %v1340_v31 = vpop.xlane.xlu0 %1339  ;;  %v5262_v38 = vld [vmem:[#allocation33_spill] sm:$0xff] }
 0x425   :  { %v4478_v24 = vpop.eup %3368  ;;  %3384 = vpow2.f32 %v1646_v27  ;;  %v1494_v35 = vsub.f32 %v5259_v12, %v1340_v31  ;;  %v1495_v11 = vsub.f32 %v5260_v18, %v1340_v31  ;;  %v1902_v8 = vadd.f32 %v4474_v44, %v4472_v0  ;;  %v5264_v12 = vld [vmem:[#allocation15_spill] sm:$0xff] }
 0x426   :  { %v4484_v7 = vpop.eup %3370  ;;  %3386 = vpow2.f32 %v1648_v39  ;;  %v1343_v45 = vpop.xlane.xlu1 %1342  ;;  %v1652_v31 = vmul.f32 1.442695, %v1473_v63  ;;  %v1475_v18 = vsub.f32 %v5264_v12, %v4432_v48  ;;  %v5267_v12 = vld [vmem:[#allocation17_spill] sm:$0xff] }
 0x427   :  { %v1694_v30 = vmul.f32 1.442695, %v1494_v35  ;;  %v1696_v33 = vmul.f32 1.442695, %v1495_v11  ;;  %v1496_v15 = vsub.f32 %v4102_v22, %v1343_v45  ;;  %v1497_v27 = vsub.f32 %v5262_v38, %v1343_v45  ;;  %1903 = vadd.xlane.f32.xlu0 %v1902_v8  ;;  %v4490_v37 = vpop.eup %3372  ;;  %v5266_v38 = vld [vmem:[#allocation16_spill] sm:$0xff] }
 0x428   :  { %5263 = vst [vmem:[#allocation26_spill] sm:$0xff] %v4490_v37  ;;  %3388 = vpow2.f32 %v1650_v21  ;;  %v1905_v39 = vadd.f32 %v4484_v7, %v4478_v24  ;;  %v1872_v35 = vadd.f32 %v4470_v54, %v4466_v59  ;;  %v4498_v22 = vpop.eup %3374  ;;  %v1654_v11 = vmul.f32 1.442695, %v1474_v6 }
 0x429   :  { %3390 = vpow2.f32 %v1694_v30  ;;  %v1698_v41 = vmul.f32 1.442695, %v1496_v15  ;;  %v1700_v0 = vmul.f32 1.442695, %v1497_v27  ;;  %v1656_v48 = vmul.f32 1.442695, %v1475_v18 }
 0x42a   :  { %3392 = vpow2.f32 %v1696_v33  ;;  %1906 = vadd.xlane.f32.xlu1 %v1905_v39  ;;  %v1476_v27 = vsub.f32 %v5266_v38, %v4440_v47  ;;  %v5268_v18 = vmax.f32 %v4420_v62, %v4422_v29  ;;  %v5272_v38 = vld [vmem:[#allocation18_spill] sm:$0xff] }
 0x42b   :  { %v4500_v8 = vpop.eup %3376  ;;  %3394 = vpow2.f32 %v1698_v41  ;;  %1873 = vadd.xlane.f32.xlu0 %v1872_v35  ;;  %v5270_v35 = vld [vmem:[#allocation34_spill] sm:$0xff] }
 0x42c   :  { %5265 = vst [vmem:[#allocation27_spill] sm:$0xff] %v4500_v8  ;;  %v4502_v63 = vpop.eup %3378  ;;  %3396 = vpow2.f32 %v1700_v0  ;;  %v1346_v21 = vpop.xlane.xlu0 %1345  ;;  %v1477_v0 = vsub.f32 %v5267_v12, %v4440_v47  ;;  %v1478_v12 = vsub.f32 %v5272_v38, %v4444_v19 }
 0x42d   :  { %v4504_v45 = vpop.eup %3380  ;;  %3398 = vpow2.f32 %v1652_v31  ;;  %v1498_v30 = vsub.f32 %v4110_v32, %v1346_v21  ;;  %v1499_v15 = vsub.f32 %v4112_v25, %v1346_v21  ;;  %v1908_v6 = vadd.f32 %v4502_v63, %v4500_v8 }
 0x42e   :  { %v4510_v33 = vpop.eup %3382  ;;  %3400 = vpow2.f32 %v1654_v11  ;;  %1414 = vmax.xlane.f32.xlu1 %v5268_v18  ;;  %v1349_v31 = vpop.xlane.xlu1 %1348 }
 0x42f   :  { %v4519_v32 = vpop.eup %3384  ;;  %v1702_v25 = vmul.f32 1.442695, %v1498_v30  ;;  %v1704_v39 = vmul.f32 1.442695, %v1499_v15  ;;  %v1500_v41 = vsub.f32 %v4118_v46, %v1349_v31  ;;  %v1501_v21 = vsub.f32 %v5270_v35, %v1349_v31  ;;  %1909 = vadd.xlane.f32.xlu0 %v1908_v6  ;;  %v5274_v46 = vld [vmem:[#allocation19_spill] sm:$0xff]  ;;  %v5276_v31 = vld [vmem:[#allocation20_spill] sm:$0xff] }
 0x430   :  { %5269 = vst [vmem:[#allocation11_spill] sm:$0xff] %v4519_v32  ;;  %v4523_v11 = vpop.eup %3386  ;;  %3402 = vpow2.f32 %v1656_v48  ;;  %v1911_v47 = vadd.f32 %v4510_v33, %v4504_v45  ;;  %v1658_v30 = vmul.f32 1.442695, %v1476_v27  ;;  %v1479_v15 = vsub.f32 %v5274_v46, %v4444_v19  ;;  %v5278_v27 = vld [vmem:[#allocation22_spill] sm:$0xff] }
 0x431   :  { %5271 = vst [vmem:[#allocation28_spill] sm:$0xff] %v4523_v11  ;;  %3404 = vpow2.f32 %v1702_v25  ;;  %v1706_v18 = vmul.f32 1.442695, %v1500_v41  ;;  %v1708_v59 = vmul.f32 1.442695, %v1501_v21  ;;  %v1480_v35 = vsub.f32 %v5276_v31, %v4447_v34 }
 0x432   :  { %v4529_v8 = vpop.eup %3388  ;;  %3406 = vpow2.f32 %v1704_v39  ;;  %1912 = vadd.xlane.f32.xlu1 %v1911_v47  ;;  %v1660_v48 = vmul.f32 1.442695, %v1477_v0  ;;  %v5277_v25 = vmax.f32 %v4428_v55, %v4430_v9  ;;  %v1482_v21 = vsub.f32 %v5278_v27, %v4450_v4 }
 0x433   :  { %5273 = vst [vmem:[#allocation29_spill] sm:$0xff] %v4529_v8  ;;  %v4533_v6 = vpop.eup %3390  ;;  %3408 = vpow2.f32 %v1706_v18  ;;  %v1875_v39 = vadd.f32 %v4498_v22, %v4490_v37  ;;  %v1662_v0 = vmul.f32 1.442695, %v1478_v12  ;;  %v1664_v46 = vmul.f32 1.442695, %v1479_v15 }
 0x434   :  { %5275 = vst [vmem:[#allocation12_spill] sm:$0xff] %v4533_v6  ;;  %1417 = vmax.xlane.f32.xlu0 %v5277_v25  ;;  %v4540_v41 = vpop.eup %3392  ;;  %3410 = vpow2.f32 %v1708_v59  ;;  %v1808_v19 = vpop.xlane.xlu0 %1807  ;;  %v1666_v59 = vmul.f32 1.442695, %v1480_v35  ;;  %v1670_v12 = vmul.f32 1.442695, %v1482_v21 }
 0x435   :  { %v4546_v47 = vpop.eup %3394  ;;  %3412 = vrcp.f32 %v1808_v19  ;;  %v1914_v38 = vadd.f32 %v4540_v41, %v4533_v6 }
 0x436   :  { %5279 = vst [vmem:[#allocation13_spill] sm:$0xff] %v4546_v47  ;;  %v4550_v18 = vpop.eup %3396  ;;  %3414 = vpow2.f32 %v1658_v30  ;;  %1876 = vadd.xlane.f32.xlu1 %v1875_v39  ;;  %v1811_v25 = vpop.xlane.xlu1 %1810  ;;  %v5281_v30 = vld [vmem:[#allocation37_spill] sm:$0xff]  ;;  %v1878_v39 = vadd.f32 %v4523_v11, %v4519_v32  ;;  %v5289_v11 = vld [vmem:[#allocation36_spill] sm:$0xff] }
 0x437   :  { %v4552_v31 = vpop.eup %3398  ;;  %3416 = vpow2.f32 %v1660_v48  ;;  %v1917_v27 = vadd.f32 %v4550_v18, %v4546_v47 }
 0x438   :  { %1915 = vadd.xlane.f32.xlu0 %v1914_v38  ;;  %v4556_v37 = vpop.eup %3400  ;;  %3418 = vrcp.f32 %v1811_v25  ;;  %v1352_v19 = vpop.xlane.xlu0 %1351 }
 0x439   :  { %5280 = vst [vmem:[#allocation31_spill] sm:$0xff] %v4556_v37  ;;  %3420 = vpow2.f32 %v1662_v0  ;;  %v1502_v6 = vsub.f32 %v4128_v43, %v1352_v19  ;;  %v1503_v15 = vsub.f32 %v5281_v30, %v1352_v19  ;;  %v5284_v43 = vld [vmem:[#allocation23_spill] sm:$0xff] }
 0x43a   :  { %v4562_v48 = vpop.eup %3402  ;;  %3422 = vpow2.f32 %v1664_v46  ;;  %1918 = vadd.xlane.f32.xlu1 %v1917_v27  ;;  %v1355_v21 = vpop.xlane.xlu1 %1354  ;;  %v1483_v0 = vsub.f32 %v5284_v43, %v4450_v4  ;;  %v5287_v4 = vmax.f32 %v4436_v51, %v4438_v36 }
 0x43b   :  { %5282 = vst [vmem:[#allocation32_spill] sm:$0xff] %v4562_v48  ;;  %v4564_v35 = vpop.eup %3404  ;;  %3424 = vpow2.f32 %v1666_v59  ;;  %v1710_v38 = vmul.f32 1.442695, %v1502_v6  ;;  %v1712_v47 = vmul.f32 1.442695, %v1503_v15  ;;  %v1504_v19 = vsub.f32 %v4140_v61, %v1355_v21 }
 0x43c   :  { %5283 = vst [vmem:[#allocation14_spill] sm:$0xff] %v4564_v35  ;;  %1879 = vadd.xlane.f32.xlu0 %v1878_v39  ;;  %v4566_v25 = vpop.eup %3406  ;;  %3426 = vpow2.f32 %v1670_v12  ;;  %v1505_v30 = vsub.f32 %v4146_v49, %v1355_v21  ;;  %v1814_v32 = vpop.xlane.xlu0 %1813  ;;  %v5288_v39 = vld [vmem:[#allocation21_spill] sm:$0xff]  ;;  %v1672_v21 = vmul.f32 1.442695, %v1483_v0 }
 0x43d   :  { %v4572_v46 = vpop.eup %3408  ;;  %3428 = vpow2.f32 %v1710_v38  ;;  %v1920_v6 = vadd.f32 %v4566_v25, %v4564_v35  ;;  %v1714_v27 = vmul.f32 1.442695, %v1504_v19  ;;  %v1481_v38 = vsub.f32 %v5288_v39, %v4447_v34  ;;  %v5291_v39 = vld [vmem:[#allocation39_spill] sm:$0xff] }
 0x43e   :  { %5285 = vst [vmem:[#allocation33_spill] sm:$0xff] %v4572_v46  ;;  %v4576_v59 = vpop.eup %3410  ;;  %3430 = vpow2.f32 %v1712_v47  ;;  %v1716_v15 = vmul.f32 1.442695, %v1505_v30  ;;  %1420 = vmax.xlane.f32.xlu1 %v5287_v4 }
 0x43f   :  { %5286 = vst [vmem:[#allocation15_spill] sm:$0xff] %v4576_v59  ;;  %v3413_v12 = vpop.eup %3412  ;;  %3432 = vrcp.f32 %v1814_v32  ;;  %v1923_v61 = vadd.f32 %v4576_v59, %v4572_v46 }
 0x440   :  { %1921 = vadd.xlane.f32.xlu0 %v1920_v6  ;;  %v4583_v49 = vpop.eup %3414  ;;  %3434 = vpow2.f32 %v1714_v27  ;;  %v1817_v47 = vpop.xlane.xlu1 %1816  ;;  %v1884_v6 = vadd.f32 %v4562_v48, %v4556_v37  ;;  %v2063_v46 = vmul.f32 %v3413_v12, %v5289_v11 }
 0x441   :  { %v1358_v43 = vpop.xlane.xlu0 %1357  ;;  %v4587_v19 = vpop.eup %3416  ;;  %3436 = vpow2.f32 %v1716_v15  ;;  %v5292_v15 = vld [vmem:[#allocation38_spill] sm:$0xff] }
 0x442   :  { %v1506_v30 = vsub.f32 %v4156_v52, %v1358_v43  ;;  %v1507_v32 = vsub.f32 %v4160_v53, %v1358_v43  ;;  %v3419_v4 = vpop.eup %3418  ;;  %3438 = vrcp.f32 %v1817_v47  ;;  %1924 = vadd.xlane.f32.xlu1 %v1923_v61  ;;  %v1668_v53 = vmul.f32 1.442695, %v1481_v38  ;;  %v5293_v47 = vld [vmem:[#allocation35_spill] sm:$0xff] }
 0x443   :  { %v4594_v34 = vpop.eup %3420  ;;  %v2065_v35 = vmul.f32 %v3419_v4, %v5291_v39  ;;  %v2064_v59 = vmul.f32 %v3419_v4, %v5292_v15  ;;  %3440 = vpow2.f32 %v1672_v21  ;;  %v1881_v61 = vadd.f32 %v4552_v31, %v4529_v8  ;;  %v5296_v39 = vld [vmem:[#allocation24_spill] sm:$0xff] }
 0x444   :  { %5290 = vst [vmem:[#allocation16_spill] sm:$0xff] %v4594_v34  ;;  %v1718_v0 = vmul.f32 1.442695, %v1506_v30  ;;  %v1720_v27 = vmul.f32 1.442695, %v1507_v32  ;;  %1885 = vadd.xlane.f32.xlu0 %v1884_v6  ;;  %v4598_v52 = vpop.eup %3422  ;;  %v1361_v43 = vpop.xlane.xlu1 %1360  ;;  %v2062_v11 = vmul.f32 %v3413_v12, %v5293_v47  ;;  %v1484_v15 = vsub.f32 %v5296_v39, %v4452_v26 }
 0x445   :  { %v1820_v37 = vpop.xlane.xlu0 %1819  ;;  %v4603_v48 = vpop.eup %3424  ;;  %v1508_v30 = vsub.f32 %v4168_v56, %v1361_v43  ;;  %v1509_v32 = vsub.f32 %v4170_v57, %v1361_v43  ;;  %v2191_v6 = vpack.c.bf16 %v2065_v35, %v2063_v46  ;;  %v1890_v39 = vadd.f32 %v4598_v52, %v4594_v34 }
 0x446   :  { %3442 = vpow2.f32 %v1718_v0  ;;  %v4607_v4 = vpop.eup %3426  ;;  %1882 = vadd.xlane.f32.xlu1 %v1881_v61  ;;  %v2190_v38 = vpack.c.bf16 %v2064_v59, %v2062_v11  ;;  %v5297_v59 = vld [vmem:[#allocation46_spill] sm:$0xff]  ;;  %v1674_v47 = vmul.f32 1.442695, %v1484_v15 }
 0x447   :  { %5294 = vst [vmem:[#allocation17_spill] sm:$0xff] %v4607_v4  ;;  %3444 = vpow2.f32 %v1720_v27  ;;  %v4609_v21 = vpop.eup %3428  ;;  %v1722_v8 = vmul.f32 1.442695, %v1508_v30  ;;  %v1724_v12 = vmul.f32 1.442695, %v1509_v32  ;;  %2254 = vmatprep.subr.bf16.mxu0 %v2191_v6 }
 0x448   :  { %5295 = vst [vmem:[#allocation34_spill] sm:$0xff] %v4609_v21  ;;  %3446 = vrcp.f32 %v1820_v37  ;;  %v4613_v0 = vpop.eup %3430  ;;  %2255 = vmatpush1.bf16.xpose.msra.mxu0 %v2190_v38  ;;  %v1823_v56 = vpop.xlane.xlu1 %1822 }
 0x449   :  { %3448 = vpow2.f32 %v1668_v53  ;;  %v1364_v57 = vpop.xlane.xlu0 %1363  ;;  %v3433_v35 = vpop.eup %3432  ;;  %v1926_v43 = vadd.f32 %v4613_v0, %v4609_v21 }
 0x44a   :  { %3450 = vpow2.f32 %v1722_v8  ;;  %v1510_v46 = vsub.f32 %v4184_v2, %v1364_v57  ;;  %v1511_v27 = vsub.f32 %v5297_v59, %v1364_v57  ;;  %v4619_v61 = vpop.eup %3434  ;;  %v5299_v8 = vld [vmem:[#allocation25_spill] sm:$0xff] }
 0x44b   :  { %5298 = vst [vmem:[#allocation18_spill] sm:$0xff] %v4619_v61  ;;  %3452 = vpow2.f32 %v1724_v12  ;;  %v4621_v37 = vpop.eup %3436  ;;  %1927 = vadd.xlane.f32.xlu0 %v1926_v43  ;;  %v1485_v32 = vsub.f32 %v5299_v8, %v4452_v26  ;;  %v5300_v12 = vld [vmem:[#allocation41_spill] sm:$0xff]  ;;  %v5302_v26 = vld [vmem:[#allocation40_spill] sm:$0xff]  ;;  %v5303_v8 = vld [vmem:[#allocation42_spill] sm:$0xff] }
 0x44c   :  { %3454 = vrcp.f32 %v1823_v56  ;;  %v1726_v53 = vmul.f32 1.442695, %v1510_v46  ;;  %v1728_v11 = vmul.f32 1.442695, %v1511_v27  ;;  %v3439_v30 = vpop.eup %3438  ;;  %v1929_v2 = vadd.f32 %v4621_v37, %v4619_v61  ;;  %v1367_v6 = vpop.xlane.xlu1 %1366  ;;  %v5301_v46 = vld [vmem:[#allocation43_spill] sm:$0xff] }
 0x44d   :  { %v1826_v38 = vpop.xlane.xlu0 %1825  ;;  %v2067_v57 = vmul.f32 %v3433_v35, %v5300_v12  ;;  %v1512_v15 = vsub.f32 %v4198_v58, %v1367_v6  ;;  %v1513_v56 = vsub.f32 %v4202_v1, %v1367_v6  ;;  %v2069_v59 = vmul.f32 %v3439_v30, %v5301_v46  ;;  %v4633_v27 = vpop.eup %3440 }
 0x44e   :  { %3456 = vpow2.f32 %v1726_v53  ;;  %1930 = vadd.xlane.f32.xlu1 %v1929_v2  ;;  %v2066_v43 = vmul.f32 %v3433_v35, %v5302_v26  ;;  %v2068_v61 = vmul.f32 %v3439_v30, %v5303_v8  ;;  %v1676_v1 = vmul.f32 1.442695, %v1485_v32 }
 0x44f   :  { %3458 = vpow2.f32 %v1728_v11  ;;  %v1730_v34 = vmul.f32 1.442695, %v1512_v15  ;;  %v1732_v12 = vmul.f32 1.442695, %v1513_v56  ;;  %1891 = vadd.xlane.f32.xlu0 %v1890_v39  ;;  %v2193_v53 = vpack.c.bf16 %v2069_v59, %v2067_v57  ;;  %v5305_v59 = vld [vmem:[#allocation45_spill] sm:$0xff] }
 0x450   :  { %v4637_v21 = vpop.eup %3442  ;;  %3460 = vpow2.f32 %v1674_v47  ;;  %v1887_v6 = vadd.f32 %v4587_v19, %v4583_v49  ;;  %v1829_v11 = vpop.xlane.xlu1 %1828  ;;  %v2192_v46 = vpack.c.bf16 %v2068_v61, %v2066_v43  ;;  %v5304_v47 = vld [vmem:[#allocation51_spill] sm:$0xff]  ;;  %v1896_v56 = vadd.f32 %v4633_v27, %v4607_v4 }
 0x451   :  { %v4639_v58 = vpop.eup %3444  ;;  %3462 = vrcp.f32 %v1826_v38  ;;  %v1370_v2 = vpop.xlane.xlu0 %1369  ;;  %2256 = vmatprep.subr.bf16.mxu0 %v2193_v53 }
 0x452   :  { %v3447_v35 = vpop.eup %3446  ;;  %3464 = vpow2.f32 %v1730_v34  ;;  %v1514_v30 = vsub.f32 %v4212_v10, %v1370_v2  ;;  %v1515_v15 = vsub.f32 %v5304_v47, %v1370_v2  ;;  %v1932_v39 = vadd.f32 %v4639_v58, %v4637_v21  ;;  %1888 = vadd.xlane.f32.xlu1 %v1887_v6  ;;  %2257 = vmatpush1.bf16.xpose.msra.mxu0 %v2192_v46 }
 0x453   :  { %v4647_v57 = vpop.eup %3448  ;;  %3466 = vpow2.f32 %v1732_v12  ;;  %v2071_v26 = vmul.f32 %v3447_v35, %v5305_v59 }
 0x454   :  { %v4649_v32 = vpop.eup %3450  ;;  %3468 = vrcp.f32 %v1829_v11  ;;  %v1734_v38 = vmul.f32 1.442695, %v1514_v30  ;;  %v1736_v61 = vmul.f32 1.442695, %v1515_v15  ;;  %1933 = vadd.xlane.f32.xlu0 %v1932_v39  ;;  %v1373_v10 = vpop.xlane.xlu1 %1372  ;;  %v5306_v11 = vld [vmem:[#allocation48_spill] sm:$0xff]  ;;  %v5308_v30 = vld [vmem:[#allocation47_spill] sm:$0xff] }
 0x455   :  { %v4651_v34 = vpop.eup %3452  ;;  %3470 = vpow2.f32 %v1676_v1  ;;  %v1516_v8 = vsub.f32 %v4224_v42, %v1373_v10  ;;  %v1517_v12 = vsub.f32 %v4229_v50, %v1373_v10  ;;  %v1832_v53 = vpop.xlane.xlu0 %1831  ;;  %v5307_v1 = vld [vmem:[#allocation44_spill] sm:$0xff] }
 0x456   :  { %v3455_v43 = vpop.eup %3454  ;;  %3472 = vpow2.f32 %v1734_v38  ;;  %v1935_v6 = vadd.f32 %v4651_v34, %v4649_v32  ;;  %v2070_v46 = vmul.f32 %v3447_v35, %v5307_v1  ;;  %v1893_v35 = vadd.f32 %v4647_v57, %v4603_v48  ;;  %v5310_v1 = vld [vmem:[#allocation49_spill] sm:$0xff] }
 0x457   :  { %3474 = vpow2.f32 %v1736_v61  ;;  %v2073_v2 = vmul.f32 %v3455_v43, %v5306_v11  ;;  %v2072_v47 = vmul.f32 %v3455_v43, %v5308_v30  ;;  %v1738_v39 = vmul.f32 1.442695, %v1516_v8 }
 0x458   :  { %v4663_v15 = vpop.eup %3456  ;;  %v1740_v59 = vmul.f32 1.442695, %v1517_v12  ;;  %1936 = vadd.xlane.f32.xlu1 %v1935_v6  ;;  %1897 = vadd.xlane.f32.xlu0 %v1896_v56  ;;  %3476 = vrcp.f32 %v1832_v53  ;;  %v1835_v50 = vpop.xlane.xlu1 %1834  ;;  %v5309_v6 = vld [vmem:[#allocation50_spill] sm:$0xff] }
 0x459   :  { %v4665_v42 = vpop.eup %3458  ;;  %v2195_v38 = vpack.c.bf16 %v2073_v2, %v2071_v26  ;;  %v2194_v10 = vpack.c.bf16 %v2072_v47, %v2070_v46  ;;  %3478 = vpow2.f32 %v1738_v39 }
 0x45a   :  { %v4667_v4 = vpop.eup %3460  ;;  %v1938_v61 = vadd.f32 %v4665_v42, %v4663_v15  ;;  %3480 = vpow2.f32 %v1740_v59 }
 0x45b   :  { %v3463_v43 = vpop.eup %3462  ;;  %2258 = vmatprep.subr.bf16.mxu0 %v2195_v38  ;;  %3482 = vrcp.f32 %v1835_v50 }
 0x45c   :  { %v4673_v8 = vpop.eup %3464  ;;  %2259 = vmatpush1.bf16.xpose.msra.mxu0 %v2194_v10  ;;  %1894 = vadd.xlane.f32.xlu1 %v1893_v35  ;;  %v2075_v11 = vmul.f32 %v3463_v43, %v5309_v6  ;;  %v2074_v46 = vmul.f32 %v3463_v43, %v5310_v1 }
 0x45d   :  { %v4675_v56 = vpop.eup %3466  ;;  %1939 = vadd.xlane.f32.xlu0 %v1938_v61 }
 0x45e   :  { %v3469_v26 = vpop.eup %3468  ;;  %v1941_v12 = vadd.f32 %v4675_v56, %v4673_v8 }
 0x45f   :  { %v4679_v53 = vpop.eup %3470  ;;  %v2077_v2 = vmul.f32 %v3469_v26, %v4226_v5  ;;  %v2076_v30 = vmul.f32 %v3469_v26, %v4218_v40  ;;  %v1376_v39 = vpop.xlane.xlu0 %1375 }
 0x460   :  { %v4685_v47 = vpop.eup %3472  ;;  %1942 = vadd.xlane.f32.xlu1 %v1941_v12  ;;  %v1518_v38 = vsub.f32 %v4255_v16, %v1376_v39  ;;  %v1519_v10 = vsub.f32 %v4258_v17, %v1376_v39  ;;  %v1899_v61 = vadd.f32 %v4679_v53, %v4667_v4 }
 0x461   :  { %v4687_v59 = vpop.eup %3474  ;;  %v2197_v50 = vpack.c.bf16 %v2077_v2, %v2075_v11  ;;  %v2196_v35 = vpack.c.bf16 %v2076_v30, %v2074_v46  ;;  %v1379_v5 = vpop.xlane.xlu1 %1378 }
 0x462   :  { %v1944_v43 = vadd.f32 %v4687_v59, %v4685_v47  ;;  %v3477_v40 = vpop.eup %3476  ;;  %v1742_v26 = vmul.f32 1.442695, %v1518_v38  ;;  %v1744_v12 = vmul.f32 1.442695, %v1519_v10  ;;  %v1520_v6 = vsub.f32 %v4265_v60, %v1379_v5  ;;  %v5311_v60 = vld [vmem:[#allocation53_spill] sm:$0xff] }
 0x463   :  { %2260 = vmatprep.subr.bf16.mxu0 %v2197_v50  ;;  %v1521_v11 = vsub.f32 %v4270_v3, %v1379_v5  ;;  %v4697_v2 = vpop.eup %3478  ;;  %v1838_v16 = vpop.xlane.xlu0 %1837  ;;  %v2079_v3 = vmul.f32 %v3477_v40, %v5311_v60 }
 0x464   :  { %2261 = vmatpush1.bf16.xpose.msra.mxu0 %v2196_v35  ;;  %1900 = vadd.xlane.f32.xlu1 %v1899_v61  ;;  %v4699_v17 = vpop.eup %3480  ;;  %3484 = vpow2.f32 %v1742_v26  ;;  %v1746_v1 = vmul.f32 1.442695, %v1520_v6  ;;  %v5312_v61 = vld [vmem:[#allocation52_spill] sm:$0xff] }
 0x465   :  { %v1748_v46 = vmul.f32 1.442695, %v1521_v11  ;;  %1945 = vadd.xlane.f32.xlu0 %v1944_v43  ;;  %v3483_v30 = vpop.eup %3482  ;;  %3486 = vpow2.f32 %v1744_v12  ;;  %v1947_v39 = vadd.f32 %v4699_v17, %v4697_v2  ;;  %v1841_v50 = vpop.xlane.xlu1 %1840  ;;  %v2078_v5 = vmul.f32 %v3477_v40, %v5312_v61 }
 0x466   :  { %3488 = vpow2.f32 %v1746_v1  ;;  %v2081_v38 = vmul.f32 %v3483_v30, %v4246_v20  ;;  %v2080_v10 = vmul.f32 %v3483_v30, %v4242_v14  ;;  %v5313_v14 = vld [vmem:[#allocation60_spill] sm:$0xff] }
 0x467   :  { %3490 = vpow2.f32 %v1748_v46  ;;  %v1382_v35 = vpop.xlane.xlu0 %1381 }
 0x468   :  { %1948 = vadd.xlane.f32.xlu1 %v1947_v39  ;;  %3492 = vrcp.f32 %v1838_v16  ;;  %v2199_v43 = vpack.c.bf16 %v2081_v38, %v2079_v3  ;;  %v1522_v26 = vsub.f32 %v4281_v23, %v1382_v35  ;;  %v1523_v12 = vsub.f32 %v4286_v13, %v1382_v35 }
 0x469   :  { %3494 = vrcp.f32 %v1841_v50  ;;  %v2198_v6 = vpack.c.bf16 %v2080_v10, %v2078_v5  ;;  %v1385_v11 = vpop.xlane.xlu1 %1384  ;;  %v5318_v10 = vld [vmem:[#allocation64_spill] sm:$0xff] }
 0x46a   :  { %2262 = vmatprep.subr.bf16.mxu0 %v2199_v43  ;;  %v1750_v1 = vmul.f32 1.442695, %v1522_v26  ;;  %v1752_v60 = vmul.f32 1.442695, %v1523_v12  ;;  %v1524_v20 = vsub.f32 %v4293_v28, %v1385_v11  ;;  %v1525_v46 = vsub.f32 %v5313_v14, %v1385_v11  ;;  %v5317_v28 = vld [vmem:[#allocation63_spill] sm:$0xff]  ;;  %v5320_v11 = vld [vmem:[#allocation66_spill] sm:$0xff] }
 0x46b   :  { %v1844_v30 = vpop.xlane.xlu0 %1843 }
 0x46c   :  { %2263 = vmatpush1.bf16.xpose.msra.mxu0 %v2198_v6  ;;  %3496 = vpow2.f32 %v1750_v1  ;;  %v1754_v40 = vmul.f32 1.442695, %v1524_v20  ;;  %v1756_v16 = vmul.f32 1.442695, %v1525_v46 }
 0x46d   :  { %3498 = vpow2.f32 %v1752_v60  ;;  %v1847_v39 = vpop.xlane.xlu1 %1846  ;;  %v5321_v60 = vld [vmem:[#allocation68_spill] sm:$0xff] }
 0x46e   :  { %v4711_v23 = vpop.eup %3484  ;;  %3500 = vpow2.f32 %v1754_v40  ;;  %v5322_v40 = vld [vmem:[#allocation55_spill] sm:$0xff] }
 0x46f   :  { %5314 = vst [vmem:[#allocation19_spill] sm:$0xff] %v4711_v23  ;;  %v4713_v13 = vpop.eup %3486  ;;  %3502 = vpow2.f32 %v1756_v16  ;;  %v1388_v50 = vpop.xlane.xlu0 %1387 }
 0x470   :  { %5315 = vst [vmem:[#allocation20_spill] sm:$0xff] %v4713_v13  ;;  %v4715_v3 = vpop.eup %3488  ;;  %3504 = vrcp.f32 %v1844_v30  ;;  %v1526_v38 = vsub.f32 %v5317_v28, %v1388_v50  ;;  %v1527_v35 = vsub.f32 %v5318_v10, %v1388_v50  ;;  %v1950_v61 = vadd.f32 %v4713_v13, %v4711_v23  ;;  %v5325_v23 = vld [vmem:[#allocation56_spill] sm:$0xff] }
 0x471   :  { %5316 = vst [vmem:[#allocation22_spill] sm:$0xff] %v4715_v3  ;;  %v4721_v5 = vpop.eup %3490  ;;  %3506 = vrcp.f32 %v1847_v39  ;;  %v1391_v43 = vpop.xlane.xlu1 %1390  ;;  %v5323_v39 = vld [vmem:[#allocation57_spill] sm:$0xff] }
 0x472   :  { %5319 = vst [vmem:[#allocation37_spill] sm:$0xff] %v4721_v5  ;;  %v3493_v26 = vpop.eup %3492  ;;  %v1758_v12 = vmul.f32 1.442695, %v1526_v38  ;;  %v1760_v6 = vmul.f32 1.442695, %v1527_v35  ;;  %v1528_v1 = vsub.f32 %v5320_v11, %v1391_v43  ;;  %v1529_v20 = vsub.f32 %v5321_v60, %v1391_v43  ;;  %1951 = vadd.xlane.f32.xlu0 %v1950_v61  ;;  %v5324_v35 = vld [vmem:[#allocation54_spill] sm:$0xff] }
 0x473   :  { %v3495_v14 = vpop.eup %3494  ;;  %v1953_v46 = vadd.f32 %v4721_v5, %v4715_v3  ;;  %v1850_v30 = vpop.xlane.xlu0 %1849  ;;  %v2083_v16 = vmul.f32 %v3493_v26, %v5322_v40  ;;  %v2082_v11 = vmul.f32 %v3493_v26, %v5324_v35  ;;  %v5337_v5 = vld [vmem:[#allocation61_spill] sm:$0xff] }
 0x474   :  { %3508 = vpow2.f32 %v1758_v12  ;;  %v1762_v50 = vmul.f32 1.442695, %v1528_v1  ;;  %v1764_v28 = vmul.f32 1.442695, %v1529_v20  ;;  %v2085_v10 = vmul.f32 %v3495_v14, %v5323_v39 }
 0x475   :  { %3510 = vpow2.f32 %v1760_v6  ;;  %1954 = vadd.xlane.f32.xlu1 %v1953_v46  ;;  %v1853_v38 = vpop.xlane.xlu1 %1852  ;;  %v2084_v43 = vmul.f32 %v3495_v14, %v5325_v23  ;;  %v5329_v6 = vld [vmem:[#allocation71_spill] sm:$0xff]  ;;  %v5330_v46 = vld [vmem:[#allocation72_spill] sm:$0xff] }
 0x476   :  { %v4731_v61 = vpop.eup %3496  ;;  %3512 = vpow2.f32 %v1762_v50  ;;  %v2201_v60 = vpack.c.bf16 %v2085_v10, %v2083_v16  ;;  %v5332_v10 = vld [vmem:[#allocation74_spill] sm:$0xff] }
 0x477   :  { %5326 = vst [vmem:[#allocation23_spill] sm:$0xff] %v4731_v61  ;;  %v4733_v3 = vpop.eup %3498  ;;  %3514 = vpow2.f32 %v1764_v28  ;;  %v2200_v40 = vpack.c.bf16 %v2084_v43, %v2082_v11  ;;  %v1394_v12 = vpop.xlane.xlu0 %1393  ;;  %v5333_v11 = vld [vmem:[#allocation76_spill] sm:$0xff] }
 0x478   :  { %5327 = vst [vmem:[#allocation21_spill] sm:$0xff] %v4733_v3  ;;  %v4735_v1 = vpop.eup %3500  ;;  %3516 = vrcp.f32 %v1850_v30  ;;  %2264 = vmatprep.subr.bf16.mxu0 %v2201_v60  ;;  %v1530_v20 = vsub.f32 %v5329_v6, %v1394_v12  ;;  %v1531_v39 = vsub.f32 %v5330_v46, %v1394_v12  ;;  %v1956_v23 = vadd.f32 %v4733_v3, %v4731_v61  ;;  %v5334_v6 = vld [vmem:[#allocation59_spill] sm:$0xff] }
 0x479   :  { %5328 = vst [vmem:[#allocation36_spill] sm:$0xff] %v4735_v1  ;;  %v4741_v26 = vpop.eup %3502  ;;  %3518 = vrcp.f32 %v1853_v38  ;;  %2265 = vmatpush1.bf16.xpose.msra.mxu0 %v2200_v40  ;;  %v1397_v14 = vpop.xlane.xlu1 %1396  ;;  %v5335_v40 = vld [vmem:[#allocation62_spill] sm:$0xff] }
 0x47a   :  { %5331 = vst [vmem:[#allocation39_spill] sm:$0xff] %v4741_v26  ;;  %v3505_v16 = vpop.eup %3504  ;;  %v1766_v50 = vmul.f32 1.442695, %v1530_v20  ;;  %v1768_v28 = vmul.f32 1.442695, %v1531_v39  ;;  %v1532_v35 = vsub.f32 %v5332_v10, %v1397_v14  ;;  %v1533_v30 = vsub.f32 %v5333_v11, %v1397_v14  ;;  %1957 = vadd.xlane.f32.xlu0 %v1956_v23  ;;  %v5336_v39 = vld [vmem:[#allocation58_spill] sm:$0xff] }
 0x47b   :  { %v3507_v43 = vpop.eup %3506  ;;  %v1959_v60 = vadd.f32 %v4741_v26, %v4735_v1  ;;  %v1856_v12 = vpop.xlane.xlu0 %1855  ;;  %v2087_v46 = vmul.f32 %v3505_v16, %v5334_v6  ;;  %v2086_v10 = vmul.f32 %v3505_v16, %v5336_v39  ;;  %v5349_v26 = vld [vmem:[#allocation69_spill] sm:$0xff] }
 0x47c   :  { %3520 = vpow2.f32 %v1766_v50  ;;  %v1770_v61 = vmul.f32 1.442695, %v1532_v35  ;;  %v1772_v38 = vmul.f32 1.442695, %v1533_v30  ;;  %v2089_v3 = vmul.f32 %v3507_v43, %v5335_v40 }
 0x47d   :  { %3522 = vpow2.f32 %v1768_v28  ;;  %1960 = vadd.xlane.f32.xlu1 %v1959_v60  ;;  %v1859_v20 = vpop.xlane.xlu1 %1858  ;;  %v2088_v14 = vmul.f32 %v3507_v43, %v5337_v5  ;;  %v5341_v28 = vld [vmem:[#allocation79_spill] sm:$0xff]  ;;  %v5342_v60 = vld [vmem:[#allocation80_spill] sm:$0xff] }
 0x47e   :  { %v4751_v23 = vpop.eup %3508  ;;  %3524 = vpow2.f32 %v1770_v61  ;;  %v2203_v11 = vpack.c.bf16 %v2089_v3, %v2087_v46 }
 0x47f   :  { %5338 = vst [vmem:[#allocation38_spill] sm:$0xff] %v4751_v23  ;;  %v4753_v1 = vpop.eup %3510  ;;  %3526 = vpow2.f32 %v1772_v38  ;;  %v2202_v6 = vpack.c.bf16 %v2088_v14, %v2086_v10  ;;  %v1400_v50 = vpop.xlane.xlu0 %1399  ;;  %v5344_v38 = vld [vmem:[#allocation82_spill] sm:$0xff]  ;;  %v5345_v10 = vld [vmem:[#allocation84_spill] sm:$0xff] }
 0x480   :  { %5339 = vst [vmem:[#allocation35_spill] sm:$0xff] %v4753_v1  ;;  %v4755_v35 = vpop.eup %3512  ;;  %3528 = vrcp.f32 %v1856_v12  ;;  %2266 = vmatprep.subr.bf16.mxu0 %v2203_v11  ;;  %v1534_v30 = vsub.f32 %v5341_v28, %v1400_v50  ;;  %v1535_v40 = vsub.f32 %v5342_v60, %v1400_v50  ;;  %v1962_v5 = vadd.f32 %v4753_v1, %v4751_v23  ;;  %v5346_v28 = vld [vmem:[#allocation67_spill] sm:$0xff] }
 0x481   :  { %5340 = vst [vmem:[#allocation24_spill] sm:$0xff] %v4755_v35  ;;  %v4761_v16 = vpop.eup %3514  ;;  %3530 = vrcp.f32 %v1859_v20  ;;  %2267 = vmatpush1.bf16.xpose.msra.mxu0 %v2202_v6  ;;  %v1403_v3 = vpop.xlane.xlu1 %1402  ;;  %v5347_v6 = vld [vmem:[#allocation70_spill] sm:$0xff] }
 0x482   :  { %5343 = vst [vmem:[#allocation46_spill] sm:$0xff] %v4761_v16  ;;  %v3517_v61 = vpop.eup %3516  ;;  %v1774_v43 = vmul.f32 1.442695, %v1534_v30  ;;  %v1776_v46 = vmul.f32 1.442695, %v1535_v40  ;;  %v1536_v39 = vsub.f32 %v5344_v38, %v1403_v3  ;;  %v1537_v12 = vsub.f32 %v5345_v10, %v1403_v3  ;;  %1963 = vadd.xlane.f32.xlu0 %v1962_v5  ;;  %v5348_v40 = vld [vmem:[#allocation65_spill] sm:$0xff] }
 0x483   :  { %v3519_v14 = vpop.eup %3518  ;;  %v1965_v11 = vadd.f32 %v4761_v16, %v4755_v35  ;;  %v1862_v50 = vpop.xlane.xlu0 %1861  ;;  %v2091_v60 = vmul.f32 %v3517_v61, %v5346_v28  ;;  %v2090_v38 = vmul.f32 %v3517_v61, %v5348_v40  ;;  %v5359_v16 = vld [vmem:[#allocation77_spill] sm:$0xff] }
 0x484   :  { %3532 = vpow2.f32 %v1774_v43  ;;  %v1778_v23 = vmul.f32 1.442695, %v1536_v39  ;;  %v1780_v20 = vmul.f32 1.442695, %v1537_v12  ;;  %v2093_v1 = vmul.f32 %v3519_v14, %v5347_v6 }
 0x485   :  { %3534 = vpow2.f32 %v1776_v46  ;;  %1966 = vadd.xlane.f32.xlu1 %v1965_v11  ;;  %v1865_v30 = vpop.xlane.xlu1 %1864  ;;  %v2092_v3 = vmul.f32 %v3519_v14, %v5349_v26  ;;  %v5352_v46 = vld [vmem:[#allocation87_spill] sm:$0xff]  ;;  %v5353_v11 = vld [vmem:[#allocation88_spill] sm:$0xff] }
 0x486   :  { %v4771_v5 = vpop.eup %3520  ;;  %3536 = vpow2.f32 %v1778_v23  ;;  %v2205_v10 = vpack.c.bf16 %v2093_v1, %v2091_v60 }
 0x487   :  { %5350 = vst [vmem:[#allocation25_spill] sm:$0xff] %v4771_v5  ;;  %v4773_v35 = vpop.eup %3522  ;;  %3538 = vpow2.f32 %v1780_v20  ;;  %v2204_v28 = vpack.c.bf16 %v2092_v3, %v2090_v38  ;;  %v1406_v43 = vpop.xlane.xlu0 %1405  ;;  %v5354_v20 = vld [vmem:[#allocation90_spill] sm:$0xff]  ;;  %v5355_v38 = vld [vmem:[#allocation92_spill] sm:$0xff] }
 0x488   :  { %5351 = vst [vmem:[#allocation41_spill] sm:$0xff] %v4773_v35  ;;  %v4775_v39 = vpop.eup %3524  ;;  %3540 = vrcp.f32 %v1862_v50  ;;  %2268 = vmatprep.subr.bf16.mxu0 %v2205_v10  ;;  %v1538_v12 = vsub.f32 %v5352_v46, %v1406_v43  ;;  %v1539_v6 = vsub.f32 %v5353_v11, %v1406_v43  ;;  %v1968_v26 = vadd.f32 %v4773_v35, %v4771_v5  ;;  %v5356_v43 = vld [vmem:[#allocation75_spill] sm:$0xff] }
 0x489   :  { %v4781_v61 = vpop.eup %3526  ;;  %3542 = vrcp.f32 %v1865_v30  ;;  %2269 = vmatpush1.bf16.xpose.msra.mxu0 %v2204_v28  ;;  %v1409_v1 = vpop.xlane.xlu1 %1408  ;;  %v5357_v30 = vld [vmem:[#allocation78_spill] sm:$0xff] }
 0x48a   :  { %v3529_v23 = vpop.eup %3528  ;;  %v1782_v14 = vmul.f32 1.442695, %v1538_v12  ;;  %v1784_v60 = vmul.f32 1.442695, %v1539_v6  ;;  %v1540_v40 = vsub.f32 %v5354_v20, %v1409_v1  ;;  %v1541_v50 = vsub.f32 %v5355_v38, %v1409_v1  ;;  %1969 = vadd.xlane.f32.xlu1 %v1968_v26  ;;  %v5358_v12 = vld [vmem:[#allocation73_spill] sm:$0xff] }
 0x48b   :  { %v3531_v3 = vpop.eup %3530  ;;  %v1971_v10 = vadd.f32 %v4781_v61, %v4775_v39  ;;  %v2095_v46 = vmul.f32 %v3529_v23, %v5356_v43  ;;  %v1868_v35 = vpop.xlane.xlu0 %1867  ;;  %v2094_v6 = vmul.f32 %v3529_v23, %v5358_v12  ;;  %v5364_v43 = vld [vmem:[#allocation86_spill] sm:$0xff]  ;;  %v631_v12 = vld [vmem:[%s5027_s2 + $0x10] sm:$0xff] }
 0x48c   :  { %3544 = vpow2.f32 %v1782_v14  ;;  %v1786_v11 = vmul.f32 1.442695, %v1540_v40  ;;  %v1788_v5 = vmul.f32 1.442695, %v1541_v50  ;;  %v2097_v28 = vmul.f32 %v3531_v3, %v5357_v30  ;;  %v5366_v30 = vld [vmem:[#allocation85_spill] sm:$0xff] }
 0x48d   :  { %3546 = vpow2.f32 %v1784_v60  ;;  %v2096_v20 = vmul.f32 %v3531_v3, %v5359_v16  ;;  %v1871_v26 = vpop.xlane.xlu1 %1870 }
 0x48e   :  { %v4791_v13 = vpop.eup %3532  ;;  %3548 = vpow2.f32 %v1786_v11  ;;  %1972 = vadd.xlane.f32.xlu1 %v1971_v10  ;;  %v2207_v1 = vpack.c.bf16 %v2097_v28, %v2095_v46  ;;  %v5363_v10 = vld [vmem:[#allocation83_spill] sm:$0xff]  ;;  %v5365_v11 = vld [vmem:[#allocation81_spill] sm:$0xff] }
 0x48f   :  { %5360 = vst [vmem:[#allocation43_spill] sm:$0xff] %v4791_v13  ;;  %v4793_v38 = vpop.eup %3534  ;;  %3550 = vpow2.f32 %v1788_v5  ;;  %v2206_v14 = vpack.c.bf16 %v2096_v20, %v2094_v6 }
 0x490   :  { %v4795_v40 = vpop.eup %3536  ;;  %3552 = vrcp.f32 %v1868_v35  ;;  %2270 = vmatprep.subr.bf16.mxu0 %v2207_v1  ;;  %v1974_v60 = vadd.f32 %v4793_v38, %v4791_v13  ;;  %v5375_v13 = vld [vmem:[#allocation96_spill] sm:$0xff] }
 0x491   :  { %5361 = vst [vmem:[#allocation40_spill] sm:$0xff] %v4795_v40  ;;  %v4799_v23 = vpop.eup %3538  ;;  %3554 = vrcp.f32 %v1871_v26  ;;  %2271 = vmatpush1.bf16.xpose.msra.mxu0 %v2206_v14 }
 0x492   :  { %5362 = vst [vmem:[#allocation42_spill] sm:$0xff] %v4799_v23  ;;  %v3541_v16 = vpop.eup %3540  ;;  %1975 = vadd.xlane.f32.xlu1 %v1974_v60  ;;  %v1977_v3 = vadd.f32 %v4799_v23, %v4795_v40  ;;  %v5374_v40 = vld [vmem:[#allocation95_spill] sm:$0xff] }
 0x493   :  { %v3543_v50 = vpop.eup %3542  ;;  %v2099_v5 = vmul.f32 %v3541_v16, %v5363_v10  ;;  %v2098_v35 = vmul.f32 %v3541_v16, %v5365_v11  ;;  %v5371_v11 = vld [vmem:[#allocation94_spill] sm:$0xff] }
 0x494   :  { %v2101_v46 = vmul.f32 %v3543_v50, %v5364_v43  ;;  %v2100_v28 = vmul.f32 %v3543_v50, %v5366_v30  ;;  %v5370_v43 = vld [vmem:[#allocation91_spill] sm:$0xff]  ;;  %v5372_v30 = vld [vmem:[#allocation89_spill] sm:$0xff] }
 0x496   :  { %v4810_v6 = vpop.eup %3544  ;;  %1978 = vadd.xlane.f32.xlu1 %v1977_v3  ;;  %v2209_v20 = vpack.c.bf16 %v2101_v46, %v2099_v5  ;;  %v2208_v26 = vpack.c.bf16 %v2100_v28, %v2098_v35  ;;  %v1412_v5 = vpop.xlane.xlu0 %1411 }
 0x497   :  { %5367 = vst [vmem:[#allocation51_spill] sm:$0xff] %v4810_v6  ;;  %v4812_v1 = vpop.eup %3546 }
 0x498   :  { %5368 = vst [vmem:[#allocation45_spill] sm:$0xff] %v4812_v1  ;;  %v4814_v14 = vpop.eup %3548  ;;  %2272 = vmatprep.subr.bf16.mxu0 %v2209_v20  ;;  %644 = vperm.xlu0 %3269, %v631_v12   ;;  %v1980_v60 = vadd.f32 %v4812_v1, %v4810_v6  ;;  %v5373_v12 = vld [vmem:[#allocation93_spill] sm:$0xff] }
 0x499   :  { %5369 = vst [vmem:[#allocation48_spill] sm:$0xff] %v4814_v14  ;;  %v4818_v16 = vpop.eup %3550  ;;  %2273 = vmatpush1.bf16.xpose.msra.mxu0 %v2208_v26  ;;  %v1542_v26 = vsub.f32 %v5374_v40, %v1412_v5 }
 0x49a   :  { %v3553_v50 = vpop.eup %3552  ;;  %1981 = vadd.xlane.f32.xlu1 %v1980_v60  ;;  %v1983_v3 = vadd.f32 %v4818_v16, %v4814_v14  ;;  %v1543_v60 = vsub.f32 %v5375_v13, %v1412_v5 }
 0x49b   :  { %v3555_v10 = vpop.eup %3554  ;;  %v2103_v46 = vmul.f32 %v3553_v50, %v5370_v43  ;;  %v2102_v28 = vmul.f32 %v3553_v50, %v5372_v30  ;;  %v1790_v23 = vmul.f32 1.442695, %v1542_v26  ;;  %v5376_v26 = vld [vmem:[#allocation10_spill] sm:$0xff] }
 0x49c   :  { %v2105_v35 = vmul.f32 %v3555_v10, %v5371_v11  ;;  %v2104_v20 = vmul.f32 %v3555_v10, %v5373_v12  ;;  %v1792_v14 = vmul.f32 1.442695, %v1543_v60 }
 0x49d   :  { %3556 = vpow2.f32 %v1790_v23 }
 0x49e   :  { %1984 = vadd.xlane.f32.xlu1 %v1983_v3  ;;  %v2211_v6 = vpack.c.bf16 %v2105_v35, %v2103_v46  ;;  %v2210_v1 = vpack.c.bf16 %v2104_v20, %v2102_v28  ;;  %3558 = vpow2.f32 %v1792_v14 }
 0x4a0   :  { %2274 = vmatprep.subr.bf16.mxu0 %v2211_v6 }
 0x4a1   :  { %2275 = vmatpush1.bf16.xpose.msra.mxu0 %v2210_v1 }
 0x4a7   :  { %v4828_v43 = vpop.eup %3556 }
 0x4a8   :  { %v4830_v11 = vpop.eup %3558 }
 0x4a9   :  { %v1986_v10 = vadd.f32 %v4830_v11, %v4828_v43 }
 0x4b4   :  { %v1904_v50 = vpop.xlane.xlu0 %1903 }
 0x4b5   :  { %3560 = vrcp.f32 %v1904_v50 }
 0x4b7   :  { %v1907_v3 = vpop.xlane.xlu1 %1906  ;;  %1987 = vadd.xlane.f32.xlu0 %v1986_v10 }
 0x4b8   :  { %3562 = vrcp.f32 %v1907_v3  ;;  %v1874_v40 = vpop.xlane.xlu0 %1873 }
 0x4b9   :  { %3564 = vrcp.f32 %v1874_v40 }
 0x4bb   :  { %v1415_v13 = vpop.xlane.xlu1 %1414 }
 0x4bc   :  { %v1544_v6 = vsub.f32 %v4420_v62, %v1415_v13  ;;  %v1545_v1 = vsub.f32 %v4422_v29, %v1415_v13  ;;  %v1910_v23 = vpop.xlane.xlu0 %1909 }
 0x4bd   :  { %3566 = vrcp.f32 %v1910_v23 }
 0x4be   :  { %v1794_v14 = vmul.f32 1.442695, %v1544_v6  ;;  %v1796_v5 = vmul.f32 1.442695, %v1545_v1 }
 0x4bf   :  { %v3561_v46 = vpop.eup %3560  ;;  %v1913_v35 = vpop.xlane.xlu1 %1912 }
 0x4c0   :  { %3568 = vpow2.f32 %v1794_v14  ;;  %v2127_v62 = vmul.f32 %v3561_v46, %v4474_v44  ;;  %v2126_v29 = vmul.f32 %v3561_v46, %v5376_v26  ;;  %v5377_v26 = vld [vmem:[#allocation27_spill] sm:$0xff] }
 0x4c1   :  { %v1418_v30 = vpop.xlane.xlu0 %1417  ;;  %3570 = vpow2.f32 %v1796_v5 }
 0x4c2   :  { %v1546_v28 = vsub.f32 %v4428_v55, %v1418_v30  ;;  %v1547_v12 = vsub.f32 %v4430_v9, %v1418_v30  ;;  %v3563_v20 = vpop.eup %3562  ;;  %3572 = vrcp.f32 %v1913_v35 }
 0x4c3   :  { %v1877_v10 = vpop.xlane.xlu1 %1876  ;;  %v2129_v3 = vmul.f32 %v3563_v20, %v4484_v7  ;;  %v2128_v40 = vmul.f32 %v3563_v20, %v4478_v24  ;;  %v3565_v1 = vpop.eup %3564 }
 0x4c4   :  { %v1798_v60 = vmul.f32 1.442695, %v1546_v28  ;;  %v1800_v50 = vmul.f32 1.442695, %v1547_v12  ;;  %3574 = vrcp.f32 %v1877_v10  ;;  %v2107_v24 = vmul.f32 %v3565_v1, %v4470_v54 }
 0x4c5   :  { %v1916_v13 = vpop.xlane.xlu0 %1915  ;;  %v2223_v6 = vpack.c.bf16 %v2129_v3, %v2127_v62  ;;  %v2222_v55 = vpack.c.bf16 %v2128_v40, %v2126_v29 }
 0x4c6   :  { %3576 = vpow2.f32 %v1798_v60 }
 0x4c7   :  { %3578 = vpow2.f32 %v1800_v50  ;;  %v1919_v9 = vpop.xlane.xlu1 %1918  ;;  %2295 = vmatprep.subr.bf16.mxu1 %v2223_v6  ;;  %v3567_v23 = vpop.eup %3566 }
 0x4c8   :  { %3580 = vrcp.f32 %v1916_v13  ;;  %2296 = vmatpush1.bf16.xpose.msra.mxu1 %v2222_v55  ;;  %v2131_v20 = vmul.f32 %v3567_v23, %v4502_v63  ;;  %v2130_v29 = vmul.f32 %v3567_v23, %v5377_v26  ;;  %v5379_v55 = vld [vmem:[#allocation26_spill] sm:$0xff] }
 0x4c9   :  { %3582 = vrcp.f32 %v1919_v9  ;;  %v1880_v44 = vpop.xlane.xlu0 %1879 }
 0x4ca   :  { %v4842_v14 = vpop.eup %3568  ;;  %3584 = vrcp.f32 %v1880_v44 }
 0x4cb   :  { %v4844_v5 = vpop.eup %3570  ;;  %v1421_v7 = vpop.xlane.xlu1 %1420 }
 0x4cc   :  { %v3573_v46 = vpop.eup %3572  ;;  %v1548_v35 = vsub.f32 %v4436_v51, %v1421_v7  ;;  %v1549_v30 = vsub.f32 %v4438_v36, %v1421_v7  ;;  %v1989_v28 = vadd.f32 %v4844_v5, %v4842_v14  ;;  %v5378_v51 = vld [vmem:[#allocation9_spill] sm:$0xff] }
 0x4cd   :  { %v1922_v12 = vpop.xlane.xlu0 %1921  ;;  %v2133_v62 = vmul.f32 %v3573_v46, %v4510_v33  ;;  %v2132_v60 = vmul.f32 %v3573_v46, %v4504_v45  ;;  %v2106_v36 = vmul.f32 %v3565_v1, %v5378_v51 }
 0x4ce   :  { %v3575_v50 = vpop.eup %3574  ;;  %v1802_v54 = vmul.f32 1.442695, %v1548_v35  ;;  %v1804_v10 = vmul.f32 1.442695, %v1549_v30  ;;  %1990 = vadd.xlane.f32.xlu1 %v1989_v28  ;;  %3586 = vrcp.f32 %v1922_v12  ;;  %v5380_v30 = vld [vmem:[#allocation13_spill] sm:$0xff] }
 0x4cf   :  { %v1925_v40 = vpop.xlane.xlu1 %1924  ;;  %v2225_v13 = vpack.c.bf16 %v2133_v62, %v2131_v20  ;;  %v2224_v6 = vpack.c.bf16 %v2132_v60, %v2130_v29  ;;  %v2109_v63 = vmul.f32 %v3575_v50, %v4498_v22  ;;  %v2108_v33 = vmul.f32 %v3575_v50, %v5379_v55 }
 0x4d0   :  { %v4856_v3 = vpop.eup %3576  ;;  %3588 = vpow2.f32 %v1802_v54 }
 0x4d1   :  { %v4860_v9 = vpop.eup %3578  ;;  %3590 = vpow2.f32 %v1804_v10  ;;  %2297 = vmatprep.subr.bf16.mxu1 %v2225_v13  ;;  %v2213_v44 = vpack.c.bf16 %v2109_v63, %v2107_v24  ;;  %v2212_v1 = vpack.c.bf16 %v2108_v33, %v2106_v36  ;;  %v1886_v12 = vpop.xlane.xlu0 %1885  ;;  %v5381_v24 = vld [vmem:[#allocation12_spill] sm:$0xff]  ;;  %v5382_v13 = vld [vmem:[#allocation15_spill] sm:$0xff]  ;;  %v5383_v63 = vld [vmem:[#allocation14_spill] sm:$0xff] }
 0x4d2   :  { %v3581_v45 = vpop.eup %3580  ;;  %v1992_v23 = vadd.f32 %v4860_v9, %v4856_v3  ;;  %3592 = vrcp.f32 %v1925_v40  ;;  %2298 = vmatpush1.bf16.xpose.msra.mxu1 %v2224_v6  ;;  %v5384_v33 = vld [vmem:[#allocation33_spill] sm:$0xff] }
 0x4d3   :  { %v3583_v7 = vpop.eup %3582  ;;  %v1883_v46 = vpop.xlane.xlu1 %1882  ;;  %2276 = vmatprep.subr.bf16.mxu0 %v2213_v44  ;;  %v2135_v22 = vmul.f32 %v3581_v45, %v4540_v41  ;;  %v2134_v20 = vmul.f32 %v3581_v45, %v5381_v24 }
 0x4d4   :  { %1993 = vadd.xlane.f32.xlu1 %v1992_v23  ;;  %v2137_v35 = vmul.f32 %v3583_v7, %v4550_v18  ;;  %v2136_v28 = vmul.f32 %v3583_v7, %v5380_v30  ;;  %3594 = vrcp.f32 %v1883_v46  ;;  %2277 = vmatpush1.bf16.xpose.msra.mxu0 %v2212_v1  ;;  %v3585_v29 = vpop.eup %3584  ;;  %v5385_v23 = vld [vmem:[#allocation28_spill] sm:$0xff]  ;;  %v5386_v7 = vld [vmem:[#allocation11_spill] sm:$0xff] }
 0x4d5   :  { %v2111_v1 = vmul.f32 %v3585_v29, %v5385_v23  ;;  %v2110_v46 = vmul.f32 %v3585_v29, %v5386_v7  ;;  %v5390_v23 = vld [vmem:[#allocation32_spill] sm:$0xff]  ;;  %v5391_v7 = vld [vmem:[#allocation31_spill] sm:$0xff] }
 0x4d6   :  { %v2227_v62 = vpack.c.bf16 %v2137_v35, %v2135_v22  ;;  %v2226_v26 = vpack.c.bf16 %v2136_v28, %v2134_v20 }
 0x4d8   :  { %2299 = vmatprep.subr.bf16.mxu1 %v2227_v62  ;;  %v3587_v60 = vpop.eup %3586  ;;  %v1928_v50 = vpop.xlane.xlu0 %1927 }
 0x4d9   :  { %3596 = vrcp.f32 %v1928_v50  ;;  %v2139_v40 = vmul.f32 %v3587_v60, %v4566_v25  ;;  %v2138_v55 = vmul.f32 %v3587_v60, %v5383_v63 }
 0x4da   :  { %v4868_v54 = vpop.eup %3588  ;;  %2300 = vmatpush1.bf16.xpose.msra.mxu1 %v2226_v26  ;;  %3598 = vrcp.f32 %v1886_v12  ;;  %v5387_v12 = vld [vmem:[#allocation29_spill] sm:$0xff] }
 0x4db   :  { %v4870_v41 = vpop.eup %3590  ;;  %v1931_v18 = vpop.xlane.xlu1 %1930 }
 0x4dc   :  { %v3593_v10 = vpop.eup %3592  ;;  %3600 = vrcp.f32 %v1931_v18  ;;  %v1892_v51 = vpop.xlane.xlu0 %1891  ;;  %v1995_v36 = vadd.f32 %v4870_v41, %v4868_v54 }
 0x4dd   :  { %v2141_v6 = vmul.f32 %v3593_v10, %v5382_v13  ;;  %v2140_v45 = vmul.f32 %v3593_v10, %v5384_v33  ;;  %v5389_v13 = vld [vmem:[#allocation18_spill] sm:$0xff] }
 0x4de   :  { %v3595_v44 = vpop.eup %3594  ;;  %1996 = vadd.xlane.f32.xlu1 %v1995_v36  ;;  %v5388_v36 = vld [vmem:[#allocation34_spill] sm:$0xff] }
 0x4df   :  { %v1889_v22 = vpop.xlane.xlu1 %1888  ;;  %v2229_v35 = vpack.c.bf16 %v2141_v6, %v2139_v40  ;;  %v2228_v30 = vpack.c.bf16 %v2140_v45, %v2138_v55  ;;  %v2113_v28 = vmul.f32 %v3595_v44, %v4552_v31  ;;  %v2112_v24 = vmul.f32 %v3595_v44, %v5387_v12 }
 0x4e0   :  { %3602 = vrcp.f32 %v1889_v22 }
 0x4e1   :  { %v1934_v25 = vpop.xlane.xlu0 %1933  ;;  %2301 = vmatprep.subr.bf16.mxu1 %v2229_v35  ;;  %v2215_v20 = vpack.c.bf16 %v2113_v28, %v2111_v1  ;;  %v2214_v62 = vpack.c.bf16 %v2112_v24, %v2110_v46 }
 0x4e2   :  { %2302 = vmatpush1.bf16.xpose.msra.mxu1 %v2228_v30  ;;  %3604 = vrcp.f32 %v1934_v25 }
 0x4e3   :  { %2278 = vmatprep.subr.bf16.mxu0 %v2215_v20  ;;  %v3597_v26 = vpop.eup %3596 }
 0x4e4   :  { %2279 = vmatpush1.bf16.xpose.msra.mxu0 %v2214_v62  ;;  %v3599_v29 = vpop.eup %3598  ;;  %v2143_v31 = vmul.f32 %v3597_v26, %v4613_v0  ;;  %v2142_v40 = vmul.f32 %v3597_v26, %v5388_v36 }
 0x4e5   :  { %v1937_v60 = vpop.xlane.xlu1 %1936  ;;  %v1898_v50 = vpop.xlane.xlu0 %1897  ;;  %v2115_v1 = vmul.f32 %v3599_v29, %v5390_v23  ;;  %v2114_v0 = vmul.f32 %v3599_v29, %v5391_v7  ;;  %v5393_v23 = vld [vmem:[#allocation17_spill] sm:$0xff] }
 0x4e6   :  { %3606 = vrcp.f32 %v1937_v60  ;;  %v3601_v18 = vpop.eup %3600 }
 0x4e7   :  { %3608 = vrcp.f32 %v1892_v51  ;;  %v2145_v10 = vmul.f32 %v3601_v18, %v4621_v37  ;;  %v2144_v6 = vmul.f32 %v3601_v18, %v5389_v13 }
 0x4e9   :  { %v1895_v63 = vpop.xlane.xlu1 %1894  ;;  %v2231_v33 = vpack.c.bf16 %v2145_v10, %v2143_v31  ;;  %v2230_v45 = vpack.c.bf16 %v2144_v6, %v2142_v40  ;;  %v5392_v10 = vld [vmem:[#allocation16_spill] sm:$0xff] }
 0x4ea   :  { %3610 = vrcp.f32 %v1895_v63  ;;  %v1940_v55 = vpop.xlane.xlu0 %1939  ;;  %v3603_v44 = vpop.eup %3602 }
 0x4eb   :  { %3612 = vrcp.f32 %v1940_v55  ;;  %2303 = vmatprep.subr.bf16.mxu1 %v2231_v33  ;;  %v2117_v51 = vmul.f32 %v3603_v44, %v4587_v19  ;;  %v2116_v37 = vmul.f32 %v3603_v44, %v4583_v49 }
 0x4ec   :  { %2304 = vmatpush1.bf16.xpose.msra.mxu1 %v2230_v45  ;;  %v3605_v22 = vpop.eup %3604 }
 0x4ed   :  { %v1943_v46 = vpop.xlane.xlu1 %1942  ;;  %v2217_v35 = vpack.c.bf16 %v2117_v51, %v2115_v1  ;;  %v2216_v30 = vpack.c.bf16 %v2116_v37, %v2114_v0  ;;  %v2147_v25 = vmul.f32 %v3605_v22, %v4639_v58  ;;  %v2146_v20 = vmul.f32 %v3605_v22, %v4637_v21 }
 0x4ee   :  { %3614 = vrcp.f32 %v1943_v46 }
 0x4ef   :  { %3616 = vrcp.f32 %v1898_v50  ;;  %2280 = vmatprep.subr.bf16.mxu0 %v2217_v35 }
 0x4f0   :  { %v3607_v28 = vpop.eup %3606  ;;  %2281 = vmatpush1.bf16.xpose.msra.mxu0 %v2216_v30 }
 0x4f1   :  { %v3609_v12 = vpop.eup %3608  ;;  %v1901_v24 = vpop.xlane.xlu1 %1900  ;;  %v2149_v19 = vmul.f32 %v3607_v28, %v4651_v34  ;;  %v2148_v49 = vmul.f32 %v3607_v28, %v4649_v32 }
 0x4f2   :  { %3618 = vrcp.f32 %v1901_v24  ;;  %v1946_v62 = vpop.xlane.xlu0 %1945  ;;  %v2119_v50 = vmul.f32 %v3609_v12, %v4598_v52  ;;  %v2118_v58 = vmul.f32 %v3609_v12, %v5392_v10  ;;  %v5394_v12 = vld [vmem:[#allocation20_spill] sm:$0xff]  ;;  %v5395_v24 = vld [vmem:[#allocation37_spill] sm:$0xff]  ;;  %v5399_v10 = vld [vmem:[#allocation39_spill] sm:$0xff] }
 0x4f3   :  { %v2233_v26 = vpack.c.bf16 %v2149_v19, %v2147_v25  ;;  %v2232_v60 = vpack.c.bf16 %v2148_v49, %v2146_v20  ;;  %3620 = vrcp.f32 %v1946_v62  ;;  %v5396_v25 = vld [vmem:[#allocation19_spill] sm:$0xff]  ;;  %v5397_v19 = vld [vmem:[#allocation22_spill] sm:$0xff] }
 0x4f4   :  { %v3611_v29 = vpop.eup %3610 }
 0x4f5   :  { %v1949_v18 = vpop.xlane.xlu1 %1948  ;;  %2305 = vmatprep.subr.bf16.mxu1 %v2233_v26  ;;  %v2121_v31 = vmul.f32 %v3611_v29, %v4647_v57  ;;  %v2120_v34 = vmul.f32 %v3611_v29, %v4603_v48  ;;  %v3613_v36 = vpop.eup %3612 }
 0x4f6   :  { %3622 = vrcp.f32 %v1949_v18  ;;  %2306 = vmatpush1.bf16.xpose.msra.mxu1 %v2232_v60  ;;  %v2151_v13 = vmul.f32 %v3613_v36, %v4665_v42  ;;  %v2150_v63 = vmul.f32 %v3613_v36, %v4663_v15 }
 0x4f7   :  { %v2219_v21 = vpack.c.bf16 %v2121_v31, %v2119_v50  ;;  %v2218_v32 = vpack.c.bf16 %v2120_v34, %v2118_v58  ;;  %v5398_v50 = vld [vmem:[#allocation21_spill] sm:$0xff]  ;;  %v5400_v34 = vld [vmem:[#allocation36_spill] sm:$0xff] }
 0x4f8   :  { %v3615_v40 = vpop.eup %3614 }
 0x4f9   :  { %2282 = vmatprep.subr.bf16.mxu0 %v2219_v21  ;;  %v2153_v6 = vmul.f32 %v3615_v40, %v4675_v56  ;;  %v2152_v52 = vmul.f32 %v3615_v40, %v4673_v8  ;;  %v3617_v57 = vpop.eup %3616  ;;  %v5401_v40 = vld [vmem:[#allocation23_spill] sm:$0xff] }
 0x4fa   :  { %2283 = vmatpush1.bf16.xpose.msra.mxu0 %v2218_v32  ;;  %v2123_v45 = vmul.f32 %v3617_v57, %v4633_v27  ;;  %v2122_v1 = vmul.f32 %v3617_v57, %v5393_v23 }
 0x4fb   :  { %v2235_v55 = vpack.c.bf16 %v2153_v6, %v2151_v13  ;;  %v2234_v33 = vpack.c.bf16 %v2152_v52, %v2150_v63  ;;  %v5402_v6 = vld [vmem:[#allocation7_spill] sm:$0xff] }
 0x4fc   :  { %v3619_v48 = vpop.eup %3618 }
 0x4fd   :  { %2307 = vmatprep.subr.bf16.mxu1 %v2235_v55  ;;  %v2125_v44 = vmul.f32 %v3619_v48, %v4679_v53  ;;  %v2124_v42 = vmul.f32 %v3619_v48, %v4667_v4  ;;  %v3621_v51 = vpop.eup %3620  ;;  %v5403_v55 = vld [vmem:[#allocation6_spill] sm:$0xff] }
 0x4fe   :  { %2308 = vmatpush1.bf16.xpose.msra.mxu1 %v2234_v33  ;;  %v2155_v0 = vmul.f32 %v3621_v51, %v4687_v59  ;;  %v2154_v46 = vmul.f32 %v3621_v51, %v4685_v47  ;;  %v5404_v48 = vld [vmem:[#allocation30_spill] sm:$0xff] }
 0x4ff   :  { %v2221_v56 = vpack.c.bf16 %v2125_v44, %v2123_v45  ;;  %v2220_v15 = vpack.c.bf16 %v2124_v42, %v2122_v1  ;;  %v1952_v8 = vpop.xlane.xlu0 %1951 }
 0x500   :  { %v3623_v7 = vpop.eup %3622  ;;  %3624 = vrcp.f32 %v1952_v8  ;;  %v5406_v8 = vld [vmem:[#allocation46_spill] sm:$0xff] }
 0x501   :  { %2284 = vmatprep.subr.bf16.mxu0 %v2221_v56  ;;  %v2157_v37 = vmul.f32 %v3623_v7, %v4699_v17  ;;  %v2156_v27 = vmul.f32 %v3623_v7, %v4697_v2 }
 0x502   :  { %2285 = vmatpush1.bf16.xpose.msra.mxu0 %v2220_v15  ;;  %v1955_v53 = vpop.xlane.xlu1 %1954  ;;  %v5405_v15 = vld [vmem:[#allocation35_spill] sm:$0xff] }
 0x503   :  { %v2237_v22 = vpack.c.bf16 %v2157_v37, %v2155_v0  ;;  %v2236_v4 = vpack.c.bf16 %v2156_v27, %v2154_v46  ;;  %3626 = vrcp.f32 %v1955_v53  ;;  %v5407_v37 = vld [vmem:[#allocation38_spill] sm:$0xff]  ;;  %v5408_v27 = vld [vmem:[#allocation24_spill] sm:$0xff] }
 0x505   :  { %2309 = vmatprep.subr.bf16.mxu1 %v2237_v22 }
 0x506   :  { %2310 = vmatpush1.bf16.xpose.msra.mxu1 %v2236_v4 }
 0x507   :  { %v1958_v35 = vpop.xlane.xlu0 %1957 }
 0x508   :  { %3628 = vrcp.f32 %v1958_v35 }
 0x50a   :  { %v1961_v30 = vpop.xlane.xlu1 %1960  ;;  %v3625_v28 = vpop.eup %3624 }
 0x50b   :  { %3630 = vrcp.f32 %v1961_v30  ;;  %v2159_v17 = vmul.f32 %v3625_v28, %v5394_v12  ;;  %v2158_v2 = vmul.f32 %v3625_v28, %v5396_v25  ;;  %v5410_v25 = vld [vmem:[#allocation25_spill] sm:$0xff] }
 0x50d   :  { %v3627_v59 = vpop.eup %3626 }
 0x50e   :  { %v2161_v47 = vmul.f32 %v3627_v59, %v5395_v24  ;;  %v2160_v20 = vmul.f32 %v3627_v59, %v5397_v19 }
 0x50f   :  { %v1964_v49 = vpop.xlane.xlu0 %1963 }
 0x510   :  { %v2239_v62 = vpack.c.bf16 %v2161_v47, %v2159_v17  ;;  %v2238_v26 = vpack.c.bf16 %v2160_v20, %v2158_v2  ;;  %3632 = vrcp.f32 %v1964_v49  ;;  %v5409_v17 = vld [vmem:[#allocation41_spill] sm:$0xff] }
 0x512   :  { %v1967_v60 = vpop.xlane.xlu1 %1966  ;;  %2311 = vmatprep.subr.bf16.mxu1 %v2239_v62  ;;  %v3629_v29 = vpop.eup %3628 }
 0x513   :  { %3634 = vrcp.f32 %v1967_v60  ;;  %2312 = vmatpush1.bf16.xpose.msra.mxu1 %v2238_v26  ;;  %v2163_v31 = vmul.f32 %v3629_v29, %v5398_v50  ;;  %v2162_v13 = vmul.f32 %v3629_v29, %v5401_v40  ;;  %v5414_v40 = vld [vmem:[#allocation45_spill] sm:$0xff] }
 0x515   :  { %v3631_v18 = vpop.eup %3630 }
 0x516   :  { %v2165_v58 = vmul.f32 %v3631_v18, %v5399_v10  ;;  %v2164_v36 = vmul.f32 %v3631_v18, %v5400_v34  ;;  %v5411_v18 = vld [vmem:[#allocation42_spill] sm:$0xff] }
 0x517   :  { %v1970_v21 = vpop.xlane.xlu1 %1969  ;;  %v4917_v32 = vpop.permute.xlu0 %644 }
 0x518   :  { %v651_v63 = vadd.f32 %v4917_v32, %v5402_v6  ;;  %v2241_v52 = vpack.c.bf16 %v2165_v58, %v2163_v31  ;;  %v2240_v57 = vpack.c.bf16 %v2164_v36, %v2162_v13  ;;  %v652_v33 = vadd.f32 %v4917_v32, %v5403_v55  ;;  %v5412_v31 = vld [vmem:[#allocation43_spill] sm:$0xff] }
 0x519   :  { %v658_v45 = vadd.f32 %v4917_v32, %v5404_v48  ;;  %3636 = vrcp.f32 %v1970_v21 }
 0x51a   :  { %v667_v44 = vpack.c.bf16 %v651_v63, %v651_v63  ;;  %2313 = vmatprep.subr.bf16.mxu1 %v2241_v52  ;;  %v3633_v23 = vpop.eup %3632  ;;  %v668_v42 = vpack.c.bf16 %v652_v33, %v652_v33  ;;  %v5415_v63 = vld [vmem:[#allocation51_spill] sm:$0xff] }
 0x51b   :  { %2314 = vmatpush1.bf16.xpose.msra.mxu1 %v2240_v57  ;;  %v1973_v1 = vpop.xlane.xlu1 %1972  ;;  %v670_v51 = vpack.c.bf16 %v658_v45, %v658_v45  ;;  %v2167_v7 = vmul.f32 %v3633_v23, %v5405_v15  ;;  %v2166_v46 = vmul.f32 %v3633_v23, %v5407_v37  ;;  %v5416_v57 = vld [vmem:[#allocation48_spill] sm:$0xff] }
 0x51c   :  { %3638 = vrcp.f32 %v1973_v1  ;;  %2286 = vmatprep.mubr.bf16.mxu0 %v668_v42 }
 0x51d   :  { %v3635_v56 = vpop.eup %3634  ;;  %2327 = vmatprep.mubr.bf16.mxu1 %v670_v51  ;;  %2287 = vmatmul.mubr.bf16.vlgmr.msra.gmra.mrb[64].mxu0 %v667_v44 }
 0x51e   :  { %v2169_v0 = vmul.f32 %v3635_v56, %v5406_v8  ;;  %v2168_v53 = vmul.f32 %v3635_v56, %v5408_v27 }
 0x51f   :  { %v1976_v22 = vpop.xlane.xlu1 %1975 }
 0x520   :  { %v2243_v4 = vpack.c.bf16 %v2169_v0, %v2167_v7  ;;  %v2242_v35 = vpack.c.bf16 %v2168_v53, %v2166_v46  ;;  %3640 = vrcp.f32 %v1976_v22 }
 0x522   :  { %2315 = vmatprep.subr.bf16.mxu1 %v2243_v4 }
 0x523   :  { %2316 = vmatpush1.bf16.xpose.msra.mxu1 %v2242_v35  ;;  %v1979_v30 = vpop.xlane.xlu1 %1978  ;;  %v3637_v28 = vpop.eup %3636  ;;  %v2340_v35 = vld [vmem:[%s5028_s3] sm:$0xf] }
 0x524   :  { %3642 = vrcp.f32 %v1979_v30  ;;  %v2171_v24 = vmul.f32 %v3637_v28, %v5409_v17  ;;  %v2170_v2 = vmul.f32 %v3637_v28, %v5410_v25  ;;  %3264 = vmatprep.subr.msk.bf16.mxu0 %vm109_vm0, %v2340_v35 }
 0x526   :  { %v3639_v59 = vpop.eup %3638 }
 0x527   :  { %v1982_v12 = vpop.xlane.xlu1 %1981  ;;  %v2173_v47 = vmul.f32 %v3639_v59, %v4781_v61  ;;  %v2172_v19 = vmul.f32 %v3639_v59, %v4775_v39  ;;  %v5413_v61 = vld [vmem:[#allocation40_spill] sm:$0xff] }
 0x528   :  { %3644 = vrcp.f32 %v1982_v12 }
 0x529   :  { %v2245_v20 = vpack.c.bf16 %v2173_v47, %v2171_v24  ;;  %v2244_v49 = vpack.c.bf16 %v2172_v19, %v2170_v2 }
 0x52a   :  { %v3641_v26 = vpop.eup %3640 }
 0x52b   :  { %v1985_v62 = vpop.xlane.xlu1 %1984  ;;  %2317 = vmatprep.subr.bf16.mxu1 %v2245_v20  ;;  %v2175_v29 = vmul.f32 %v3641_v26, %v4793_v38  ;;  %v2174_v10 = vmul.f32 %v3641_v26, %v5412_v31 }
 0x52c   :  { %3646 = vrcp.f32 %v1985_v62  ;;  %2318 = vmatpush1.bf16.xpose.msra.mxu1 %v2244_v49 }
 0x52e   :  { %v3643_v60 = vpop.eup %3642 }
 0x52f   :  { %v2177_v50 = vmul.f32 %v3643_v60, %v5411_v18  ;;  %v2176_v58 = vmul.f32 %v3643_v60, %v5413_v61 }
 0x531   :  { %v2247_v34 = vpack.c.bf16 %v2177_v50, %v2175_v29  ;;  %v2246_v36 = vpack.c.bf16 %v2176_v58, %v2174_v10  ;;  %v2922_v10 = vld [vmem:[%s5029_s4] sm:$0xff] }
 0x532   :  { %v3645_v39 = vpop.eup %3644 }
 0x533   :  { %2319 = vmatprep.subr.bf16.mxu1 %v2247_v34  ;;  %v2179_v13 = vmul.f32 %v3645_v39, %v5414_v40  ;;  %v2178_v52 = vmul.f32 %v3645_v39, %v5415_v63 }
 0x534   :  { %2320 = vmatpush1.bf16.xpose.msra.mxu1 %v2246_v36 }
 0x536   :  { %v3647_v21 = vpop.eup %3646 }
 0x537   :  { %v2181_v6 = vmul.f32 %v3647_v21, %v4818_v16  ;;  %v2180_v38 = vmul.f32 %v3647_v21, %v5416_v57 }
 0x539   :  { %v2249_v55 = vpack.c.bf16 %v2181_v6, %v2179_v13  ;;  %v2248_v33 = vpack.c.bf16 %v2180_v38, %v2178_v52 }
 0x53b   :  { %2321 = vmatprep.subr.bf16.mxu1 %v2249_v55 }
 0x53c   :  { %2322 = vmatpush1.bf16.xpose.msra.mxu1 %v2248_v33 }
 0x544   :  { %v1988_v48 = vpop.xlane.xlu0 %1987 }
 0x545   :  { %3648 = vrcp.f32 %v1988_v48 }
 0x54f   :  { %v3649_v44 = vpop.eup %3648 }
 0x550   :  { %v2183_v42 = vmul.f32 %v3649_v44, %v4830_v11  ;;  %v2182_v16 = vmul.f32 %v3649_v44, %v4828_v43 }
 0x55b   :  { %v1991_v45 = vpop.xlane.xlu1 %1990 }
 0x55c   :  { %3650 = vrcp.f32 %v1991_v45 }
 0x561   :  { %v1994_v1 = vpop.xlane.xlu1 %1993 }
 0x562   :  { %3652 = vrcp.f32 %v1994_v1 }
 0x566   :  { %v3651_v23 = vpop.eup %3650 }
 0x567   :  { %v2185_v51 = vmul.f32 %v3651_v23, %v4844_v5  ;;  %v2184_v56 = vmul.f32 %v3651_v23, %v4842_v14  ;;  %v5417_v14 = vld [vmem:[#allocation8_spill] sm:$0xff] }
 0x568   :  { %v657_v22 = vadd.f32 %v4917_v32, %v5417_v14 }
 0x569   :  { %v2251_v15 = vpack.c.bf16 %v2185_v51, %v2183_v42  ;;  %v2250_v7 = vpack.c.bf16 %v2184_v56, %v2182_v16 }
 0x56a   :  { %v669_v4 = vpack.c.bf16 %v657_v22, %v657_v22 }
 0x56b   :  { %v1997_v8 = vpop.xlane.xlu1 %1996  ;;  %2323 = vmatprep.subr.bf16.mxu1 %v2251_v15 }
 0x56c   :  { %3654 = vrcp.f32 %v1997_v8  ;;  %2324 = vmatpush1.bf16.xpose.msra.mxu1 %v2250_v7  ;;  %v3653_v0 = vpop.eup %3652 }
 0x56d   :  { %v2187_v46 = vmul.f32 %v3653_v0, %v4860_v9  ;;  %v2186_v11 = vmul.f32 %v3653_v0, %v4856_v3  ;;  %v2502_v9 = vsel %vm109_vm0, %v2340_v35, 0 }
 0x56e   :  { %3197 = vmatpush3.bf16.xpose.msra.mxu0 %v2502_v9 }
 0x576   :  { %v3655_v37 = vpop.eup %3654 }
 0x577   :  { %v2189_v27 = vmul.f32 %v3655_v37, %v4870_v41  ;;  %v2188_v5 = vmul.f32 %v3655_v37, %v4868_v54 }
 0x579   :  { %v2253_v43 = vpack.c.bf16 %v2189_v27, %v2187_v46  ;;  %v2252_v53 = vpack.c.bf16 %v2188_v5, %v2186_v11 }
 0x57b   :  { %2325 = vmatprep.subr.bf16.mxu1 %v2253_v43 }
 0x57c   :  { %2326 = vmatpush1.bf16.xpose.msra.mxu1 %v2252_v53 }
 0x583   :  { %2328 = vmatmul.mubr.bf16.vlgmr.msra.gmra.mrb[128].mxu1 %v669_v4 }
 0x5f0   :  { %v2288_v3 = vpop.f32.mrb[64].mxu0 }
 0x5f1   :  { %v2336_v54 = vpack.c.bf16 %v2288_v3, %v2288_v3  ;;  %v2290_v41 = vpop.f32.mrb[65].mxu0 }
 0x5f2   :  { %v2337_v30 = vpack.c.bf16 %v2290_v41, %v2290_v41  ;;  %v2292_v28 = vpop.f32.mrb[66].mxu0 }
 0x5f3   :  { %2341 = vxpose.xlu1.c.b16.start.end [1/1] (short) %v2336_v54, 128  ;;  %v2293_v59 = vpop.f32.mrb[67].mxu0 }
 0x5f4   :  { %2357 = vxpose.xlu0.c.b16.start.end [1/1] (short) %v2337_v30, 128 }
 0x656   :  { %v2329_v32 = vpop.f32.mrb[128].mxu1 }
 0x657   :  { %v2338_v12 = vpack.c.bf16 %v2329_v32, %v2329_v32  ;;  %v2331_v17 = vpop.f32.mrb[129].mxu1 }
 0x658   :  { %v2339_v24 = vpack.c.bf16 %v2331_v17, %v2331_v17  ;;  %v2333_v47 = vpop.f32.mrb[130].mxu1 }
 0x659   :  { %2373 = vxpose.xlu1.c.b16.start.end [1/1] (short) %v2338_v12, 128  ;;  %v2334_v25 = vpop.f32.mrb[131].mxu1  ;;  %v2349_v2 = vpop.trf.xlu1 }
 0x65a   :  { %2389 = vxpose.xlu0.c.b16.start.end [1/1] (short) %v2339_v24, 128  ;;  %3198 = vmatprep.mubr.msk.bf16.mxu0 %vm109_vm0, %v2349_v2  ;;  %v2365_v60 = vpop.trf.xlu0 }
 0x65d   :  { %v2350_v19 = vpop.trf.xlu1 }
 0x65e   :  { %3199 = vmatmul.mubr.msk.bf16.vlgmr.msra.gmra.mrb[68].mxu0 %vm109_vm0, %v2350_v19  ;;  %v2366_v50 = vpop.trf.xlu0 }
 0x661   :  { %v2351_v20 = vpop.trf.xlu1 }
 0x662   :  { %3202 = vmatprep.mubr.msk.bf16.mxu0 %vm109_vm0, %v2351_v20  ;;  %v2367_v31 = vpop.trf.xlu0 }
 0x665   :  { %v2352_v49 = vpop.trf.xlu1 }
 0x666   :  { %3203 = vmatmul.mubr.msk.bf16.gmra.mrb[72].mxu0 %vm109_vm0, %v2352_v49  ;;  %v2368_v61 = vpop.trf.xlu0 }
 0x669   :  { %v2353_v62 = vpop.trf.xlu1 }
 0x66a   :  { %3206 = vmatprep.mubr.msk.bf16.mxu0 %vm109_vm0, %v2353_v62  ;;  %v2369_v58 = vpop.trf.xlu0 }
 0x66d   :  { %v2354_v26 = vpop.trf.xlu1 }
 0x66e   :  { %3207 = vmatmul.mubr.msk.bf16.gmra.mrb[76].mxu0 %vm109_vm0, %v2354_v26  ;;  %v2370_v34 = vpop.trf.xlu0 }
 0x671   :  { %v2355_v29 = vpop.trf.xlu1 }
 0x672   :  { %3210 = vmatprep.mubr.msk.bf16.mxu0 %vm109_vm0, %v2355_v29  ;;  %v2371_v36 = vpop.trf.xlu0 }
 0x675   :  { %v2356_v18 = vpop.trf.xlu1 }
 0x676   :  { %3211 = vmatmul.mubr.msk.bf16.gmra.mrb[80].mxu0 %vm109_vm0, %v2356_v18  ;;  %v2372_v39 = vpop.trf.xlu0 }
 0x677   :  { %3214 = vmatprep.mubr.msk.bf16.mxu0 %vm109_vm0, %v2365_v60 }
 0x67e   :  { %3215 = vmatmul.mubr.msk.bf16.gmra.mrb[84].mxu0 %vm109_vm0, %v2366_v50 }
 0x67f   :  { %2925 = vperm.xlu0 %3269, %v2922_v10   ;;  %3218 = vmatprep.mubr.msk.bf16.mxu0 %vm109_vm0, %v2367_v31 }
 0x686   :  { %3219 = vmatmul.mubr.msk.bf16.gmra.mrb[88].mxu0 %vm109_vm0, %v2368_v61 }
 0x687   :  { %3222 = vmatprep.mubr.msk.bf16.mxu0 %vm109_vm0, %v2369_v58 }
 0x68e   :  { %3223 = vmatmul.mubr.msk.bf16.gmra.mrb[92].mxu0 %vm109_vm0, %v2370_v34 }
 0x68f   :  { %3226 = vmatprep.mubr.msk.bf16.mxu0 %vm109_vm0, %v2371_v36 }
 0x696   :  { %3227 = vmatmul.mubr.msk.bf16.gmra.mrb[96].mxu0 %vm109_vm0, %v2372_v39 }
 0x6bf   :  { %v2381_v21 = vpop.trf.xlu1 }
 0x6c0   :  { %3230 = vmatprep.mubr.msk.bf16.mxu0 %vm109_vm0, %v2381_v21  ;;  %v2397_v52 = vpop.trf.xlu0 }
 0x6c3   :  { %v2382_v40 = vpop.trf.xlu1 }
 0x6c4   :  { %3231 = vmatmul.mubr.msk.bf16.gmra.mrb[100].mxu0 %vm109_vm0, %v2382_v40  ;;  %v2398_v38 = vpop.trf.xlu0  ;;  %v4995_v40 = vstv %s5030_s5 }
 0x6c7   :  { %v2383_v13 = vpop.trf.xlu1 }
 0x6c8   :  { %3234 = vmatprep.mubr.msk.bf16.mxu0 %vm109_vm0, %v2383_v13  ;;  %v2399_v48 = vpop.trf.xlu0 }
 0x6cb   :  { %v2384_v6 = vpop.trf.xlu1 }
 0x6cc   :  { %3235 = vmatmul.mubr.msk.bf16.gmra.mrb[104].mxu0 %vm109_vm0, %v2384_v6  ;;  %v2400_v45 = vpop.trf.xlu0 }
 0x6cf   :  { %v2385_v63 = vpop.trf.xlu1 }
 0x6d0   :  { %3238 = vmatprep.mubr.msk.bf16.mxu0 %vm109_vm0, %v2385_v63  ;;  %v2401_v44 = vpop.trf.xlu0 }
 0x6d3   :  { %v2386_v57 = vpop.trf.xlu1 }
 0x6d4   :  { %3239 = vmatmul.mubr.msk.bf16.gmra.mrb[108].mxu0 %vm109_vm0, %v2386_v57  ;;  %v2402_v23 = vpop.trf.xlu0 }
 0x6d7   :  { %v2387_v55 = vpop.trf.xlu1 }
 0x6d8   :  { %3242 = vmatprep.mubr.msk.bf16.mxu0 %vm109_vm0, %v2387_v55  ;;  %v2403_v1 = vpop.trf.xlu0 }
 0x6db   :  { %v2388_v33 = vpop.trf.xlu1 }
 0x6dc   :  { %3243 = vmatmul.mubr.msk.bf16.gmra.mrb[112].mxu0 %vm109_vm0, %v2388_v33  ;;  %v2404_v42 = vpop.trf.xlu0 }
 0x6dd   :  { %3246 = vmatprep.mubr.msk.bf16.mxu0 %vm109_vm0, %v2397_v52 }
 0x6e4   :  { %3247 = vmatmul.mubr.msk.bf16.gmra.mrb[116].mxu0 %vm109_vm0, %v2398_v38  ;;  %v3656_v38 = vld [vmem:[%s5025_s0] sm:$0xff] }
 0x6e5   :  { %3250 = vmatprep.mubr.msk.bf16.mxu0 %vm109_vm0, %v2399_v48 }
 0x6ec   :  { %3251 = vmatmul.mubr.msk.bf16.gmra.mrb[120].mxu0 %vm109_vm0, %v2400_v45 }
 0x6ed   :  { %3254 = vmatprep.mubr.msk.bf16.mxu0 %vm109_vm0, %v2401_v44 }
 0x6f4   :  { %3255 = vmatmul.mubr.msk.bf16.gmra.mrb[124].mxu0 %vm109_vm0, %v2402_v23 }
 0x6f5   :  { %3258 = vmatprep.mubr.msk.bf16.mxu0 %vm109_vm0, %v2403_v1 }
 0x6fc   :  { %3259 = vmatmul.mubr.msk.bf16.gmra.mrb[128].mxu0 %vm109_vm0, %v2404_v42 }
 0x6fe   :  { %v2926_v21 = vpop.permute.xlu0 %2925 }
 0x731   :  { %v3200_v51 = vpop.f32.mrb[68].mxu0 }
 0x732   :  { %v2538_v16 = vpop.f32.mrb[69].mxu0 }
 0x733   :  { %2793 = vxpose.xlu1.b32.start [1/16] (narrow) %v2538_v16, 8  ;;  %v3201_v56 = vpop.f32.mrb[70].mxu0 }
 0x734   :  { %v2541_v15 = vpop.f32.mrb[71].mxu0 }
 0x737   :  { %2794 = vxpose.xlu1.b32.cont [2/16] (narrow) %v2541_v15, 8 }
 0x739   :  { %v3204_v7 = vpop.f32.mrb[72].mxu0 }
 0x73a   :  { %v2554_v8 = vpop.f32.mrb[73].mxu0 }
 0x73b   :  { %2795 = vxpose.xlu1.b32.cont [3/16] (narrow) %v3200_v51, 8  ;;  %v3205_v0 = vpop.f32.mrb[74].mxu0 }
 0x73c   :  { %v2557_v37 = vpop.f32.mrb[75].mxu0 }
 0x73f   :  { %2796 = vxpose.xlu1.b32.cont [4/16] (narrow) %v3201_v56, 8 }
 0x741   :  { %v3208_v46 = vpop.f32.mrb[76].mxu0 }
 0x742   :  { %v2570_v27 = vpop.f32.mrb[77].mxu0 }
 0x743   :  { %2797 = vxpose.xlu1.b32.cont [5/16] (narrow) %v2554_v8, 8  ;;  %v3209_v11 = vpop.f32.mrb[78].mxu0 }
 0x744   :  { %v2573_v5 = vpop.f32.mrb[79].mxu0 }
 0x747   :  { %2798 = vxpose.xlu1.b32.cont [6/16] (narrow) %v2557_v37, 8 }
 0x749   :  { %v3212_v43 = vpop.f32.mrb[80].mxu0 }
 0x74a   :  { %v2586_v53 = vpop.f32.mrb[81].mxu0 }
 0x74b   :  { %2799 = vxpose.xlu1.b32.cont [7/16] (narrow) %v3204_v7, 8  ;;  %v3213_v14 = vpop.f32.mrb[82].mxu0 }
 0x74c   :  { %v2589_v22 = vpop.f32.mrb[83].mxu0 }
 0x74f   :  { %2800 = vxpose.xlu1.b32.cont [8/16] (narrow) %v3205_v0, 8 }
 0x751   :  { %v3216_v4 = vpop.f32.mrb[84].mxu0 }
 0x752   :  { %v2602_v35 = vpop.f32.mrb[85].mxu0 }
 0x753   :  { %2801 = vxpose.xlu1.b32.cont [9/16] (narrow) %v2570_v27, 8  ;;  %2825 = vxpose.xlu0.b32.start [1/16] (narrow) %v2602_v35, 8  ;;  %v3217_v9 = vpop.f32.mrb[86].mxu0 }
 0x754   :  { %v2605_v3 = vpop.f32.mrb[87].mxu0 }
 0x757   :  { %2802 = vxpose.xlu1.b32.cont [10/16] (narrow) %v2573_v5, 8  ;;  %2826 = vxpose.xlu0.b32.cont [2/16] (narrow) %v2605_v3, 8 }
 0x759   :  { %v3220_v54 = vpop.f32.mrb[88].mxu0 }
 0x75a   :  { %v2618_v41 = vpop.f32.mrb[89].mxu0 }
 0x75b   :  { %2803 = vxpose.xlu1.b32.cont [11/16] (narrow) %v3208_v46, 8  ;;  %2827 = vxpose.xlu0.b32.cont [3/16] (narrow) %v3216_v4, 8  ;;  %v3221_v30 = vpop.f32.mrb[90].mxu0 }
 0x75c   :  { %v2621_v28 = vpop.f32.mrb[91].mxu0 }
 0x75f   :  { %2804 = vxpose.xlu1.b32.cont [12/16] (narrow) %v3209_v11, 8  ;;  %2828 = vxpose.xlu0.b32.cont [4/16] (narrow) %v3217_v9, 8  ;;  %v3657_v11 = vld [vmem:[%s5025_s0 + $0x8] sm:$0xff] }
 0x761   :  { %v3224_v59 = vpop.f32.mrb[92].mxu0 }
 0x762   :  { %v2634_v32 = vpop.f32.mrb[93].mxu0 }
 0x763   :  { %2805 = vxpose.xlu1.b32.cont [13/16] (narrow) %v2586_v53, 8  ;;  %2829 = vxpose.xlu0.b32.cont [5/16] (narrow) %v2618_v41, 8  ;;  %v3225_v12 = vpop.f32.mrb[94].mxu0 }
 0x764   :  { %v2637_v17 = vpop.f32.mrb[95].mxu0 }
 0x767   :  { %2806 = vxpose.xlu1.b32.cont [14/16] (narrow) %v2589_v22, 8  ;;  %2830 = vxpose.xlu0.b32.cont [6/16] (narrow) %v2621_v28, 8  ;;  %v3658_v22 = vld [vmem:[%s5025_s0 + $0x10] sm:$0xff] }
 0x769   :  { %v3228_v24 = vpop.f32.mrb[96].mxu0 }
 0x76a   :  { %v2650_v47 = vpop.f32.mrb[97].mxu0 }
 0x76b   :  { %2807 = vxpose.xlu1.b32.cont [15/16] (narrow) %v3212_v43, 8  ;;  %2831 = vxpose.xlu0.b32.cont [7/16] (narrow) %v3220_v54, 8  ;;  %v3229_v25 = vpop.f32.mrb[98].mxu0  ;;  %v3659_v54 = vld [vmem:[%s5025_s0 + $0x18] sm:$0xff] }
 0x76c   :  { %v2653_v2 = vpop.f32.mrb[99].mxu0 }
 0x76f   :  { %2808 = vxpose.xlu1.b32.end [16/16] (narrow) %v3213_v14, 8  ;;  %2832 = vxpose.xlu0.b32.cont [8/16] (narrow) %v3221_v30, 8 }
 0x773   :  { %2833 = vxpose.xlu0.b32.cont [9/16] (narrow) %v2634_v32, 8 }
 0x777   :  { %2834 = vxpose.xlu0.b32.cont [10/16] (narrow) %v2637_v17, 8 }
 0x77b   :  { %2835 = vxpose.xlu0.b32.cont [11/16] (narrow) %v3224_v59, 8 }
 0x77f   :  { %2836 = vxpose.xlu0.b32.cont [12/16] (narrow) %v3225_v12, 8 }
 0x783   :  { %2837 = vxpose.xlu0.b32.cont [13/16] (narrow) %v2650_v47, 8 }
 0x787   :  { %2838 = vxpose.xlu0.b32.cont [14/16] (narrow) %v2653_v2, 8 }
 0x78b   :  { %2839 = vxpose.xlu0.b32.cont [15/16] (narrow) %v3228_v24, 8 }
 0x78f   :  { %2840 = vxpose.xlu0.b32.end [16/16] (narrow) %v3229_v25, 8 }
 0x797   :  { %v3232_v19 = vpop.f32.mrb[100].mxu0 }
 0x798   :  { %v2666_v20 = vpop.f32.mrb[101].mxu0 }
 0x799   :  { %2857 = vxpose.xlu1.b32.start [1/16] (narrow) %v2666_v20, 8  ;;  %v3233_v49 = vpop.f32.mrb[102].mxu0 }
 0x79a   :  { %v2669_v62 = vpop.f32.mrb[103].mxu0 }
 0x79d   :  { %2858 = vxpose.xlu1.b32.cont [2/16] (narrow) %v2669_v62, 8 }
 0x79f   :  { %v3236_v26 = vpop.f32.mrb[104].mxu0 }
 0x7a0   :  { %v2682_v60 = vpop.f32.mrb[105].mxu0 }
 0x7a1   :  { %2859 = vxpose.xlu1.b32.cont [3/16] (narrow) %v3232_v19, 8  ;;  %v3237_v29 = vpop.f32.mrb[106].mxu0 }
 0x7a2   :  { %v2685_v18 = vpop.f32.mrb[107].mxu0 }
 0x7a5   :  { %2860 = vxpose.xlu1.b32.cont [4/16] (narrow) %v3233_v49, 8 }
 0x7a7   :  { %v3240_v50 = vpop.f32.mrb[108].mxu0 }
 0x7a8   :  { %v2698_v31 = vpop.f32.mrb[109].mxu0 }
 0x7a9   :  { %2861 = vxpose.xlu1.b32.cont [5/16] (narrow) %v2682_v60, 8  ;;  %v3241_v10 = vpop.f32.mrb[110].mxu0 }
 0x7aa   :  { %v2701_v61 = vpop.f32.mrb[111].mxu0 }
 0x7ad   :  { %2862 = vxpose.xlu1.b32.cont [6/16] (narrow) %v2685_v18, 8 }
 0x7af   :  { %v3244_v58 = vpop.f32.mrb[112].mxu0 }
 0x7b0   :  { %v2714_v34 = vpop.f32.mrb[113].mxu0 }
 0x7b1   :  { %2863 = vxpose.xlu1.b32.cont [7/16] (narrow) %v3236_v26, 8  ;;  %v3245_v36 = vpop.f32.mrb[114].mxu0 }
 0x7b2   :  { %v2717_v39 = vpop.f32.mrb[115].mxu0 }
 0x7b3   :  { %v2809_v13 = vpop.trf.xlu1 }
 0x7b4   :  { %v2928_v6 = vadd.f32 %v2926_v21, %v2809_v13 }
 0x7b5   :  { %2864 = vxpose.xlu1.b32.cont [8/16] (narrow) %v3237_v29, 8 }
 0x7b6   :  { %v2933_v63 = vmul.f32 %v4995_v40, %v2928_v6 }
 0x7b7   :  { %v3248_v52 = vpop.f32.mrb[116].mxu0 }
 0x7b8   :  { %v2730_v57 = vpop.f32.mrb[117].mxu0  ;;  %v2937_v55 = vadd.f32 %v3656_v38, %v2933_v63 }
 0x7b9   :  { %2865 = vxpose.xlu1.b32.cont [9/16] (narrow) %v2698_v31, 8  ;;  %2889 = vxpose.xlu0.b32.start [1/16] (narrow) %v2730_v57, 8  ;;  %v3249_v33 = vpop.f32.mrb[118].mxu0 }
 0x7ba   :  { %v2733_v48 = vpop.f32.mrb[119].mxu0  ;;  %2941 = vst [vmem:[#allocation3] sm:$0xff] %v2937_v55 }
 0x7bd   :  { %2866 = vxpose.xlu1.b32.cont [10/16] (narrow) %v2701_v61, 8  ;;  %2890 = vxpose.xlu0.b32.cont [2/16] (narrow) %v2733_v48, 8 }
 0x7bf   :  { %v3252_v45 = vpop.f32.mrb[120].mxu0 }
 0x7c0   :  { %v2746_v44 = vpop.f32.mrb[121].mxu0 }
 0x7c1   :  { %2867 = vxpose.xlu1.b32.cont [11/16] (narrow) %v3240_v50, 8  ;;  %2891 = vxpose.xlu0.b32.cont [3/16] (narrow) %v3248_v52, 8  ;;  %v3253_v23 = vpop.f32.mrb[122].mxu0 }
 0x7c2   :  { %v2749_v1 = vpop.f32.mrb[123].mxu0 }
 0x7c5   :  { %2868 = vxpose.xlu1.b32.cont [12/16] (narrow) %v3241_v10, 8  ;;  %2892 = vxpose.xlu0.b32.cont [4/16] (narrow) %v3249_v33, 8 }
 0x7c7   :  { %v3256_v42 = vpop.f32.mrb[124].mxu0 }
 0x7c8   :  { %v2762_v51 = vpop.f32.mrb[125].mxu0 }
 0x7c9   :  { %2869 = vxpose.xlu1.b32.cont [13/16] (narrow) %v2714_v34, 8  ;;  %2893 = vxpose.xlu0.b32.cont [5/16] (narrow) %v2746_v44, 8  ;;  %v3257_v16 = vpop.f32.mrb[126].mxu0 }
 0x7ca   :  { %v2765_v56 = vpop.f32.mrb[127].mxu0 }
 0x7cd   :  { %2870 = vxpose.xlu1.b32.cont [14/16] (narrow) %v2717_v39, 8  ;;  %2894 = vxpose.xlu0.b32.cont [6/16] (narrow) %v2749_v1, 8 }
 0x7cf   :  { %v3260_v15 = vpop.f32.mrb[128].mxu0 }
 0x7d0   :  { %v2778_v7 = vpop.f32.mrb[129].mxu0 }
 0x7d1   :  { %2871 = vxpose.xlu1.b32.cont [15/16] (narrow) %v3244_v58, 8  ;;  %2895 = vxpose.xlu0.b32.cont [7/16] (narrow) %v3252_v45, 8  ;;  %v3261_v8 = vpop.f32.mrb[130].mxu0 }
 0x7d2   :  { %v2781_v0 = vpop.f32.mrb[131].mxu0 }
 0x7d3   :  { %v2841_v37 = vpop.trf.xlu0 }
 0x7d4   :  { %v2929_v46 = vadd.f32 %v2926_v21, %v2841_v37 }
 0x7d5   :  { %2872 = vxpose.xlu1.b32.end [16/16] (narrow) %v3245_v36, 8  ;;  %2896 = vxpose.xlu0.b32.cont [8/16] (narrow) %v3253_v23, 8 }
 0x7d6   :  { %v2934_v27 = vmul.f32 %v4995_v40, %v2929_v46 }
 0x7d8   :  { %v2938_v5 = vadd.f32 %v3657_v11, %v2934_v27 }
 0x7d9   :  { %2897 = vxpose.xlu0.b32.cont [9/16] (narrow) %v2762_v51, 8 }
 0x7da   :  { %2942 = vst [vmem:[#allocation3 + $0x8] sm:$0xff] %v2938_v5 }
 0x7dd   :  { %2898 = vxpose.xlu0.b32.cont [10/16] (narrow) %v2765_v56, 8 }
 0x7e1   :  { %2899 = vxpose.xlu0.b32.cont [11/16] (narrow) %v3256_v42, 8 }
 0x7e5   :  { %2900 = vxpose.xlu0.b32.cont [12/16] (narrow) %v3257_v16, 8 }
 0x7e9   :  { %2901 = vxpose.xlu0.b32.cont [13/16] (narrow) %v2778_v7, 8 }
 0x7ed   :  { %2902 = vxpose.xlu0.b32.cont [14/16] (narrow) %v2781_v0, 8 }
 0x7f1   :  { %2903 = vxpose.xlu0.b32.cont [15/16] (narrow) %v3260_v15, 8 }
 0x7f5   :  { %2904 = vxpose.xlu0.b32.end [16/16] (narrow) %v3261_v8, 8 }
 0x819   :  { %v2873_v43 = vpop.trf.xlu1 }
 0x81a   :  { %v2930_v53 = vadd.f32 %v2926_v21, %v2873_v43 }
 0x81c   :  { %v2935_v14 = vmul.f32 %v4995_v40, %v2930_v53 }
 0x81e   :  { %v2939_v4 = vadd.f32 %v3658_v22, %v2935_v14 }
 0x820   :  { %2943 = vst [vmem:[#allocation3 + $0x10] sm:$0xff] %v2939_v4 }
 0x839   :  { %v2905_v35 = vpop.trf.xlu0 }
 0x83a   :  { %v2931_v9 = vadd.f32 %v2926_v21, %v2905_v35 }
 0x83c   :  { %v2936_v3 = vmul.f32 %v4995_v40, %v2931_v9 }
 0x83e   :  { %v2940_v41 = vadd.f32 %v3659_v54, %v2936_v3 }
 0x840   :  { %2944 = vst [vmem:[#allocation3 + $0x18] sm:$0xff] %v2940_v41 }
 0x841   :  { %3671 = shalt.err (!%p3668_p4)
}
 0x842   :  { %s3672_s29 = scalar_lea.hbm %s5031_s6, 512 }
 0x843   :  { %p3673_p5 = scmp.ne.s32.totalorder %s5031_s6, %s3672_s29  ;;  %p3676_p6 = scmp.lt.u32.totalorder %s3672_s29, %s5031_s6 }
 0x845   :  { %p3678_p7 = pnand %p3676_p6, %p3673_p5 }
 0x847   :  { %3681 = shalt.err (!%p3678_p7)
}
 0x848   :  { %s3686_s8 = smov 256   ;;  %s3687_s9 = smov 16  }
 0x849   :  { %2956 = dma.vmem_to_hbm [thread:$0]  %s2951_s23, 512, %s5031_s6, [#allocation4], %s3686_s8, %s3686_s8, %s3687_s9  }
 0x84a   :  { %3682 = dma.done.wait [#allocation4], 512  }
 0x84b   :  { %3683 = vsyncadd [#allocation4], 4294966784 }
 0x84c   :  { %2960 = vsyncpa [#allocation4], 1 }

</bundles_post_ra>
